<compile_context>
chip_gen: v6e
topology: v6e:2x2x1
jax: 0.10.0
libtpu: 0.0.40
codegen_flags: <defaults>
</compile_context>

<pallas_src>
import functools

import jax
import jax.numpy as jnp
from jax.experimental import pallas as pl
from jax.experimental.pallas import tpu as pltpu

ACT_DTYPE = jnp.bfloat16   # activations carried between kernels
WGT_DTYPE = jnp.bfloat16   # MXU operand dtype (f32 accumulation)
MAX_ROW_TILE = 1024        # row-tile upper bound; halve on v7x (64 MiB VMEM)

_CELL_CPARAMS = pltpu.CompilerParams(
    dimension_semantics=("parallel", "parallel"))
_STEM_CPARAMS = pltpu.CompilerParams(dimension_semantics=("parallel",))


# ----------------------------------------------------------------------------
# In-kernel helpers
# ----------------------------------------------------------------------------
def _relu_bf16(x):
    """ReLU, returned in the MXU operand dtype."""
    return jnp.maximum(x, 0.0).astype(WGT_DTYPE)


def _mm_seg(segs, w_ref):
    """relu(concat(segs, channel axis)) @ w without materializing the concat.

    Each (rows, c_i) segment is matched against the corresponding row block of
    `w_ref`; accumulation is f32 on the MXU.
    """
    out, r = None, 0
    for s in segs:
        ci = s.shape[-1]
        part = jnp.dot(_relu_bf16(s), w_ref[r:r + ci, :],
                       preferred_element_type=jnp.float32)
        out = part if out is None else out + part
        r += ci
    return out


# ----------------------------------------------------------------------------
# Kernels
# ----------------------------------------------------------------------------
def _stem_kernel(xp_ref, w_ref, b_ref, o_ref, *, H, W):
    """3x3/s1/p1 conv + folded BN.  im2col happens in-kernel: 9 accumulated
    dots over statically shifted windows of the padded per-image block."""
    Cin = xp_ref.shape[-1]
    xv = xp_ref[0]                                   # (H+2, W+2, Cin), bf16
    acc = b_ref[...]                                 # (1, Cout), f32
    t = 0
    for dh in range(3):
        for dw in range(3):
            xt = xv[dh:dh + H, dw:dw + W, :].reshape(H * W, Cin)
            acc = acc + jnp.dot(xt, w_ref[t],
                                preferred_element_type=jnp.float32)
            t += 1
    o_ref[0] = acc.astype(o_ref.dtype)


def _packed_cell_kernel(*refs, n_inputs):
    """Fused 'normal' AugmentCell: ReLU -> 1x1 conv (BN folded) preprocessing
    plus the identity-edge DAG sums and the output concat, all folded into
    column-packed weights -> one dot per cell input, one full-width store."""
    xs = refs[:n_inputs]
    ws = refs[n_inputs:2 * n_inputs]
    bias = refs[2 * n_inputs]
    o_ref = refs[2 * n_inputs + 1]
    acc = bias[...]
    for x, w in zip(xs, ws):
        acc = acc + jnp.dot(_relu_bf16(x[0]), w[...],
                            preferred_element_type=jnp.float32)
    o_ref[0] = acc.astype(o_ref.dtype)


def _reduce_cell_kernel(*refs, pre0_is_fr):
    """Fused 'reduction' AugmentCell (skip_connect genotype).

    Stage 1: preprocessing (ReLU -> 1x1 conv -> folded BN), evaluated only at
             the (even,even)/(odd,odd) spatial phases the DAG actually reads.
    Stage 2: the three FactorizedReduce DAG edges + identity sums + concat,
             packed into column-placed weights so every matmul spans all 2*C
             output columns and the cell output is a single store.
    """
    if pre0_is_fr:
        (p0, p1, p2, p3, s1e, s1o,
         w01, w02, b0, w1, b1,
         aee, aoo, bee, boo, bias, o_ref) = refs
    else:
        (s0e, s0o, s1e, s1o,
         w0, b0, w1, b1,
         aee, aoo, bee, boo, bias, o_ref) = refs
    C = w1.shape[1]
    h = C // 2

    # -- stage 1: preproc0 / preproc1 at the two subsampled phases --
    if pre0_is_fr:
        # preproc0 is itself a FactorizedReduce; keep its two halves separate
        # (they are re-matched against row blocks of the stage-2 weights).
        s0p_ee = [_mm_seg([p0[0]], w01) + b0[:, :h],
                  _mm_seg([p1[0]], w02) + b0[:, h:]]
        s0p_oo = [_mm_seg([p2[0]], w01) + b0[:, :h],
                  _mm_seg([p3[0]], w02) + b0[:, h:]]
    else:
        s0p_ee = [_mm_seg([s0e[0]], w0) + b0[...]]
        s0p_oo = [_mm_seg([s0o[0]], w0) + b0[...]]
    s1p_ee = [_mm_seg([s1e[0]], w1) + b1[...]]
    s1p_oo = [_mm_seg([s1o[0]], w1) + b1[...]]

    # -- stage 2: DAG (n2 = FRa(s0p)+FRb(s1p); n3 = FRc(s1p)+n2; concat) --
    acc = bias[...]
    acc = acc + _mm_seg(s0p_ee, aee) + _mm_seg(s0p_oo, aoo)
    acc = acc + _mm_seg(s1p_ee, bee) + _mm_seg(s1p_oo, boo)
    o_ref[0] = acc.astype(o_ref.dtype)


def _gap_linear_kernel(x_ref, w_ref, b_ref, o_ref):
    # AdaptiveAvgPool2d(1) over the flattened H*W axis, then the final Linear.
    pooled = jnp.mean(x_ref[...].astype(jnp.float32), axis=1)
    o_ref[...] = (jnp.dot(pooled.astype(WGT_DTYPE), w_ref[...],
                          preferred_element_type=jnp.float32) + b_ref[...])


# ----------------------------------------------------------------------------
# pallas_call wrappers (XLA glue: reshapes / strided phase subsampling only)
# ----------------------------------------------------------------------------
def _row_spec(shape, tm):
    _, _, c = shape
    return pl.BlockSpec((1, tm, c), lambda n, m: (n, m, 0))


def _const_spec(shape, n_axes):
    blk = tuple(shape)
    zeros = (0,) * len(shape)
    if n_axes == 1:
        return pl.BlockSpec(blk, lambda n: zeros)
    return pl.BlockSpec(blk, lambda n, m: zeros)


def _phase2(x, k):
    return x[:, k::2, k::2, :]


def _flat_rows(x):
    n, h, w, c = x.shape
    return x.reshape(n, h * w, c)


def _hcat(*blocks):
    return jnp.concatenate(blocks, axis=1).astype(WGT_DTYPE)


def _zcols(rows, cols):
    return jnp.zeros((rows, cols), WGT_DTYPE)


def _cell_call(kernel, acts, consts, out_cols):
    """Launch one fused per-cell kernel.  All (N, M, C_i) activation slabs
    share the same row count M; weights/biases stay resident across the grid."""
    N, M, _ = acts[0].shape
    tm = min(M, MAX_ROW_TILE)
    assert M % tm == 0
    return pl.pallas_call(
        kernel,
        out_shape=jax.ShapeDtypeStruct((N, M, out_cols), ACT_DTYPE),
        grid=(N, M // tm),
        in_specs=[_row_spec(a.shape, tm) for a in acts]
                 + [_const_spec(c.shape, 2) for c in consts],
        out_specs=_row_spec((N, M, out_cols), tm),
        compiler_params=_CELL_CPARAMS,
    )(*acts, *consts)


def run_stem(x_nhwc, p):
    N, H, W, _ = x_nhwc.shape
    Cout = p["w"].shape[-1]
    xp = jnp.pad(x_nhwc, ((0, 0), (1, 1), (1, 1), (0, 0))).astype(ACT_DTYPE)
    out = pl.pallas_call(
        functools.partial(_stem_kernel, H=H, W=W),
        out_shape=jax.ShapeDtypeStruct((N, H * W, Cout), ACT_DTYPE),
        grid=(N,),
        in_specs=[pl.BlockSpec((1,) + xp.shape[1:], lambda n: (n, 0, 0, 0)),
                  _const_spec(p["w"].shape, 1),
                  _const_spec(p["b"].shape, 1)],
        out_specs=pl.BlockSpec((1, H * W, Cout), lambda n: (n, 0, 0)),
        compiler_params=_STEM_CPARAMS,
    )(xp, p["w"], p["b"])
    return out.reshape(N, H, W, Cout)


def run_normal_cell(cell, s0, s1):
    # normal cell (skip_connect genotype):
    #   s0p = preproc0(s0) ; s1p = preproc1(s1)
    #   n2 = s0p + s1p ; n3 = s1p + n2 ; out = concat([n2, n3], channels)
    # Every DAG edge is an Identity, so the whole cell is exactly one packed
    # matmul per input (the identity sums become duplicated/scaled columns).
    N, H, W, _ = s1.shape
    w1, b1 = cell["pre1"]["w"], cell["pre1"]["b"]
    C = w1.shape[1]
    h = C // 2
    if cell["reduction_p"]:
        # preproc0 is a FactorizedReduce (s0 has 2x the spatial size of s1).
        w01, w02, b0 = cell["pre0"]["w1"], cell["pre0"]["w2"], cell["pre0"]["b"]
        k0 = w01.shape[0]
        acts = [_phase2(s0, 0), _phase2(s0, 1), s1]
        packs = [_hcat(w01, _zcols(k0, h), w01, _zcols(k0, h)),
                 _hcat(_zcols(k0, h), w02, _zcols(k0, h), w02),
                 _hcat(w1, w1 + w1)]
    else:
        w0, b0 = cell["pre0"]["w"], cell["pre0"]["b"]
        acts = [s0, s1]
        packs = [_hcat(w0, w0), _hcat(w1, w1 + w1)]
    bias = jnp.concatenate([b0 + b1, b0 + 2.0 * b1], axis=1)
    acts = [_flat_rows(a) for a in acts]
    kernel = functools.partial(_packed_cell_kernel, n_inputs=len(acts))
    out = _cell_call(kernel, acts, packs + [bias], 2 * C)
    return out.reshape(N, H, W, 2 * C)


def run_reduce_cell(cell, s0, s1):
    # reduction cell (skip_connect genotype):
    #   n2 = FRa(s0p) + FRb(s1p) ; n3 = FRc(s1p) + n2 ; out = concat([n2, n3])
    # Every consumer of s0p/s1p is a stride-2 FactorizedReduce, so the
    # preprocessing convs are evaluated only at the (even,even)/(odd,odd)
    # spatial phases; the DAG + concat are packed into column-placed weights.
    # (Even H/W assumed, as in the PyTorch FactorizedReduce.)
    N, H1, W1, _ = s1.shape
    Ho, Wo = H1 // 2, W1 // 2
    w1, b1 = cell["pre1"]["w"], cell["pre1"]["b"]
    C = w1.shape[1]
    h = C // 2
    frA, frB, frC = cell["frA"], cell["frB"], cell["frC"]
    z = _zcols(C, h)
    f32 = jnp.float32
    wbc1 = (frB["w1"].astype(f32) + frC["w1"].astype(f32)).astype(WGT_DTYPE)
    wbc2 = (frB["w2"].astype(f32) + frC["w2"].astype(f32)).astype(WGT_DTYPE)
    aee = _hcat(frA["w1"], z, frA["w1"], z)     # s0p (even,even) contributions
    aoo = _hcat(z, frA["w2"], z, frA["w2"])     # s0p (odd,odd)
    bee = _hcat(frB["w1"], z, wbc1, z)          # s1p (even,even): FRb and FRc
    boo = _hcat(z, frB["w2"], z, wbc2)          # s1p (odd,odd)
    bAB = frA["b"] + frB["b"]
    bias = jnp.concatenate([bAB, bAB + frC["b"]], axis=1)

    s1_acts = [_flat_rows(_phase2(s1, 0)), _flat_rows(_phase2(s1, 1))]
    if cell["reduction_p"]:
        # preproc0 is a FactorizedReduce followed by stride-2 DAG edges: only
        # the four diagonal stride-4 phases of s0 are ever read.
        acts = [_flat_rows(s0[:, k::4, k::4, :]) for k in range(4)] + s1_acts
        pre = cell["pre0"]
        consts = [pre["w1"], pre["w2"], pre["b"], w1, b1]
    else:
        acts = [_flat_rows(_phase2(s0, 0)), _flat_rows(_phase2(s0, 1))] + s1_acts
        consts = [cell["pre0"]["w"], cell["pre0"]["b"], w1, b1]
    consts = consts + [aee, aoo, bee, boo, bias]
    kernel = functools.partial(_reduce_cell_kernel,
                               pre0_is_fr=cell["reduction_p"])
    out = _cell_call(kernel, acts, consts, 2 * C)
    return out.reshape(N, Ho, Wo, 2 * C)


def gap_linear(x_nhwc, w, b):
    N, H, W, C = x_nhwc.shape
    x3 = x_nhwc.reshape(N, H * W, C)
    ncls = w.shape[1]
    return pl.pallas_call(
        _gap_linear_kernel,
        out_shape=jax.ShapeDtypeStruct((N, ncls), jnp.float32),
        grid=(1,),
        in_specs=[pl.BlockSpec((N, H * W, C), lambda i: (0, 0, 0)),
                  pl.BlockSpec((C, ncls), lambda i: (0, 0)),
                  pl.BlockSpec((1, ncls), lambda i: (0, 0))],
        out_specs=pl.BlockSpec((N, ncls), lambda i: (0, 0)),
    )(x3, w, b)


# ----------------------------------------------------------------------------
# Model: genotype, deterministic parameter construction (BN folded), forward
# ----------------------------------------------------------------------------
GENOTYPE = {
    "normal": [[("skip_connect", 0), ("skip_connect", 1)],
               [("skip_connect", 1), ("skip_connect", 2)]],
    "normal_concat": [2, 3],
    "reduce": [[("skip_connect", 0), ("skip_connect", 1)],
               [("skip_connect", 1), ("skip_connect", 2)]],
    "reduce_concat": [2, 3],
}


class KeyGen:
    def __init__(self, key):
        self.key = key

    def __call__(self):
        self.key, sub = jax.random.split(self.key)
        return sub


def _bn_fold_consts(kg, c, eps=1e-5):
    gamma = 1.0 + 0.1 * jax.random.normal(kg(), (c,), jnp.float32)
    beta = 0.1 * jax.random.normal(kg(), (c,), jnp.float32)
    mean = 0.1 * jax.random.normal(kg(), (c,), jnp.float32)
    var = 1.0 + 0.1 * jnp.abs(jax.random.normal(kg(), (c,), jnp.float32))
    scale = gamma / jnp.sqrt(var + eps)
    bias = (beta - mean * scale).reshape(1, c).astype(jnp.float32)
    return scale, bias


def _make_stdconv(kg, cin, cout):
    # StdConv: ReLU -> Conv2d(cin, cout, 1, bias=False) -> BN (scale folded).
    w = 0.1 * jax.random.normal(kg(), (cin, cout), jnp.float32)
    scale, bias = _bn_fold_consts(kg, cout)
    return {"w": (w * scale[None, :]).astype(WGT_DTYPE), "b": bias}


def _make_conv3x3(kg, cin, cout):
    # Stem: Conv2d(cin, cout, 3, 1, 1, bias=False) -> BN.  Weight layout is
    # (tap=kh*3+kw, cin, cout); real PyTorch (cout,cin,kh,kw) weights would
    # need to be permuted accordingly.
    w = 0.1 * jax.random.normal(kg(), (9, cin, cout), jnp.float32)
    scale, bias = _bn_fold_consts(kg, cout)
    return {"w": (w * scale[None, None, :]).astype(WGT_DTYPE), "b": bias}


def _make_fr(kg, cin, cout):
    # FactorizedReduce: ReLU -> [1x1/s2 conv ; 1x1/s2 conv on x[:,:,1:,1:]]
    # -> channel concat -> BN (scale folded per half).
    half = cout // 2
    w1 = 0.1 * jax.random.normal(kg(), (cin, half), jnp.float32)
    w2 = 0.1 * jax.random.normal(kg(), (cin, half), jnp.float32)
    scale, bias = _bn_fold_consts(kg, cout)
    return {"w1": (w1 * scale[None, :half]).astype(WGT_DTYPE),
            "w2": (w2 * scale[None, half:]).astype(WGT_DTYPE),
            "b": bias}


def init_augment_cnn(key, C_in, C, n_classes, n_layers, stem_multiplier=3):
    kg = KeyGen(key)
    params = {}
    C_cur = stem_multiplier * C
    params["stem"] = _make_conv3x3(kg, C_in, C_cur)   # Conv2d(C_in,C_cur,3,1,1)+BN

    C_pp, C_p, C_cur = C_cur, C_cur, C
    cells = []
    reduction_p = False
    skip_gene = [[("skip_connect", 0), ("skip_connect", 1)],
                 [("skip_connect", 1), ("skip_connect", 2)]]
    for i in range(n_layers):
        reduction = i in (n_layers // 3, 2 * n_layers // 3)
        if reduction:
            C_cur *= 2
        cell = {"reduction": reduction, "reduction_p": reduction_p}
        if reduction_p:
            cell["pre0"] = _make_fr(kg, C_pp, C_cur)        # FactorizedReduce
        else:
            cell["pre0"] = _make_stdconv(kg, C_pp, C_cur)   # StdConv 1x1
        cell["pre1"] = _make_stdconv(kg, C_p, C_cur)
        gene = GENOTYPE["reduce"] if reduction else GENOTYPE["normal"]
        concat = GENOTYPE["reduce_concat"] if reduction else GENOTYPE["normal_concat"]
        # The fused per-cell kernels are specialized to this genotype.
        assert gene == skip_gene and concat == [2, 3]
        if reduction:
            cell["frA"] = _make_fr(kg, C_cur, C_cur)  # node2: skip(s0p), stride 2
            cell["frB"] = _make_fr(kg, C_cur, C_cur)  # node2: skip(s1p), stride 2
            cell["frC"] = _make_fr(kg, C_cur, C_cur)  # node3: skip(s1p), stride 2
        cells.append(cell)
        reduction_p = reduction
        C_pp, C_p = C_p, C_cur * len(concat)

    params["cells"] = cells
    params["linear_w"] = (0.1 * jax.random.normal(
        kg(), (C_p, n_classes), jnp.float32)).astype(WGT_DTYPE)
    params["linear_b"] = 0.1 * jax.random.normal(kg(), (1, n_classes), jnp.float32)
    return params


def augment_cnn_forward(params, x_nchw):
    # input NCHW (PyTorch convention) -> NHWC internally.
    x = jnp.transpose(x_nchw, (0, 2, 3, 1)).astype(jnp.float32)
    s0 = s1 = run_stem(x, params["stem"])
    for cell in params["cells"]:
        s0, s1 = s1, (run_reduce_cell(cell, s0, s1) if cell["reduction"]
                      else run_normal_cell(cell, s0, s1))
    logits = gap_linear(s1, params["linear_w"], params["linear_b"])
    return logits, None  # aux_logits is None (auxiliary=False / eval mode)


# ----------------------------------------------------------------------------
if __name__ == "__main__":
    key = jax.random.PRNGKey(0)
    pkey, xkey = jax.random.split(key)

    input_size, C_in, C, n_classes, n_layers = 16, 4, 4, 10, 3
    params = init_augment_cnn(pkey, C_in, C, n_classes, n_layers)

    x = jax.random.normal(xkey, (2, C_in, input_size, input_size),
                          dtype=jnp.float32)

    fwd = jax.jit(lambda inp: augment_cnn_forward(params, inp))
    logits, aux_logits = fwd(x)
    logits = jax.block_until_ready(logits)

    assert logits.shape == (2, n_classes), logits.shape
    assert aux_logits is None
    assert bool(jnp.all(jnp.isfinite(logits)))
    print("KERNEL_OK")
</pallas_src>

<mosaic_0001>
module attributes {stable_mosaic.version = 11 : i64} {
  func.func @_stem_kernel(%arg0: i32, %arg1: memref<1x18x18x4xbf16, #tpu.memory_space<vmem>>, %arg2: memref<9x4x12xbf16, #tpu.memory_space<vmem>>, %arg3: memref<1x12xf32, #tpu.memory_space<vmem>>, %arg4: memref<1x256x12xbf16, #tpu.memory_space<vmem>>) attributes {dimension_semantics = [#tpu.dimension_semantics<parallel>], iteration_bounds = array<i64: 2>, scalar_prefetch = 0 : i64, scratch_operands = 0 : i64, tpu.core_type = #tpu.core_type<tc>, window_params = [{transform_indices = @transform_0, window_bounds = array<i64: 1, 18, 18, 4>}, {pipeline_mode = #tpu.pipeline_mode<synchronous>, transform_indices = @transform_1, window_bounds = array<i64: 9, 4, 12>}, {pipeline_mode = #tpu.pipeline_mode<synchronous>, transform_indices = @transform_2, window_bounds = array<i64: 1, 12>}, {transform_indices = @transform_3, window_bounds = array<i64: 1, 256, 12>}]} {
    %c0 = arith.constant 0 : index
    %c0_0 = arith.constant 0 : index
    %c0_1 = arith.constant 0 : index
    %c0_2 = arith.constant 0 : index
    %0 = vector.load %arg1[%c0, %c0_0, %c0_1, %c0_2] : memref<1x18x18x4xbf16, #tpu.memory_space<vmem>>, vector<1x18x18x4xbf16>
    %1 = vector.shape_cast %0 : vector<1x18x18x4xbf16> to vector<18x18x4xbf16>
    %c0_3 = arith.constant 0 : index
    %c0_4 = arith.constant 0 : index
    %2 = vector.load %arg3[%c0_3, %c0_4] : memref<1x12xf32, #tpu.memory_space<vmem>>, vector<1x12xf32>
    %3 = vector.extract_strided_slice %1 {offsets = [0, 0, 0], sizes = [16, 16, 4], strides = [1, 1, 1]} : vector<18x18x4xbf16> to vector<16x16x4xbf16>
    %4 = vector.shape_cast %3 : vector<16x16x4xbf16> to vector<256x4xbf16>
    %c0_5 = arith.constant 0 : index
    %c0_6 = arith.constant 0 : index
    %c0_7 = arith.constant 0 : index
    %5 = vector.load %arg2[%c0_5, %c0_6, %c0_7] : memref<9x4x12xbf16, #tpu.memory_space<vmem>>, vector<1x4x12xbf16>
    %6 = vector.shape_cast %5 : vector<1x4x12xbf16> to vector<4x12xbf16>
    %cst = arith.constant dense<0.000000e+00> : vector<256x12xf32>
    %7 = tpu.matmul %4, %6, %cst {dimension_numbers = #tpu.dot_dimension_numbers<[1], [0], [0], [1], [0, 0, 1, 1], [], []>} : vector<256x4xbf16>, vector<4x12xbf16>, vector<256x12xf32> -> vector<256x12xf32>
    %8 = vector.broadcast %2 : vector<1x12xf32> to vector<256x12xf32>
    %9 = arith.addf %8, %7 : vector<256x12xf32>
    %10 = vector.extract_strided_slice %1 {offsets = [0, 1, 0], sizes = [16, 16, 4], strides = [1, 1, 1]} : vector<18x18x4xbf16> to vector<16x16x4xbf16>
    %11 = vector.shape_cast %10 : vector<16x16x4xbf16> to vector<256x4xbf16>
    %c1 = arith.constant 1 : index
    %c0_8 = arith.constant 0 : index
    %c0_9 = arith.constant 0 : index
    %12 = vector.load %arg2[%c1, %c0_8, %c0_9] : memref<9x4x12xbf16, #tpu.memory_space<vmem>>, vector<1x4x12xbf16>
    %13 = vector.shape_cast %12 : vector<1x4x12xbf16> to vector<4x12xbf16>
    %cst_10 = arith.constant dense<0.000000e+00> : vector<256x12xf32>
    %14 = tpu.matmul %11, %13, %cst_10 {dimension_numbers = #tpu.dot_dimension_numbers<[1], [0], [0], [1], [0, 0, 1, 1], [], []>} : vector<256x4xbf16>, vector<4x12xbf16>, vector<256x12xf32> -> vector<256x12xf32>
    %15 = arith.addf %9, %14 : vector<256x12xf32>
    %16 = vector.extract_strided_slice %1 {offsets = [0, 2, 0], sizes = [16, 16, 4], strides = [1, 1, 1]} : vector<18x18x4xbf16> to vector<16x16x4xbf16>
    %17 = vector.shape_cast %16 : vector<16x16x4xbf16> to vector<256x4xbf16>
    %c2 = arith.constant 2 : index
    %c0_11 = arith.constant 0 : index
    %c0_12 = arith.constant 0 : index
    %18 = vector.load %arg2[%c2, %c0_11, %c0_12] : memref<9x4x12xbf16, #tpu.memory_space<vmem>>, vector<1x4x12xbf16>
    %19 = vector.shape_cast %18 : vector<1x4x12xbf16> to vector<4x12xbf16>
    %cst_13 = arith.constant dense<0.000000e+00> : vector<256x12xf32>
    %20 = tpu.matmul %17, %19, %cst_13 {dimension_numbers = #tpu.dot_dimension_numbers<[1], [0], [0], [1], [0, 0, 1, 1], [], []>} : vector<256x4xbf16>, vector<4x12xbf16>, vector<256x12xf32> -> vector<256x12xf32>
    %21 = arith.addf %15, %20 : vector<256x12xf32>
    %22 = vector.extract_strided_slice %1 {offsets = [1, 0, 0], sizes = [16, 16, 4], strides = [1, 1, 1]} : vector<18x18x4xbf16> to vector<16x16x4xbf16>
    %23 = vector.shape_cast %22 : vector<16x16x4xbf16> to vector<256x4xbf16>
    %c3 = arith.constant 3 : index
    %c0_14 = arith.constant 0 : index
    %c0_15 = arith.constant 0 : index
    %24 = vector.load %arg2[%c3, %c0_14, %c0_15] : memref<9x4x12xbf16, #tpu.memory_space<vmem>>, vector<1x4x12xbf16>
    %25 = vector.shape_cast %24 : vector<1x4x12xbf16> to vector<4x12xbf16>
    %cst_16 = arith.constant dense<0.000000e+00> : vector<256x12xf32>
    %26 = tpu.matmul %23, %25, %cst_16 {dimension_numbers = #tpu.dot_dimension_numbers<[1], [0], [0], [1], [0, 0, 1, 1], [], []>} : vector<256x4xbf16>, vector<4x12xbf16>, vector<256x12xf32> -> vector<256x12xf32>
    %27 = arith.addf %21, %26 : vector<256x12xf32>
    %28 = vector.extract_strided_slice %1 {offsets = [1, 1, 0], sizes = [16, 16, 4], strides = [1, 1, 1]} : vector<18x18x4xbf16> to vector<16x16x4xbf16>
    %29 = vector.shape_cast %28 : vector<16x16x4xbf16> to vector<256x4xbf16>
    %c4 = arith.constant 4 : index
    %c0_17 = arith.constant 0 : index
    %c0_18 = arith.constant 0 : index
    %30 = vector.load %arg2[%c4, %c0_17, %c0_18] : memref<9x4x12xbf16, #tpu.memory_space<vmem>>, vector<1x4x12xbf16>
    %31 = vector.shape_cast %30 : vector<1x4x12xbf16> to vector<4x12xbf16>
    %cst_19 = arith.constant dense<0.000000e+00> : vector<256x12xf32>
    %32 = tpu.matmul %29, %31, %cst_19 {dimension_numbers = #tpu.dot_dimension_numbers<[1], [0], [0], [1], [0, 0, 1, 1], [], []>} : vector<256x4xbf16>, vector<4x12xbf16>, vector<256x12xf32> -> vector<256x12xf32>
    %33 = arith.addf %27, %32 : vector<256x12xf32>
    %34 = vector.extract_strided_slice %1 {offsets = [1, 2, 0], sizes = [16, 16, 4], strides = [1, 1, 1]} : vector<18x18x4xbf16> to vector<16x16x4xbf16>
    %35 = vector.shape_cast %34 : vector<16x16x4xbf16> to vector<256x4xbf16>
    %c5 = arith.constant 5 : index
    %c0_20 = arith.constant 0 : index
    %c0_21 = arith.constant 0 : index
    %36 = vector.load %arg2[%c5, %c0_20, %c0_21] : memref<9x4x12xbf16, #tpu.memory_space<vmem>>, vector<1x4x12xbf16>
    %37 = vector.shape_cast %36 : vector<1x4x12xbf16> to vector<4x12xbf16>
    %cst_22 = arith.constant dense<0.000000e+00> : vector<256x12xf32>
    %38 = tpu.matmul %35, %37, %cst_22 {dimension_numbers = #tpu.dot_dimension_numbers<[1], [0], [0], [1], [0, 0, 1, 1], [], []>} : vector<256x4xbf16>, vector<4x12xbf16>, vector<256x12xf32> -> vector<256x12xf32>
    %39 = arith.addf %33, %38 : vector<256x12xf32>
    %40 = vector.extract_strided_slice %1 {offsets = [2, 0, 0], sizes = [16, 16, 4], strides = [1, 1, 1]} : vector<18x18x4xbf16> to vector<16x16x4xbf16>
    %41 = vector.shape_cast %40 : vector<16x16x4xbf16> to vector<256x4xbf16>
    %c6 = arith.constant 6 : index
    %c0_23 = arith.constant 0 : index
    %c0_24 = arith.constant 0 : index
    %42 = vector.load %arg2[%c6, %c0_23, %c0_24] : memref<9x4x12xbf16, #tpu.memory_space<vmem>>, vector<1x4x12xbf16>
    %43 = vector.shape_cast %42 : vector<1x4x12xbf16> to vector<4x12xbf16>
    %cst_25 = arith.constant dense<0.000000e+00> : vector<256x12xf32>
    %44 = tpu.matmul %41, %43, %cst_25 {dimension_numbers = #tpu.dot_dimension_numbers<[1], [0], [0], [1], [0, 0, 1, 1], [], []>} : vector<256x4xbf16>, vector<4x12xbf16>, vector<256x12xf32> -> vector<256x12xf32>
    %45 = arith.addf %39, %44 : vector<256x12xf32>
    %46 = vector.extract_strided_slice %1 {offsets = [2, 1, 0], sizes = [16, 16, 4], strides = [1, 1, 1]} : vector<18x18x4xbf16> to vector<16x16x4xbf16>
    %47 = vector.shape_cast %46 : vector<16x16x4xbf16> to vector<256x4xbf16>
    %c7 = arith.constant 7 : index
    %c0_26 = arith.constant 0 : index
    %c0_27 = arith.constant 0 : index
    %48 = vector.load %arg2[%c7, %c0_26, %c0_27] : memref<9x4x12xbf16, #tpu.memory_space<vmem>>, vector<1x4x12xbf16>
    %49 = vector.shape_cast %48 : vector<1x4x12xbf16> to vector<4x12xbf16>
    %cst_28 = arith.constant dense<0.000000e+00> : vector<256x12xf32>
    %50 = tpu.matmul %47, %49, %cst_28 {dimension_numbers = #tpu.dot_dimension_numbers<[1], [0], [0], [1], [0, 0, 1, 1], [], []>} : vector<256x4xbf16>, vector<4x12xbf16>, vector<256x12xf32> -> vector<256x12xf32>
    %51 = arith.addf %45, %50 : vector<256x12xf32>
    %52 = vector.extract_strided_slice %1 {offsets = [2, 2, 0], sizes = [16, 16, 4], strides = [1, 1, 1]} : vector<18x18x4xbf16> to vector<16x16x4xbf16>
    %53 = vector.shape_cast %52 : vector<16x16x4xbf16> to vector<256x4xbf16>
    %c8 = arith.constant 8 : index
    %c0_29 = arith.constant 0 : index
    %c0_30 = arith.constant 0 : index
    %54 = vector.load %arg2[%c8, %c0_29, %c0_30] : memref<9x4x12xbf16, #tpu.memory_space<vmem>>, vector<1x4x12xbf16>
    %55 = vector.shape_cast %54 : vector<1x4x12xbf16> to vector<4x12xbf16>
    %cst_31 = arith.constant dense<0.000000e+00> : vector<256x12xf32>
    %56 = tpu.matmul %53, %55, %cst_31 {dimension_numbers = #tpu.dot_dimension_numbers<[1], [0], [0], [1], [0, 0, 1, 1], [], []>} : vector<256x4xbf16>, vector<4x12xbf16>, vector<256x12xf32> -> vector<256x12xf32>
    %57 = arith.addf %51, %56 : vector<256x12xf32>
    %58 = arith.truncf %57 : vector<256x12xf32> to vector<256x12xbf16>
    %c0_32 = arith.constant 0 : index
    %c0_33 = arith.constant 0 : index
    %c0_34 = arith.constant 0 : index
    %59 = vector.load %arg4[%c0_32, %c0_33, %c0_34] : memref<1x256x12xbf16, #tpu.memory_space<vmem>>, vector<1x256x12xbf16>
    %60 = vector.shape_cast %59 : vector<1x256x12xbf16> to vector<256x12xbf16>
    %61 = vector.shape_cast %58 : vector<256x12xbf16> to vector<1x256x12xbf16>
    tpu.vector_store %arg4[%c0_32, %c0_33, %c0_34], %61 {strides = array<i32>} : memref<1x256x12xbf16, #tpu.memory_space<vmem>>, vector<1x256x12xbf16>,
    return
  }
  func.func @transform_0(%arg0: i32) -> (i32, i32, i32, i32) {
    %c0_i32 = arith.constant 0 : i32
    %c0_i32_0 = arith.constant 0 : i32
    %c0_i32_1 = arith.constant 0 : i32
    %c0_i32_2 = arith.constant 0 : i32
    return %arg0, %c0_i32, %c0_i32_0, %c0_i32_1 : i32, i32, i32, i32
  }
  func.func @transform_1(%arg0: i32) -> (i32, i32, i32) {
    %c0_i32 = arith.constant 0 : i32
    %c0_i32_0 = arith.constant 0 : i32
    %c0_i32_1 = arith.constant 0 : i32
    %c0_i32_2 = arith.constant 0 : i32
    return %c0_i32, %c0_i32_0, %c0_i32_1 : i32, i32, i32
  }
  func.func @transform_2(%arg0: i32) -> (i32, i32) {
    %c0_i32 = arith.constant 0 : i32
    %c0_i32_0 = arith.constant 0 : i32
    %c0_i32_1 = arith.constant 0 : i32
    return %c0_i32, %c0_i32_0 : i32, i32
  }
  func.func @transform_3(%arg0: i32) -> (i32, i32, i32) {
    %c0_i32 = arith.constant 0 : i32
    %c0_i32_0 = arith.constant 0 : i32
    %c0_i32_1 = arith.constant 0 : i32
    return %arg0, %c0_i32, %c0_i32_0 : i32, i32, i32
  }
}

module attributes {stable_mosaic.version = 11 : i64} {
  func.func @_packed_cell_kernel(%arg0: i32, %arg1: i32, %arg2: memref<1x256x12xbf16, #tpu.memory_space<vmem>>, %arg3: memref<1x256x12xbf16, #tpu.memory_space<vmem>>, %arg4: memref<12x8xbf16, #tpu.memory_space<vmem>>, %arg5: memref<12x8xbf16, #tpu.memory_space<vmem>>, %arg6: memref<1x8xf32, #tpu.memory_space<vmem>>, %arg7: memref<1x256x8xbf16, #tpu.memory_space<vmem>>) attributes {dimension_semantics = [#tpu.dimension_semantics<parallel>, #tpu.dimension_semantics<parallel>], iteration_bounds = array<i64: 2, 1>, scalar_prefetch = 0 : i64, scratch_operands = 0 : i64, tpu.core_type = #tpu.core_type<tc>, window_params = [{transform_indices = @transform_0, window_bounds = array<i64: 1, 256, 12>}, {transform_indices = @transform_1, window_bounds = array<i64: 1, 256, 12>}, {pipeline_mode = #tpu.pipeline_mode<synchronous>, transform_indices = @transform_2, window_bounds = array<i64: 12, 8>}, {pipeline_mode = #tpu.pipeline_mode<synchronous>, transform_indices = @transform_3, window_bounds = array<i64: 12, 8>}, {pipeline_mode = #tpu.pipeline_mode<synchronous>, transform_indices = @transform_4, window_bounds = array<i64: 1, 8>}, {transform_indices = @transform_5, window_bounds = array<i64: 1, 256, 8>}]} {
    %c0 = arith.constant 0 : index
    %c0_0 = arith.constant 0 : index
    %0 = vector.load %arg6[%c0, %c0_0] : memref<1x8xf32, #tpu.memory_space<vmem>>, vector<1x8xf32>
    %c0_1 = arith.constant 0 : index
    %c0_2 = arith.constant 0 : index
    %c0_3 = arith.constant 0 : index
    %1 = vector.load %arg2[%c0_1, %c0_2, %c0_3] : memref<1x256x12xbf16, #tpu.memory_space<vmem>>, vector<1x256x12xbf16>
    %2 = vector.shape_cast %1 : vector<1x256x12xbf16> to vector<256x12xbf16>
    %cst = arith.constant 0.000000e+00 : bf16
    %3 = vector.broadcast %cst : bf16 to vector<256x12xbf16>
    %4 = arith.maximumf %2, %3 : vector<256x12xbf16>
    %c0_4 = arith.constant 0 : index
    %c0_5 = arith.constant 0 : index
    %5 = vector.load %arg4[%c0_4, %c0_5] : memref<12x8xbf16, #tpu.memory_space<vmem>>, vector<12x8xbf16>
    %cst_6 = arith.constant dense<0.000000e+00> : vector<256x8xf32>
    %6 = tpu.matmul %4, %5, %cst_6 {dimension_numbers = #tpu.dot_dimension_numbers<[1], [0], [0], [1], [0, 0, 1, 1], [], []>} : vector<256x12xbf16>, vector<12x8xbf16>, vector<256x8xf32> -> vector<256x8xf32>
    %7 = vector.broadcast %0 : vector<1x8xf32> to vector<256x8xf32>
    %8 = arith.addf %7, %6 : vector<256x8xf32>
    %c0_7 = arith.constant 0 : index
    %c0_8 = arith.constant 0 : index
    %c0_9 = arith.constant 0 : index
    %9 = vector.load %arg3[%c0_7, %c0_8, %c0_9] : memref<1x256x12xbf16, #tpu.memory_space<vmem>>, vector<1x256x12xbf16>
    %10 = vector.shape_cast %9 : vector<1x256x12xbf16> to vector<256x12xbf16>
    %cst_10 = arith.constant 0.000000e+00 : bf16
    %11 = vector.broadcast %cst_10 : bf16 to vector<256x12xbf16>
    %12 = arith.maximumf %10, %11 : vector<256x12xbf16>
    %c0_11 = arith.constant 0 : index
    %c0_12 = arith.constant 0 : index
    %13 = vector.load %arg5[%c0_11, %c0_12] : memref<12x8xbf16, #tpu.memory_space<vmem>>, vector<12x8xbf16>
    %cst_13 = arith.constant dense<0.000000e+00> : vector<256x8xf32>
    %14 = tpu.matmul %12, %13, %cst_13 {dimension_numbers = #tpu.dot_dimension_numbers<[1], [0], [0], [1], [0, 0, 1, 1], [], []>} : vector<256x12xbf16>, vector<12x8xbf16>, vector<256x8xf32> -> vector<256x8xf32>
    %15 = arith.addf %8, %14 : vector<256x8xf32>
    %16 = arith.truncf %15 : vector<256x8xf32> to vector<256x8xbf16>
    %c0_14 = arith.constant 0 : index
    %c0_15 = arith.constant 0 : index
    %c0_16 = arith.constant 0 : index
    %17 = vector.load %arg7[%c0_14, %c0_15, %c0_16] : memref<1x256x8xbf16, #tpu.memory_space<vmem>>, vector<1x256x8xbf16>
    %18 = vector.shape_cast %17 : vector<1x256x8xbf16> to vector<256x8xbf16>
    %19 = vector.shape_cast %16 : vector<256x8xbf16> to vector<1x256x8xbf16>
    tpu.vector_store %arg7[%c0_14, %c0_15, %c0_16], %19 {strides = array<i32>} : memref<1x256x8xbf16, #tpu.memory_space<vmem>>, vector<1x256x8xbf16>,
    return
  }
  func.func @transform_0(%arg0: i32, %arg1: i32) -> (i32, i32, i32) {
    %c0_i32 = arith.constant 0 : i32
    %c0_i32_0 = arith.constant 0 : i32
    return %arg0, %arg1, %c0_i32 : i32, i32, i32
  }
  func.func @transform_1(%arg0: i32, %arg1: i32) -> (i32, i32, i32) {
    %c0_i32 = arith.constant 0 : i32
    %c0_i32_0 = arith.constant 0 : i32
    return %arg0, %arg1, %c0_i32 : i32, i32, i32
  }
  func.func @transform_2(%arg0: i32, %arg1: i32) -> (i32, i32) {
    %c0_i32 = arith.constant 0 : i32
    %c0_i32_0 = arith.constant 0 : i32
    %c0_i32_1 = arith.constant 0 : i32
    return %c0_i32, %c0_i32_0 : i32, i32
  }
  func.func @transform_3(%arg0: i32, %arg1: i32) -> (i32, i32) {
    %c0_i32 = arith.constant 0 : i32
    %c0_i32_0 = arith.constant 0 : i32
    %c0_i32_1 = arith.constant 0 : i32
    return %c0_i32, %c0_i32_0 : i32, i32
  }
  func.func @transform_4(%arg0: i32, %arg1: i32) -> (i32, i32) {
    %c0_i32 = arith.constant 0 : i32
    %c0_i32_0 = arith.constant 0 : i32
    %c0_i32_1 = arith.constant 0 : i32
    return %c0_i32, %c0_i32_0 : i32, i32
  }
  func.func @transform_5(%arg0: i32, %arg1: i32) -> (i32, i32, i32) {
    %c0_i32 = arith.constant 0 : i32
    %c0_i32_0 = arith.constant 0 : i32
    return %arg0, %arg1, %c0_i32 : i32, i32, i32
  }
}

module attributes {stable_mosaic.version = 11 : i64} {
  func.func @_reduce_cell_kernel(%arg0: i32, %arg1: i32, %arg2: memref<1x64x12xbf16, #tpu.memory_space<vmem>>, %arg3: memref<1x64x12xbf16, #tpu.memory_space<vmem>>, %arg4: memref<1x64x8xbf16, #tpu.memory_space<vmem>>, %arg5: memref<1x64x8xbf16, #tpu.memory_space<vmem>>, %arg6: memref<12x8xbf16, #tpu.memory_space<vmem>>, %arg7: memref<1x8xf32, #tpu.memory_space<vmem>>, %arg8: memref<8x8xbf16, #tpu.memory_space<vmem>>, %arg9: memref<1x8xf32, #tpu.memory_space<vmem>>, %arg10: memref<8x16xbf16, #tpu.memory_space<vmem>>, %arg11: memref<8x16xbf16, #tpu.memory_space<vmem>>, %arg12: memref<8x16xbf16, #tpu.memory_space<vmem>>, %arg13: memref<8x16xbf16, #tpu.memory_space<vmem>>, %arg14: memref<1x16xf32, #tpu.memory_space<vmem>>, %arg15: memref<1x64x16xbf16, #tpu.memory_space<vmem>>) attributes {dimension_semantics = [#tpu.dimension_semantics<parallel>, #tpu.dimension_semantics<parallel>], iteration_bounds = array<i64: 2, 1>, scalar_prefetch = 0 : i64, scratch_operands = 0 : i64, tpu.core_type = #tpu.core_type<tc>, window_params = [{transform_indices = @transform_0, window_bounds = array<i64: 1, 64, 12>}, {transform_indices = @transform_1, window_bounds = array<i64: 1, 64, 12>}, {transform_indices = @transform_2, window_bounds = array<i64: 1, 64, 8>}, {transform_indices = @transform_3, window_bounds = array<i64: 1, 64, 8>}, {pipeline_mode = #tpu.pipeline_mode<synchronous>, transform_indices = @transform_4, window_bounds = array<i64: 12, 8>}, {pipeline_mode = #tpu.pipeline_mode<synchronous>, transform_indices = @transform_5, window_bounds = array<i64: 1, 8>}, {pipeline_mode = #tpu.pipeline_mode<synchronous>, transform_indices = @transform_6, window_bounds = array<i64: 8, 8>}, {pipeline_mode = #tpu.pipeline_mode<synchronous>, transform_indices = @transform_7, window_bounds = array<i64: 1, 8>}, {pipeline_mode = #tpu.pipeline_mode<synchronous>, transform_indices = @transform_8, window_bounds = array<i64: 8, 16>}, {pipeline_mode = #tpu.pipeline_mode<synchronous>, transform_indices = @transform_9, window_bounds = array<i64: 8, 16>}, {pipeline_mode = #tpu.pipeline_mode<synchronous>, transform_indices = @transform_10, window_bounds = array<i64: 8, 16>}, {pipeline_mode = #tpu.pipeline_mode<synchronous>, transform_indices = @transform_11, window_bounds = array<i64: 8, 16>}, {pipeline_mode = #tpu.pipeline_mode<synchronous>, transform_indices = @transform_12, window_bounds = array<i64: 1, 16>}, {transform_indices = @transform_13, window_bounds = array<i64: 1, 64, 16>}]} {
    %c0 = arith.constant 0 : index
    %c0_0 = arith.constant 0 : index
    %c0_1 = arith.constant 0 : index
    %0 = vector.load %arg2[%c0, %c0_0, %c0_1] : memref<1x64x12xbf16, #tpu.memory_space<vmem>>, vector<1x64x12xbf16>
    %1 = vector.shape_cast %0 : vector<1x64x12xbf16> to vector<64x12xbf16>
    %cst = arith.constant 0.000000e+00 : bf16
    %2 = vector.broadcast %cst : bf16 to vector<64x12xbf16>
    %3 = arith.maximumf %1, %2 : vector<64x12xbf16>
    %c0_2 = arith.constant 0 : index
    %c0_3 = arith.constant 0 : index
    %4 = vector.load %arg6[%c0_2, %c0_3] : memref<12x8xbf16, #tpu.memory_space<vmem>>, vector<12x8xbf16>
    %cst_4 = arith.constant dense<0.000000e+00> : vector<64x8xf32>
    %5 = tpu.matmul %3, %4, %cst_4 {dimension_numbers = #tpu.dot_dimension_numbers<[1], [0], [0], [1], [0, 0, 1, 1], [], []>} : vector<64x12xbf16>, vector<12x8xbf16>, vector<64x8xf32> -> vector<64x8xf32>
    %c0_5 = arith.constant 0 : index
    %c0_6 = arith.constant 0 : index
    %6 = vector.load %arg7[%c0_5, %c0_6] : memref<1x8xf32, #tpu.memory_space<vmem>>, vector<1x8xf32>
    %7 = vector.broadcast %6 : vector<1x8xf32> to vector<64x8xf32>
    %8 = arith.addf %5, %7 : vector<64x8xf32>
    %c0_7 = arith.constant 0 : index
    %c0_8 = arith.constant 0 : index
    %c0_9 = arith.constant 0 : index
    %9 = vector.load %arg3[%c0_7, %c0_8, %c0_9] : memref<1x64x12xbf16, #tpu.memory_space<vmem>>, vector<1x64x12xbf16>
    %10 = vector.shape_cast %9 : vector<1x64x12xbf16> to vector<64x12xbf16>
    %cst_10 = arith.constant 0.000000e+00 : bf16
    %11 = vector.broadcast %cst_10 : bf16 to vector<64x12xbf16>
    %12 = arith.maximumf %10, %11 : vector<64x12xbf16>
    %c0_11 = arith.constant 0 : index
    %c0_12 = arith.constant 0 : index
    %13 = vector.load %arg6[%c0_11, %c0_12] : memref<12x8xbf16, #tpu.memory_space<vmem>>, vector<12x8xbf16>
    %cst_13 = arith.constant dense<0.000000e+00> : vector<64x8xf32>
    %14 = tpu.matmul %12, %13, %cst_13 {dimension_numbers = #tpu.dot_dimension_numbers<[1], [0], [0], [1], [0, 0, 1, 1], [], []>} : vector<64x12xbf16>, vector<12x8xbf16>, vector<64x8xf32> -> vector<64x8xf32>
    %c0_14 = arith.constant 0 : index
    %c0_15 = arith.constant 0 : index
    %15 = vector.load %arg7[%c0_14, %c0_15] : memref<1x8xf32, #tpu.memory_space<vmem>>, vector<1x8xf32>
    %16 = vector.broadcast %15 : vector<1x8xf32> to vector<64x8xf32>
    %17 = arith.addf %14, %16 : vector<64x8xf32>
    %c0_16 = arith.constant 0 : index
    %c0_17 = arith.constant 0 : index
    %c0_18 = arith.constant 0 : index
    %18 = vector.load %arg4[%c0_16, %c0_17, %c0_18] : memref<1x64x8xbf16, #tpu.memory_space<vmem>>, vector<1x64x8xbf16>
    %19 = vector.shape_cast %18 : vector<1x64x8xbf16> to vector<64x8xbf16>
    %cst_19 = arith.constant 0.000000e+00 : bf16
    %20 = vector.broadcast %cst_19 : bf16 to vector<64x8xbf16>
    %21 = arith.maximumf %19, %20 : vector<64x8xbf16>
    %c0_20 = arith.constant 0 : index
    %c0_21 = arith.constant 0 : index
    %22 = vector.load %arg8[%c0_20, %c0_21] : memref<8x8xbf16, #tpu.memory_space<vmem>>, vector<8x8xbf16>
    %cst_22 = arith.constant dense<0.000000e+00> : vector<64x8xf32>
    %23 = tpu.matmul %21, %22, %cst_22 {dimension_numbers = #tpu.dot_dimension_numbers<[1], [0], [0], [1], [0, 0, 1, 1], [], []>} : vector<64x8xbf16>, vector<8x8xbf16>, vector<64x8xf32> -> vector<64x8xf32>
    %c0_23 = arith.constant 0 : index
    %c0_24 = arith.constant 0 : index
    %24 = vector.load %arg9[%c0_23, %c0_24] : memref<1x8xf32, #tpu.memory_space<vmem>>, vector<1x8xf32>
    %25 = vector.broadcast %24 : vector<1x8xf32> to vector<64x8xf32>
    %26 = arith.addf %23, %25 : vector<64x8xf32>
    %c0_25 = arith.constant 0 : index
    %c0_26 = arith.constant 0 : index
    %c0_27 = arith.constant 0 : index
    %27 = vector.load %arg5[%c0_25, %c0_26, %c0_27] : memref<1x64x8xbf16, #tpu.memory_space<vmem>>, vector<1x64x8xbf16>
    %28 = vector.shape_cast %27 : vector<1x64x8xbf16> to vector<64x8xbf16>
    %cst_28 = arith.constant 0.000000e+00 : bf16
    %29 = vector.broadcast %cst_28 : bf16 to vector<64x8xbf16>
    %30 = arith.maximumf %28, %29 : vector<64x8xbf16>
    %c0_29 = arith.constant 0 : index
    %c0_30 = arith.constant 0 : index
    %31 = vector.load %arg8[%c0_29, %c0_30] : memref<8x8xbf16, #tpu.memory_space<vmem>>, vector<8x8xbf16>
    %cst_31 = arith.constant dense<0.000000e+00> : vector<64x8xf32>
    %32 = tpu.matmul %30, %31, %cst_31 {dimension_numbers = #tpu.dot_dimension_numbers<[1], [0], [0], [1], [0, 0, 1, 1], [], []>} : vector<64x8xbf16>, vector<8x8xbf16>, vector<64x8xf32> -> vector<64x8xf32>
    %c0_32 = arith.constant 0 : index
    %c0_33 = arith.constant 0 : index
    %33 = vector.load %arg9[%c0_32, %c0_33] : memref<1x8xf32, #tpu.memory_space<vmem>>, vector<1x8xf32>
    %34 = vector.broadcast %33 : vector<1x8xf32> to vector<64x8xf32>
    %35 = arith.addf %32, %34 : vector<64x8xf32>
    %c0_34 = arith.constant 0 : index
    %c0_35 = arith.constant 0 : index
    %36 = vector.load %arg14[%c0_34, %c0_35] : memref<1x16xf32, #tpu.memory_space<vmem>>, vector<1x16xf32>
    %cst_36 = arith.constant 0.000000e+00 : f32
    %37 = vector.broadcast %cst_36 : f32 to vector<64x8xf32>
    %38 = arith.maximumf %8, %37 : vector<64x8xf32>
    %39 = arith.truncf %38 : vector<64x8xf32> to vector<64x8xbf16>
    %c0_37 = arith.constant 0 : index
    %c0_38 = arith.constant 0 : index
    %40 = vector.load %arg10[%c0_37, %c0_38] : memref<8x16xbf16, #tpu.memory_space<vmem>>, vector<8x16xbf16>
    %cst_39 = arith.constant dense<0.000000e+00> : vector<64x16xf32>
    %41 = tpu.matmul %39, %40, %cst_39 {dimension_numbers = #tpu.dot_dimension_numbers<[1], [0], [0], [1], [0, 0, 1, 1], [], []>} : vector<64x8xbf16>, vector<8x16xbf16>, vector<64x16xf32> -> vector<64x16xf32>
    %42 = vector.broadcast %36 : vector<1x16xf32> to vector<64x16xf32>
    %43 = arith.addf %42, %41 : vector<64x16xf32>
    %cst_40 = arith.constant 0.000000e+00 : f32
    %44 = vector.broadcast %cst_40 : f32 to vector<64x8xf32>
    %45 = arith.maximumf %17, %44 : vector<64x8xf32>
    %46 = arith.truncf %45 : vector<64x8xf32> to vector<64x8xbf16>
    %c0_41 = arith.constant 0 : index
    %c0_42 = arith.constant 0 : index
    %47 = vector.load %arg11[%c0_41, %c0_42] : memref<8x16xbf16, #tpu.memory_space<vmem>>, vector<8x16xbf16>
    %cst_43 = arith.constant dense<0.000000e+00> : vector<64x16xf32>
    %48 = tpu.matmul %46, %47, %cst_43 {dimension_numbers = #tpu.dot_dimension_numbers<[1], [0], [0], [1], [0, 0, 1, 1], [], []>} : vector<64x8xbf16>, vector<8x16xbf16>, vector<64x16xf32> -> vector<64x16xf32>
    %49 = arith.addf %43, %48 : vector<64x16xf32>
    %cst_44 = arith.constant 0.000000e+00 : f32
    %50 = vector.broadcast %cst_44 : f32 to vector<64x8xf32>
    %51 = arith.maximumf %26, %50 : vector<64x8xf32>
    %52 = arith.truncf %51 : vector<64x8xf32> to vector<64x8xbf16>
    %c0_45 = arith.constant 0 : index
    %c0_46 = arith.constant 0 : index
    %53 = vector.load %arg12[%c0_45, %c0_46] : memref<8x16xbf16, #tpu.memory_space<vmem>>, vector<8x16xbf16>
    %cst_47 = arith.constant dense<0.000000e+00> : vector<64x16xf32>
    %54 = tpu.matmul %52, %53, %cst_47 {dimension_numbers = #tpu.dot_dimension_numbers<[1], [0], [0], [1], [0, 0, 1, 1], [], []>} : vector<64x8xbf16>, vector<8x16xbf16>, vector<64x16xf32> -> vector<64x16xf32>
    %55 = arith.addf %49, %54 : vector<64x16xf32>
    %cst_48 = arith.constant 0.000000e+00 : f32
    %56 = vector.broadcast %cst_48 : f32 to vector<64x8xf32>
    %57 = arith.maximumf %35, %56 : vector<64x8xf32>
    %58 = arith.truncf %57 : vector<64x8xf32> to vector<64x8xbf16>
    %c0_49 = arith.constant 0 : index
    %c0_50 = arith.constant 0 : index
    %59 = vector.load %arg13[%c0_49, %c0_50] : memref<8x16xbf16, #tpu.memory_space<vmem>>, vector<8x16xbf16>
    %cst_51 = arith.constant dense<0.000000e+00> : vector<64x16xf32>
    %60 = tpu.matmul %58, %59, %cst_51 {dimension_numbers = #tpu.dot_dimension_numbers<[1], [0], [0], [1], [0, 0, 1, 1], [], []>} : vector<64x8xbf16>, vector<8x16xbf16>, vector<64x16xf32> -> vector<64x16xf32>
    %61 = arith.addf %55, %60 : vector<64x16xf32>
    %62 = arith.truncf %61 : vector<64x16xf32> to vector<64x16xbf16>
    %c0_52 = arith.constant 0 : index
    %c0_53 = arith.constant 0 : index
    %c0_54 = arith.constant 0 : index
    %63 = vector.load %arg15[%c0_52, %c0_53, %c0_54] : memref<1x64x16xbf16, #tpu.memory_space<vmem>>, vector<1x64x16xbf16>
    %64 = vector.shape_cast %63 : vector<1x64x16xbf16> to vector<64x16xbf16>
    %65 = vector.shape_cast %62 : vector<64x16xbf16> to vector<1x64x16xbf16>
    tpu.vector_store %arg15[%c0_52, %c0_53, %c0_54], %65 {strides = array<i32>} : memref<1x64x16xbf16, #tpu.memory_space<vmem>>, vector<1x64x16xbf16>,
    return
  }
  func.func @transform_0(%arg0: i32, %arg1: i32) -> (i32, i32, i32) {
    %c0_i32 = arith.constant 0 : i32
    %c0_i32_0 = arith.constant 0 : i32
    return %arg0, %arg1, %c0_i32 : i32, i32, i32
  }
  func.func @transform_1(%arg0: i32, %arg1: i32) -> (i32, i32, i32) {
    %c0_i32 = arith.constant 0 : i32
    %c0_i32_0 = arith.constant 0 : i32
    return %arg0, %arg1, %c0_i32 : i32, i32, i32
  }
  func.func @transform_2(%arg0: i32, %arg1: i32) -> (i32, i32, i32) {
    %c0_i32 = arith.constant 0 : i32
    %c0_i32_0 = arith.constant 0 : i32
    return %arg0, %arg1, %c0_i32 : i32, i32, i32
  }
  func.func @transform_3(%arg0: i32, %arg1: i32) -> (i32, i32, i32) {
    %c0_i32 = arith.constant 0 : i32
    %c0_i32_0 = arith.constant 0 : i32
    return %arg0, %arg1, %c0_i32 : i32, i32, i32
  }
  func.func @transform_4(%arg0: i32, %arg1: i32) -> (i32, i32) {
    %c0_i32 = arith.constant 0 : i32
    %c0_i32_0 = arith.constant 0 : i32
    %c0_i32_1 = arith.constant 0 : i32
    return %c0_i32, %c0_i32_0 : i32, i32
  }
  func.func @transform_5(%arg0: i32, %arg1: i32) -> (i32, i32) {
    %c0_i32 = arith.constant 0 : i32
    %c0_i32_0 = arith.constant 0 : i32
    %c0_i32_1 = arith.constant 0 : i32
    return %c0_i32, %c0_i32_0 : i32, i32
  }
  func.func @transform_6(%arg0: i32, %arg1: i32) -> (i32, i32) {
    %c0_i32 = arith.constant 0 : i32
    %c0_i32_0 = arith.constant 0 : i32
    %c0_i32_1 = arith.constant 0 : i32
    return %c0_i32, %c0_i32_0 : i32, i32
  }
  func.func @transform_7(%arg0: i32, %arg1: i32) -> (i32, i32) {
    %c0_i32 = arith.constant 0 : i32
    %c0_i32_0 = arith.constant 0 : i32
    %c0_i32_1 = arith.constant 0 : i32
    return %c0_i32, %c0_i32_0 : i32, i32
  }
  func.func @transform_8(%arg0: i32, %arg1: i32) -> (i32, i32) {
    %c0_i32 = arith.constant 0 : i32
    %c0_i32_0 = arith.constant 0 : i32
    %c0_i32_1 = arith.constant 0 : i32
    return %c0_i32, %c0_i32_0 : i32, i32
  }
  func.func @transform_9(%arg0: i32, %arg1: i32) -> (i32, i32) {
    %c0_i32 = arith.constant 0 : i32
    %c0_i32_0 = arith.constant 0 : i32
    %c0_i32_1 = arith.constant 0 : i32
    return %c0_i32, %c0_i32_0 : i32, i32
  }
  func.func @transform_10(%arg0: i32, %arg1: i32) -> (i32, i32) {
    %c0_i32 = arith.constant 0 : i32
    %c0_i32_0 = arith.constant 0 : i32
    %c0_i32_1 = arith.constant 0 : i32
    return %c0_i32, %c0_i32_0 : i32, i32
  }
  func.func @transform_11(%arg0: i32, %arg1: i32) -> (i32, i32) {
    %c0_i32 = arith.constant 0 : i32
    %c0_i32_0 = arith.constant 0 : i32
    %c0_i32_1 = arith.constant 0 : i32
    return %c0_i32, %c0_i32_0 : i32, i32
  }
  func.func @transform_12(%arg0: i32, %arg1: i32) -> (i32, i32) {
    %c0_i32 = arith.constant 0 : i32
    %c0_i32_0 = arith.constant 0 : i32
    %c0_i32_1 = arith.constant 0 : i32
    return %c0_i32, %c0_i32_0 : i32, i32
  }
  func.func @transform_13(%arg0: i32, %arg1: i32) -> (i32, i32, i32) {
    %c0_i32 = arith.constant 0 : i32
    %c0_i32_0 = arith.constant 0 : i32
    return %arg0, %arg1, %c0_i32 : i32, i32, i32
  }
}

module attributes {stable_mosaic.version = 11 : i64} {
  func.func @_reduce_cell_kernel(%arg0: i32, %arg1: i32, %arg2: memref<1x16x8xbf16, #tpu.memory_space<vmem>>, %arg3: memref<1x16x8xbf16, #tpu.memory_space<vmem>>, %arg4: memref<1x16x8xbf16, #tpu.memory_space<vmem>>, %arg5: memref<1x16x8xbf16, #tpu.memory_space<vmem>>, %arg6: memref<1x16x16xbf16, #tpu.memory_space<vmem>>, %arg7: memref<1x16x16xbf16, #tpu.memory_space<vmem>>, %arg8: memref<8x8xbf16, #tpu.memory_space<vmem>>, %arg9: memref<8x8xbf16, #tpu.memory_space<vmem>>, %arg10: memref<1x16xf32, #tpu.memory_space<vmem>>, %arg11: memref<16x16xbf16, #tpu.memory_space<vmem>>, %arg12: memref<1x16xf32, #tpu.memory_space<vmem>>, %arg13: memref<16x32xbf16, #tpu.memory_space<vmem>>, %arg14: memref<16x32xbf16, #tpu.memory_space<vmem>>, %arg15: memref<16x32xbf16, #tpu.memory_space<vmem>>, %arg16: memref<16x32xbf16, #tpu.memory_space<vmem>>, %arg17: memref<1x32xf32, #tpu.memory_space<vmem>>, %arg18: memref<1x16x32xbf16, #tpu.memory_space<vmem>>) attributes {dimension_semantics = [#tpu.dimension_semantics<parallel>, #tpu.dimension_semantics<parallel>], iteration_bounds = array<i64: 2, 1>, scalar_prefetch = 0 : i64, scratch_operands = 0 : i64, tpu.core_type = #tpu.core_type<tc>, window_params = [{transform_indices = @transform_0, window_bounds = array<i64: 1, 16, 8>}, {transform_indices = @transform_1, window_bounds = array<i64: 1, 16, 8>}, {transform_indices = @transform_2, window_bounds = array<i64: 1, 16, 8>}, {transform_indices = @transform_3, window_bounds = array<i64: 1, 16, 8>}, {transform_indices = @transform_4, window_bounds = array<i64: 1, 16, 16>}, {transform_indices = @transform_5, window_bounds = array<i64: 1, 16, 16>}, {pipeline_mode = #tpu.pipeline_mode<synchronous>, transform_indices = @transform_6, window_bounds = array<i64: 8, 8>}, {pipeline_mode = #tpu.pipeline_mode<synchronous>, transform_indices = @transform_7, window_bounds = array<i64: 8, 8>}, {pipeline_mode = #tpu.pipeline_mode<synchronous>, transform_indices = @transform_8, window_bounds = array<i64: 1, 16>}, {pipeline_mode = #tpu.pipeline_mode<synchronous>, transform_indices = @transform_9, window_bounds = array<i64: 16, 16>}, {pipeline_mode = #tpu.pipeline_mode<synchronous>, transform_indices = @transform_10, window_bounds = array<i64: 1, 16>}, {pipeline_mode = #tpu.pipeline_mode<synchronous>, transform_indices = @transform_11, window_bounds = array<i64: 16, 32>}, {pipeline_mode = #tpu.pipeline_mode<synchronous>, transform_indices = @transform_12, window_bounds = array<i64: 16, 32>}, {pipeline_mode = #tpu.pipeline_mode<synchronous>, transform_indices = @transform_13, window_bounds = array<i64: 16, 32>}, {pipeline_mode = #tpu.pipeline_mode<synchronous>, transform_indices = @transform_14, window_bounds = array<i64: 16, 32>}, {pipeline_mode = #tpu.pipeline_mode<synchronous>, transform_indices = @transform_15, window_bounds = array<i64: 1, 32>}, {transform_indices = @transform_16, window_bounds = array<i64: 1, 16, 32>}]} {
    %c0 = arith.constant 0 : index
    %c0_0 = arith.constant 0 : index
    %c0_1 = arith.constant 0 : index
    %0 = vector.load %arg2[%c0, %c0_0, %c0_1] : memref<1x16x8xbf16, #tpu.memory_space<vmem>>, vector<1x16x8xbf16>
    %1 = vector.shape_cast %0 : vector<1x16x8xbf16> to vector<16x8xbf16>
    %cst = arith.constant 0.000000e+00 : bf16
    %2 = vector.broadcast %cst : bf16 to vector<16x8xbf16>
    %3 = arith.maximumf %1, %2 : vector<16x8xbf16>
    %c0_2 = arith.constant 0 : index
    %c0_3 = arith.constant 0 : index
    %4 = vector.load %arg8[%c0_2, %c0_3] : memref<8x8xbf16, #tpu.memory_space<vmem>>, vector<8x8xbf16>
    %cst_4 = arith.constant dense<0.000000e+00> : vector<16x8xf32>
    %5 = tpu.matmul %3, %4, %cst_4 {dimension_numbers = #tpu.dot_dimension_numbers<[1], [0], [0], [1], [0, 0, 1, 1], [], []>} : vector<16x8xbf16>, vector<8x8xbf16>, vector<16x8xf32> -> vector<16x8xf32>
    %c0_5 = arith.constant 0 : index
    %c0_6 = arith.constant 0 : index
    %6 = vector.load %arg10[%c0_5, %c0_6] : memref<1x16xf32, #tpu.memory_space<vmem>>, vector<1x8xf32>
    %7 = vector.broadcast %6 : vector<1x8xf32> to vector<16x8xf32>
    %8 = arith.addf %5, %7 : vector<16x8xf32>
    %c0_7 = arith.constant 0 : index
    %c0_8 = arith.constant 0 : index
    %c0_9 = arith.constant 0 : index
    %9 = vector.load %arg3[%c0_7, %c0_8, %c0_9] : memref<1x16x8xbf16, #tpu.memory_space<vmem>>, vector<1x16x8xbf16>
    %10 = vector.shape_cast %9 : vector<1x16x8xbf16> to vector<16x8xbf16>
    %cst_10 = arith.constant 0.000000e+00 : bf16
    %11 = vector.broadcast %cst_10 : bf16 to vector<16x8xbf16>
    %12 = arith.maximumf %10, %11 : vector<16x8xbf16>
    %c0_11 = arith.constant 0 : index
    %c0_12 = arith.constant 0 : index
    %13 = vector.load %arg9[%c0_11, %c0_12] : memref<8x8xbf16, #tpu.memory_space<vmem>>, vector<8x8xbf16>
    %cst_13 = arith.constant dense<0.000000e+00> : vector<16x8xf32>
    %14 = tpu.matmul %12, %13, %cst_13 {dimension_numbers = #tpu.dot_dimension_numbers<[1], [0], [0], [1], [0, 0, 1, 1], [], []>} : vector<16x8xbf16>, vector<8x8xbf16>, vector<16x8xf32> -> vector<16x8xf32>
    %c0_14 = arith.constant 0 : index
    %c8 = arith.constant 8 : index
    %15 = vector.load %arg10[%c0_14, %c8] : memref<1x16xf32, #tpu.memory_space<vmem>>, vector<1x8xf32>
    %16 = vector.broadcast %15 : vector<1x8xf32> to vector<16x8xf32>
    %17 = arith.addf %14, %16 : vector<16x8xf32>
    %c0_15 = arith.constant 0 : index
    %c0_16 = arith.constant 0 : index
    %c0_17 = arith.constant 0 : index
    %18 = vector.load %arg4[%c0_15, %c0_16, %c0_17] : memref<1x16x8xbf16, #tpu.memory_space<vmem>>, vector<1x16x8xbf16>
    %19 = vector.shape_cast %18 : vector<1x16x8xbf16> to vector<16x8xbf16>
    %cst_18 = arith.constant 0.000000e+00 : bf16
    %20 = vector.broadcast %cst_18 : bf16 to vector<16x8xbf16>
    %21 = arith.maximumf %19, %20 : vector<16x8xbf16>
    %c0_19 = arith.constant 0 : index
    %c0_20 = arith.constant 0 : index
    %22 = vector.load %arg8[%c0_19, %c0_20] : memref<8x8xbf16, #tpu.memory_space<vmem>>, vector<8x8xbf16>
    %cst_21 = arith.constant dense<0.000000e+00> : vector<16x8xf32>
    %23 = tpu.matmul %21, %22, %cst_21 {dimension_numbers = #tpu.dot_dimension_numbers<[1], [0], [0], [1], [0, 0, 1, 1], [], []>} : vector<16x8xbf16>, vector<8x8xbf16>, vector<16x8xf32> -> vector<16x8xf32>
    %c0_22 = arith.constant 0 : index
    %c0_23 = arith.constant 0 : index
    %24 = vector.load %arg10[%c0_22, %c0_23] : memref<1x16xf32, #tpu.memory_space<vmem>>, vector<1x8xf32>
    %25 = vector.broadcast %24 : vector<1x8xf32> to vector<16x8xf32>
    %26 = arith.addf %23, %25 : vector<16x8xf32>
    %c0_24 = arith.constant 0 : index
    %c0_25 = arith.constant 0 : index
    %c0_26 = arith.constant 0 : index
    %27 = vector.load %arg5[%c0_24, %c0_25, %c0_26] : memref<1x16x8xbf16, #tpu.memory_space<vmem>>, vector<1x16x8xbf16>
    %28 = vector.shape_cast %27 : vector<1x16x8xbf16> to vector<16x8xbf16>
    %cst_27 = arith.constant 0.000000e+00 : bf16
    %29 = vector.broadcast %cst_27 : bf16 to vector<16x8xbf16>
    %30 = arith.maximumf %28, %29 : vector<16x8xbf16>
    %c0_28 = arith.constant 0 : index
    %c0_29 = arith.constant 0 : index
    %31 = vector.load %arg9[%c0_28, %c0_29] : memref<8x8xbf16, #tpu.memory_space<vmem>>, vector<8x8xbf16>
    %cst_30 = arith.constant dense<0.000000e+00> : vector<16x8xf32>
    %32 = tpu.matmul %30, %31, %cst_30 {dimension_numbers = #tpu.dot_dimension_numbers<[1], [0], [0], [1], [0, 0, 1, 1], [], []>} : vector<16x8xbf16>, vector<8x8xbf16>, vector<16x8xf32> -> vector<16x8xf32>
    %c0_31 = arith.constant 0 : index
    %c8_32 = arith.constant 8 : index
    %33 = vector.load %arg10[%c0_31, %c8_32] : memref<1x16xf32, #tpu.memory_space<vmem>>, vector<1x8xf32>
    %34 = vector.broadcast %33 : vector<1x8xf32> to vector<16x8xf32>
    %35 = arith.addf %32, %34 : vector<16x8xf32>
    %c0_33 = arith.constant 0 : index
    %c0_34 = arith.constant 0 : index
    %c0_35 = arith.constant 0 : index
    %36 = vector.load %arg6[%c0_33, %c0_34, %c0_35] : memref<1x16x16xbf16, #tpu.memory_space<vmem>>, vector<1x16x16xbf16>
    %37 = vector.shape_cast %36 : vector<1x16x16xbf16> to vector<16x16xbf16>
    %cst_36 = arith.constant 0.000000e+00 : bf16
    %38 = vector.broadcast %cst_36 : bf16 to vector<16x16xbf16>
    %39 = arith.maximumf %37, %38 : vector<16x16xbf16>
    %c0_37 = arith.constant 0 : index
    %c0_38 = arith.constant 0 : index
    %40 = vector.load %arg11[%c0_37, %c0_38] : memref<16x16xbf16, #tpu.memory_space<vmem>>, vector<16x16xbf16>
    %cst_39 = arith.constant dense<0.000000e+00> : vector<16x16xf32>
    %41 = tpu.matmul %39, %40, %cst_39 {dimension_numbers = #tpu.dot_dimension_numbers<[1], [0], [0], [1], [0, 0, 1, 1], [], []>} : vector<16x16xbf16>, vector<16x16xbf16>, vector<16x16xf32> -> vector<16x16xf32>
    %c0_40 = arith.constant 0 : index
    %c0_41 = arith.constant 0 : index
    %42 = vector.load %arg12[%c0_40, %c0_41] : memref<1x16xf32, #tpu.memory_space<vmem>>, vector<1x16xf32>
    %43 = vector.broadcast %42 : vector<1x16xf32> to vector<16x16xf32>
    %44 = arith.addf %41, %43 : vector<16x16xf32>
    %c0_42 = arith.constant 0 : index
    %c0_43 = arith.constant 0 : index
    %c0_44 = arith.constant 0 : index
    %45 = vector.load %arg7[%c0_42, %c0_43, %c0_44] : memref<1x16x16xbf16, #tpu.memory_space<vmem>>, vector<1x16x16xbf16>
    %46 = vector.shape_cast %45 : vector<1x16x16xbf16> to vector<16x16xbf16>
    %cst_45 = arith.constant 0.000000e+00 : bf16
    %47 = vector.broadcast %cst_45 : bf16 to vector<16x16xbf16>
    %48 = arith.maximumf %46, %47 : vector<16x16xbf16>
    %c0_46 = arith.constant 0 : index
    %c0_47 = arith.constant 0 : index
    %49 = vector.load %arg11[%c0_46, %c0_47] : memref<16x16xbf16, #tpu.memory_space<vmem>>, vector<16x16xbf16>
    %cst_48 = arith.constant dense<0.000000e+00> : vector<16x16xf32>
    %50 = tpu.matmul %48, %49, %cst_48 {dimension_numbers = #tpu.dot_dimension_numbers<[1], [0], [0], [1], [0, 0, 1, 1], [], []>} : vector<16x16xbf16>, vector<16x16xbf16>, vector<16x16xf32> -> vector<16x16xf32>
    %c0_49 = arith.constant 0 : index
    %c0_50 = arith.constant 0 : index
    %51 = vector.load %arg12[%c0_49, %c0_50] : memref<1x16xf32, #tpu.memory_space<vmem>>, vector<1x16xf32>
    %52 = vector.broadcast %51 : vector<1x16xf32> to vector<16x16xf32>
    %53 = arith.addf %50, %52 : vector<16x16xf32>
    %c0_51 = arith.constant 0 : index
    %c0_52 = arith.constant 0 : index
    %54 = vector.load %arg17[%c0_51, %c0_52] : memref<1x32xf32, #tpu.memory_space<vmem>>, vector<1x32xf32>
    %cst_53 = arith.constant 0.000000e+00 : f32
    %55 = vector.broadcast %cst_53 : f32 to vector<16x8xf32>
    %56 = arith.maximumf %8, %55 : vector<16x8xf32>
    %57 = arith.truncf %56 : vector<16x8xf32> to vector<16x8xbf16>
    %c0_54 = arith.constant 0 : index
    %c0_55 = arith.constant 0 : index
    %58 = vector.load %arg13[%c0_54, %c0_55] : memref<16x32xbf16, #tpu.memory_space<vmem>>, vector<8x32xbf16>
    %cst_56 = arith.constant dense<0.000000e+00> : vector<16x32xf32>
    %59 = tpu.matmul %57, %58, %cst_56 {dimension_numbers = #tpu.dot_dimension_numbers<[1], [0], [0], [1], [0, 0, 1, 1], [], []>} : vector<16x8xbf16>, vector<8x32xbf16>, vector<16x32xf32> -> vector<16x32xf32>
    %cst_57 = arith.constant 0.000000e+00 : f32
    %60 = vector.broadcast %cst_57 : f32 to vector<16x8xf32>
    %61 = arith.maximumf %17, %60 : vector<16x8xf32>
    %62 = arith.truncf %61 : vector<16x8xf32> to vector<16x8xbf16>
    %c8_58 = arith.constant 8 : index
    %c0_59 = arith.constant 0 : index
    %63 = vector.load %arg13[%c8_58, %c0_59] : memref<16x32xbf16, #tpu.memory_space<vmem>>, vector<8x32xbf16>
    %cst_60 = arith.constant dense<0.000000e+00> : vector<16x32xf32>
    %64 = tpu.matmul %62, %63, %cst_60 {dimension_numbers = #tpu.dot_dimension_numbers<[1], [0], [0], [1], [0, 0, 1, 1], [], []>} : vector<16x8xbf16>, vector<8x32xbf16>, vector<16x32xf32> -> vector<16x32xf32>
    %65 = arith.addf %59, %64 : vector<16x32xf32>
    %66 = vector.broadcast %54 : vector<1x32xf32> to vector<16x32xf32>
    %67 = arith.addf %66, %65 : vector<16x32xf32>
    %cst_61 = arith.constant 0.000000e+00 : f32
    %68 = vector.broadcast %cst_61 : f32 to vector<16x8xf32>
    %69 = arith.maximumf %26, %68 : vector<16x8xf32>
    %70 = arith.truncf %69 : vector<16x8xf32> to vector<16x8xbf16>
    %c0_62 = arith.constant 0 : index
    %c0_63 = arith.constant 0 : index
    %71 = vector.load %arg14[%c0_62, %c0_63] : memref<16x32xbf16, #tpu.memory_space<vmem>>, vector<8x32xbf16>
    %cst_64 = arith.constant dense<0.000000e+00> : vector<16x32xf32>
    %72 = tpu.matmul %70, %71, %cst_64 {dimension_numbers = #tpu.dot_dimension_numbers<[1], [0], [0], [1], [0, 0, 1, 1], [], []>} : vector<16x8xbf16>, vector<8x32xbf16>, vector<16x32xf32> -> vector<16x32xf32>
    %cst_65 = arith.constant 0.000000e+00 : f32
    %73 = vector.broadcast %cst_65 : f32 to vector<16x8xf32>
    %74 = arith.maximumf %35, %73 : vector<16x8xf32>
    %75 = arith.truncf %74 : vector<16x8xf32> to vector<16x8xbf16>
    %c8_66 = arith.constant 8 : index
    %c0_67 = arith.constant 0 : index
    %76 = vector.load %arg14[%c8_66, %c0_67] : memref<16x32xbf16, #tpu.memory_space<vmem>>, vector<8x32xbf16>
    %cst_68 = arith.constant dense<0.000000e+00> : vector<16x32xf32>
    %77 = tpu.matmul %75, %76, %cst_68 {dimension_numbers = #tpu.dot_dimension_numbers<[1], [0], [0], [1], [0, 0, 1, 1], [], []>} : vector<16x8xbf16>, vector<8x32xbf16>, vector<16x32xf32> -> vector<16x32xf32>
    %78 = arith.addf %72, %77 : vector<16x32xf32>
    %79 = arith.addf %67, %78 : vector<16x32xf32>
    %cst_69 = arith.constant 0.000000e+00 : f32
    %80 = vector.broadcast %cst_69 : f32 to vector<16x16xf32>
    %81 = arith.maximumf %44, %80 : vector<16x16xf32>
    %82 = arith.truncf %81 : vector<16x16xf32> to vector<16x16xbf16>
    %c0_70 = arith.constant 0 : index
    %c0_71 = arith.constant 0 : index
    %83 = vector.load %arg15[%c0_70, %c0_71] : memref<16x32xbf16, #tpu.memory_space<vmem>>, vector<16x32xbf16>
    %cst_72 = arith.constant dense<0.000000e+00> : vector<16x32xf32>
    %84 = tpu.matmul %82, %83, %cst_72 {dimension_numbers = #tpu.dot_dimension_numbers<[1], [0], [0], [1], [0, 0, 1, 1], [], []>} : vector<16x16xbf16>, vector<16x32xbf16>, vector<16x32xf32> -> vector<16x32xf32>
    %85 = arith.addf %79, %84 : vector<16x32xf32>
    %cst_73 = arith.constant 0.000000e+00 : f32
    %86 = vector.broadcast %cst_73 : f32 to vector<16x16xf32>
    %87 = arith.maximumf %53, %86 : vector<16x16xf32>
    %88 = arith.truncf %87 : vector<16x16xf32> to vector<16x16xbf16>
    %c0_74 = arith.constant 0 : index
    %c0_75 = arith.constant 0 : index
    %89 = vector.load %arg16[%c0_74, %c0_75] : memref<16x32xbf16, #tpu.memory_space<vmem>>, vector<16x32xbf16>
    %cst_76 = arith.constant dense<0.000000e+00> : vector<16x32xf32>
    %90 = tpu.matmul %88, %89, %cst_76 {dimension_numbers = #tpu.dot_dimension_numbers<[1], [0], [0], [1], [0, 0, 1, 1], [], []>} : vector<16x16xbf16>, vector<16x32xbf16>, vector<16x32xf32> -> vector<16x32xf32>
    %91 = arith.addf %85, %90 : vector<16x32xf32>
    %92 = arith.truncf %91 : vector<16x32xf32> to vector<16x32xbf16>
    %c0_77 = arith.constant 0 : index
    %c0_78 = arith.constant 0 : index
    %c0_79 = arith.constant 0 : index
    %93 = vector.load %arg18[%c0_77, %c0_78, %c0_79] : memref<1x16x32xbf16, #tpu.memory_space<vmem>>, vector<1x16x32xbf16>
    %94 = vector.shape_cast %93 : vector<1x16x32xbf16> to vector<16x32xbf16>
    %95 = vector.shape_cast %92 : vector<16x32xbf16> to vector<1x16x32xbf16>
    tpu.vector_store %arg18[%c0_77, %c0_78, %c0_79], %95 {strides = array<i32>} : memref<1x16x32xbf16, #tpu.memory_space<vmem>>, vector<1x16x32xbf16>,
    return
  }
  func.func @transform_0(%arg0: i32, %arg1: i32) -> (i32, i32, i32) {
    %c0_i32 = arith.constant 0 : i32
    %c0_i32_0 = arith.constant 0 : i32
    return %arg0, %arg1, %c0_i32 : i32, i32, i32
  }
  func.func @transform_1(%arg0: i32, %arg1: i32) -> (i32, i32, i32) {
    %c0_i32 = arith.constant 0 : i32
    %c0_i32_0 = arith.constant 0 : i32
    return %arg0, %arg1, %c0_i32 : i32, i32, i32
  }
  func.func @transform_2(%arg0: i32, %arg1: i32) -> (i32, i32, i32) {
    %c0_i32 = arith.constant 0 : i32
    %c0_i32_0 = arith.constant 0 : i32
    return %arg0, %arg1, %c0_i32 : i32, i32, i32
  }
  func.func @transform_3(%arg0: i32, %arg1: i32) -> (i32, i32, i32) {
    %c0_i32 = arith.constant 0 : i32
    %c0_i32_0 = arith.constant 0 : i32
    return %arg0, %arg1, %c0_i32 : i32, i32, i32
  }
  func.func @transform_4(%arg0: i32, %arg1: i32) -> (i32, i32, i32) {
    %c0_i32 = arith.constant 0 : i32
    %c0_i32_0 = arith.constant 0 : i32
    return %arg0, %arg1, %c0_i32 : i32, i32, i32
  }
  func.func @transform_5(%arg0: i32, %arg1: i32) -> (i32, i32, i32) {
    %c0_i32 = arith.constant 0 : i32
    %c0_i32_0 = arith.constant 0 : i32
    return %arg0, %arg1, %c0_i32 : i32, i32, i32
  }
  func.func @transform_6(%arg0: i32, %arg1: i32) -> (i32, i32) {
    %c0_i32 = arith.constant 0 : i32
    %c0_i32_0 = arith.constant 0 : i32
    %c0_i32_1 = arith.constant 0 : i32
    return %c0_i32, %c0_i32_0 : i32, i32
  }
  func.func @transform_7(%arg0: i32, %arg1: i32) -> (i32, i32) {
    %c0_i32 = arith.constant 0 : i32
    %c0_i32_0 = arith.constant 0 : i32
    %c0_i32_1 = arith.constant 0 : i32
    return %c0_i32, %c0_i32_0 : i32, i32
  }
  func.func @transform_8(%arg0: i32, %arg1: i32) -> (i32, i32) {
    %c0_i32 = arith.constant 0 : i32
    %c0_i32_0 = arith.constant 0 : i32
    %c0_i32_1 = arith.constant 0 : i32
    return %c0_i32, %c0_i32_0 : i32, i32
  }
  func.func @transform_9(%arg0: i32, %arg1: i32) -> (i32, i32) {
    %c0_i32 = arith.constant 0 : i32
    %c0_i32_0 = arith.constant 0 : i32
    %c0_i32_1 = arith.constant 0 : i32
    return %c0_i32, %c0_i32_0 : i32, i32
  }
  func.func @transform_10(%arg0: i32, %arg1: i32) -> (i32, i32) {
    %c0_i32 = arith.constant 0 : i32
    %c0_i32_0 = arith.constant 0 : i32
    %c0_i32_1 = arith.constant 0 : i32
    return %c0_i32, %c0_i32_0 : i32, i32
  }
  func.func @transform_11(%arg0: i32, %arg1: i32) -> (i32, i32) {
    %c0_i32 = arith.constant 0 : i32
    %c0_i32_0 = arith.constant 0 : i32
    %c0_i32_1 = arith.constant 0 : i32
    return %c0_i32, %c0_i32_0 : i32, i32
  }
  func.func @transform_12(%arg0: i32, %arg1: i32) -> (i32, i32) {
    %c0_i32 = arith.constant 0 : i32
    %c0_i32_0 = arith.constant 0 : i32
    %c0_i32_1 = arith.constant 0 : i32
    return %c0_i32, %c0_i32_0 : i32, i32
  }
  func.func @transform_13(%arg0: i32, %arg1: i32) -> (i32, i32) {
    %c0_i32 = arith.constant 0 : i32
    %c0_i32_0 = arith.constant 0 : i32
    %c0_i32_1 = arith.constant 0 : i32
    return %c0_i32, %c0_i32_0 : i32, i32
  }
  func.func @transform_14(%arg0: i32, %arg1: i32) -> (i32, i32) {
    %c0_i32 = arith.constant 0 : i32
    %c0_i32_0 = arith.constant 0 : i32
    %c0_i32_1 = arith.constant 0 : i32
    return %c0_i32, %c0_i32_0 : i32, i32
  }
  func.func @transform_15(%arg0: i32, %arg1: i32) -> (i32, i32) {
    %c0_i32 = arith.constant 0 : i32
    %c0_i32_0 = arith.constant 0 : i32
    %c0_i32_1 = arith.constant 0 : i32
    return %c0_i32, %c0_i32_0 : i32, i32
  }
  func.func @transform_16(%arg0: i32, %arg1: i32) -> (i32, i32, i32) {
    %c0_i32 = arith.constant 0 : i32
    %c0_i32_0 = arith.constant 0 : i32
    return %arg0, %arg1, %c0_i32 : i32, i32, i32
  }
}

module attributes {stable_mosaic.version = 11 : i64} {
  func.func @_gap_linear_kernel(%arg0: i32, %arg1: memref<2x16x32xbf16, #tpu.memory_space<vmem>>, %arg2: memref<32x10xbf16, #tpu.memory_space<vmem>>, %arg3: memref<1x10xf32, #tpu.memory_space<vmem>>, %arg4: memref<2x10xf32, #tpu.memory_space<vmem>>) attributes {dimension_semantics = [#tpu.dimension_semantics<arbitrary>], iteration_bounds = array<i64: 1>, scalar_prefetch = 0 : i64, scratch_operands = 0 : i64, tpu.core_type = #tpu.core_type<tc>, window_params = [{pipeline_mode = #tpu.pipeline_mode<synchronous>, transform_indices = @transform_0, window_bounds = array<i64: 2, 16, 32>}, {pipeline_mode = #tpu.pipeline_mode<synchronous>, transform_indices = @transform_1, window_bounds = array<i64: 32, 10>}, {pipeline_mode = #tpu.pipeline_mode<synchronous>, transform_indices = @transform_2, window_bounds = array<i64: 1, 10>}, {pipeline_mode = #tpu.pipeline_mode<synchronous>, transform_indices = @transform_3, window_bounds = array<i64: 2, 10>}]} {
    %c0 = arith.constant 0 : index
    %c0_0 = arith.constant 0 : index
    %c0_1 = arith.constant 0 : index
    %0 = vector.load %arg1[%c0, %c0_0, %c0_1] : memref<2x16x32xbf16, #tpu.memory_space<vmem>>, vector<2x16x32xbf16>
    %1 = arith.extf %0 : vector<2x16x32xbf16> to vector<2x16x32xf32>
    %cst = arith.constant dense<0.000000e+00> : vector<2x32xf32>
    %2 = vector.multi_reduction <add>, %1, %cst [1] : vector<2x16x32xf32> to vector<2x32xf32>
    %cst_2 = arith.constant 1.600000e+01 : f32
    %3 = vector.broadcast %cst_2 : f32 to vector<2x32xf32>
    %4 = arith.divf %2, %3 : vector<2x32xf32>
    %5 = arith.truncf %4 : vector<2x32xf32> to vector<2x32xbf16>
    %c0_3 = arith.constant 0 : index
    %c0_4 = arith.constant 0 : index
    %6 = vector.load %arg2[%c0_3, %c0_4] : memref<32x10xbf16, #tpu.memory_space<vmem>>, vector<32x10xbf16>
    %cst_5 = arith.constant dense<0.000000e+00> : vector<2x10xf32>
    %7 = tpu.matmul %5, %6, %cst_5 {dimension_numbers = #tpu.dot_dimension_numbers<[1], [0], [0], [1], [0, 0, 1, 1], [], []>} : vector<2x32xbf16>, vector<32x10xbf16>, vector<2x10xf32> -> vector<2x10xf32>
    %c0_6 = arith.constant 0 : index
    %c0_7 = arith.constant 0 : index
    %8 = vector.load %arg3[%c0_6, %c0_7] : memref<1x10xf32, #tpu.memory_space<vmem>>, vector<1x10xf32>
    %9 = vector.broadcast %8 : vector<1x10xf32> to vector<2x10xf32>
    %10 = arith.addf %7, %9 : vector<2x10xf32>
    %c0_8 = arith.constant 0 : index
    %c0_9 = arith.constant 0 : index
    %11 = vector.load %arg4[%c0_8, %c0_9] : memref<2x10xf32, #tpu.memory_space<vmem>>, vector<2x10xf32>
    tpu.vector_store %arg4[%c0_8, %c0_9], %10 {strides = array<i32>} : memref<2x10xf32, #tpu.memory_space<vmem>>, vector<2x10xf32>,
    return
  }
  func.func @transform_0(%arg0: i32) -> (i32, i32, i32) {
    %c0_i32 = arith.constant 0 : i32
    %c0_i32_0 = arith.constant 0 : i32
    %c0_i32_1 = arith.constant 0 : i32
    %c0_i32_2 = arith.constant 0 : i32
    return %c0_i32, %c0_i32_0, %c0_i32_1 : i32, i32, i32
  }
  func.func @transform_1(%arg0: i32) -> (i32, i32) {
    %c0_i32 = arith.constant 0 : i32
    %c0_i32_0 = arith.constant 0 : i32
    %c0_i32_1 = arith.constant 0 : i32
    return %c0_i32, %c0_i32_0 : i32, i32
  }
  func.func @transform_2(%arg0: i32) -> (i32, i32) {
    %c0_i32 = arith.constant 0 : i32
    %c0_i32_0 = arith.constant 0 : i32
    %c0_i32_1 = arith.constant 0 : i32
    return %c0_i32, %c0_i32_0 : i32, i32
  }
  func.func @transform_3(%arg0: i32) -> (i32, i32) {
    %c0_i32 = arith.constant 0 : i32
    %c0_i32_0 = arith.constant 0 : i32
    %c0_i32_1 = arith.constant 0 : i32
    return %c0_i32, %c0_i32_0 : i32, i32
  }
}

</mosaic_0001>

<bundles_post_ra>
// kernel: _lambda_.6
= control target key start
LH: loop header
LB: loop body
LE: loop exit
PB: predicated region body
PF: predicated region fallthrough
CT: control target
= control target key end

     0   :  { %s1699_s18 = smov 0   ;;  %s1701_s19 = smov 0   ;;  %s2013_s0 = inlined_call_operand.vmem [shape: bf16[2,256,12], index: 0, kind: input, shape index: {}, may-alias: {0,1}]   ;;  %s2014_s1 = inlined_call_operand.vmem [shape: bf16[2,256,12], index: 1, kind: input, shape index: {}, may-alias: {0,1}]   ;;  %s2015_s2 = inlined_call_operand.vmem [shape: bf16[12,8], index: 2, kind: input, shape index: {}]   ;;  %s2016_s3 = inlined_call_operand.vmem [shape: bf16[12,8], index: 3, kind: input, shape index: {}]   ;;  %s2017_s4 = inlined_call_operand.vmem [shape: f32[1,8], index: 4, kind: input, shape index: {}]   ;;  %s2018_s5 = inlined_call_operand.vmem [shape: bf16[2,256,8], index: 5, kind: output, shape index: {}]  }
   0x1   :  { %s1703_s20 = smov 0  }
   0x2 LB: > { %s27_s21 = sadd.s32 1, %s1662_s19  ;;  %p1370_p0 = scmp.ge.s32.totalorder %s1666_s20, 1  ;;  %s1666_s20 = sphi %s1703_s20, %s15_s20   ;;  %s1662_s19 = sphi %s1701_s19, %s2020_s19   ;;  %s1658_s18 = sphi %s1699_s18, %s2019_s18  }
   0x3   : > { %p29_p1 = scmp.ge.s32.totalorder %s27_s21, 2  ;;  %p225_p2 = scmp.lt.s32.totalorder %s1666_s20, 3 }
   0x5   : > { %s2022_s21 = smov (%p29_p1, %s27_s21), 0  ;;  %p226_p3 = pnand %p1370_p0, %p225_p2 }
   0x6   : > { %p271_p4 = scmp.lt.s32.totalorder (!%p226_p3), %s1658_s18, 1 }
   0x7   : > { %229 = sbr.rel (%p226_p3) target bundleno = 283 (0x11b), region = 40 }
   0xc   : > { %v1642_v0 = vld [vmem:[%s2015_s2] sm:$0x3f]   ;;  %vm502_vm0 = vcmask 1045504   ;;  %s2024_s18 = smov (!%p271_p4, %s1658_s18), 1  ;;  %vm453_vm1 = vcmask 97280   ;;  %v1668_v7 = vmov 0  }
   0xd   : > { %1615 = vmatprep.subr.msk.bf16.mxu0 %vm502_vm0, %v1642_v0  ;;  %v1643_v1 = vld [vmem:[%s2016_s3] sm:$0x3f]   ;;  %v504_v2 = vsel %vm502_vm0, %v1642_v0, 0  ;;  %s1723_s26 = sshll.u32 %s2024_s18, 7  ;;  %vm1228_vm2 = vcmask 60416  }
   0xe   : > { %1548 = vmatpush3.bf16.msra.mxu0 %v504_v2  ;;  %1616 = vmatprep.subr.msk.bf16.mxu1 %vm502_vm0, %v1643_v1  ;;  %v905_v3 = vsel %vm502_vm0, %v1643_v1, 0  ;;  %s1729_s29 = scalar_lea.vmem %s2013_s0, %s1723_s26  ;;  %s1735_s7 = scalar_lea.vmem %s2014_s1, %s1723_s26 }
   0xf   : > { %1582 = vmatpush3.bf16.msra.mxu1 %v905_v3  ;;  %v302_v4 = vld [vmem:[%s1729_s29] sm:$0xf]  ;;  %v303_v5 = vld [vmem:[%s1729_s29 + $0x4] sm:$0xf]  ;;  %v304_v12 = vld [vmem:[%s1729_s29 + $0x8] sm:$0xf]  ;;  %s1908_s12 = scalar_lea.vmem %s2018_s5, %s1723_s26 }
  0x10   : > { %v705_v6 = vld [vmem:[%s1735_s7] sm:$0xf]  ;;  %v334_v8 = vmax.bf16 %v1668_v7, %v302_v4  ;;  %v335_v9 = vmax.bf16 %v1668_v7, %v303_v5  ;;  %v706_v10 = vld [vmem:[%s1735_s7 + $0x4] sm:$0xf]  ;;  %v305_v13 = vld [vmem:[%s1729_s29 + $0xc] sm:$0xf]  ;;  %v336_v15 = vmax.bf16 %v1668_v7, %v304_v12 }
  0x11   : > { %v737_v11 = vmax.bf16 %v1668_v7, %v705_v6  ;;  %v738_v14 = vmax.bf16 %v1668_v7, %v706_v10  ;;  %v337_v16 = vmax.bf16 %v1668_v7, %v305_v13  ;;  %v707_v17 = vld [vmem:[%s1735_s7 + $0x8] sm:$0xf]  ;;  %v708_v18 = vld [vmem:[%s1735_s7 + $0xc] sm:$0xf]  ;;  %v306_v19 = vld [vmem:[%s1729_s29 + $0x10] sm:$0xf] }
  0x12   : > { %v1377_v20 = vcombine.low %v334_v8, %v335_v9  ;;  %v739_v21 = vmax.bf16 %v1668_v7, %v707_v17  ;;  %v740_v22 = vmax.bf16 %v1668_v7, %v708_v18  ;;  %v307_v23 = vld [vmem:[%s1729_s29 + $0x14] sm:$0xf]  ;;  %v338_v24 = vmax.bf16 %v1668_v7, %v306_v19  ;;  %v709_v25 = vld [vmem:[%s1735_s7 + $0x10] sm:$0xf]  ;;  %v308_v31 = vld [vmem:[%s1729_s29 + $0x18] sm:$0xf] }
  0x13   : > { %v710_v26 = vld [vmem:[%s1735_s7 + $0x14] sm:$0xf]  ;;  %v1411_v27 = vcombine.low %v737_v11, %v738_v14  ;;  %v1378_v28 = vcombine.low %v336_v15, %v337_v16  ;;  %v339_v29 = vmax.bf16 %v1668_v7, %v307_v23  ;;  %v741_v30 = vmax.bf16 %v1668_v7, %v709_v25  ;;  %v309_v32 = vld [vmem:[%s1729_s29 + $0x1c] sm:$0xf]  ;;  %v711_v33 = vld [vmem:[%s1735_s7 + $0x18] sm:$0xf] }
  0x14   : > { %1549 = vmatprep.mubr.msk.bf16.mxu0 %vm453_vm1, %v1377_v20  ;;  %v1412_v34 = vcombine.low %v739_v21, %v740_v22  ;;  %v742_v35 = vmax.bf16 %v1668_v7, %v710_v26  ;;  %v340_v36 = vmax.bf16 %v1668_v7, %v308_v31  ;;  %v712_v37 = vld [vmem:[%s1735_s7 + $0x1c] sm:$0xf]  ;;  %v310_v38 = vld [vmem:[%s1729_s29 + $0x20] sm:$0xf]  ;;  %v311_v39 = vld [vmem:[%s1729_s29 + $0x24] sm:$0xf]  ;;  %v341_v41 = vmax.bf16 %v1668_v7, %v309_v32 }
  0x15   : > { %1583 = vmatprep.mubr.msk.bf16.mxu1 %vm453_vm1, %v1411_v27  ;;  %1550 = vmatmul.mubr.msk.bf16.vlgmr.msra.gmra.mxu0 %vm453_vm1, %v1378_v28  ;;  %v1379_v40 = vcombine.low %v338_v24, %v339_v29  ;;  %v743_v42 = vmax.bf16 %v1668_v7, %v711_v33  ;;  %v713_v43 = vld [vmem:[%s1735_s7 + $0x20] sm:$0xf]  ;;  %v714_v44 = vld [vmem:[%s1735_s7 + $0x24] sm:$0xf]  ;;  %v744_v46 = vmax.bf16 %v1668_v7, %v712_v37  ;;  %v312_v54 = vld [vmem:[%s1729_s29 + $0x28] sm:$0xf] }
  0x16   : > { %1584 = vmatmul.mubr.msk.bf16.vlgmr.msra.gmra.mxu1 %vm453_vm1, %v1412_v34  ;;  %v1413_v45 = vcombine.low %v741_v30, %v742_v35  ;;  %v342_v47 = vmax.bf16 %v1668_v7, %v310_v38  ;;  %v343_v48 = vmax.bf16 %v1668_v7, %v311_v39  ;;  %v745_v49 = vmax.bf16 %v1668_v7, %v713_v43  ;;  %v313_v55 = vld [vmem:[%s1729_s29 + $0x2c] sm:$0xf]  ;;  %v715_v56 = vld [vmem:[%s1735_s7 + $0x28] sm:$0xf]  ;;  %v314_v59 = vld [vmem:[%s1729_s29 + $0x30] sm:$0xf] }
  0x17   : > { %1553 = vmatprep.mubr.msk.bf16.mxu0 %vm453_vm1, %v1379_v40  ;;  %v746_v50 = vmax.bf16 %v1668_v7, %v714_v44  ;;  %v1380_v51 = vcombine.low %v340_v36, %v341_v41  ;;  %v1414_v52 = vcombine.low %v743_v42, %v744_v46  ;;  %v716_v58 = vld [vmem:[%s1735_s7 + $0x2c] sm:$0xf]  ;;  %v315_v60 = vld [vmem:[%s1729_s29 + $0x34] sm:$0xf]  ;;  %v717_v61 = vld [vmem:[%s1735_s7 + $0x30] sm:$0xf]  ;;  %v344_v63 = vmax.bf16 %v1668_v7, %v312_v54 }
  0x18   : > { %1587 = vmatprep.mubr.msk.bf16.mxu1 %vm453_vm1, %v1413_v45  ;;  %v1381_v53 = vcombine.low %v342_v47, %v343_v48  ;;  %v718_v62 = vld [vmem:[%s1735_s7 + $0x34] sm:$0xf]  ;;  %v345_v0 = vmax.bf16 %v1668_v7, %v313_v55  ;;  %v747_v1 = vmax.bf16 %v1668_v7, %v715_v56  ;;  %v748_v2 = vmax.bf16 %v1668_v7, %v716_v58  ;;  %v316_v11 = vld [vmem:[%s1729_s29 + $0x38] sm:$0xf]  ;;  %v317_v12 = vld [vmem:[%s1729_s29 + $0x3c] sm:$0xf] }
  0x19   : > { %v1415_v57 = vcombine.low %v745_v49, %v746_v50  ;;  %v346_v3 = vmax.bf16 %v1668_v7, %v314_v59  ;;  %v347_v4 = vmax.bf16 %v1668_v7, %v315_v60  ;;  %v749_v5 = vmax.bf16 %v1668_v7, %v717_v61  ;;  %v719_v13 = vld [vmem:[%s1735_s7 + $0x38] sm:$0xf]  ;;  %v720_v15 = vld [vmem:[%s1735_s7 + $0x3c] sm:$0xf]  ;;  %v318_v16 = vld [vmem:[%s1729_s29 + $0x40] sm:$0xf] }
  0x1a   : > { %v750_v6 = vmax.bf16 %v1668_v7, %v718_v62  ;;  %v1382_v8 = vcombine.low %v344_v63, %v345_v0  ;;  %v1416_v9 = vcombine.low %v747_v1, %v748_v2  ;;  %v319_v17 = vld [vmem:[%s1729_s29 + $0x44] sm:$0xf]  ;;  %v721_v18 = vld [vmem:[%s1735_s7 + $0x40] sm:$0xf]  ;;  %v348_v20 = vmax.bf16 %v1668_v7, %v316_v11  ;;  %v320_v31 = vld [vmem:[%s1729_s29 + $0x48] sm:$0xf] }
  0x1b   : > { %v1383_v10 = vcombine.low %v346_v3, %v347_v4  ;;  %v722_v19 = vld [vmem:[%s1735_s7 + $0x44] sm:$0xf]  ;;  %v349_v21 = vmax.bf16 %v1668_v7, %v317_v12  ;;  %v751_v22 = vmax.bf16 %v1668_v7, %v719_v13  ;;  %v752_v23 = vmax.bf16 %v1668_v7, %v720_v15  ;;  %v321_v32 = vld [vmem:[%s1729_s29 + $0x4c] sm:$0xf]  ;;  %v723_v33 = vld [vmem:[%s1735_s7 + $0x48] sm:$0xf] }
  0x1c   : > { %v1417_v14 = vcombine.low %v749_v5, %v750_v6  ;;  %v350_v24 = vmax.bf16 %v1668_v7, %v318_v16  ;;  %v351_v25 = vmax.bf16 %v1668_v7, %v319_v17  ;;  %v753_v26 = vmax.bf16 %v1668_v7, %v721_v18  ;;  %v724_v35 = vld [vmem:[%s1735_s7 + $0x4c] sm:$0xf]  ;;  %v322_v36 = vld [vmem:[%s1729_s29 + $0x50] sm:$0xf]  ;;  %v323_v37 = vld [vmem:[%s1729_s29 + $0x54] sm:$0xf] }
  0x1d   : > { %1554 = vmatmul.mubr.msk.bf16.gmra.mxu0 %vm453_vm1, %v1380_v51  ;;  %v754_v27 = vmax.bf16 %v1668_v7, %v722_v19  ;;  %v1384_v28 = vcombine.low %v348_v20, %v349_v21  ;;  %v1418_v29 = vcombine.low %v751_v22, %v752_v23  ;;  %v725_v38 = vld [vmem:[%s1735_s7 + $0x50] sm:$0xf]  ;;  %v726_v39 = vld [vmem:[%s1735_s7 + $0x54] sm:$0xf]  ;;  %v352_v40 = vmax.bf16 %v1668_v7, %v320_v31  ;;  %v324_v51 = vld [vmem:[%s1729_s29 + $0x58] sm:$0xf] }
  0x1e   : > { %1588 = vmatmul.mubr.msk.bf16.gmra.mxu1 %vm453_vm1, %v1414_v52  ;;  %1557 = vmatprep.mubr.msk.bf16.mxu0 %vm453_vm1, %v1381_v53  ;;  %v1385_v30 = vcombine.low %v350_v24, %v351_v25  ;;  %v353_v41 = vmax.bf16 %v1668_v7, %v321_v32  ;;  %v755_v42 = vmax.bf16 %v1668_v7, %v723_v33  ;;  %v325_v52 = vld [vmem:[%s1729_s29 + $0x5c] sm:$0xf]  ;;  %v727_v53 = vld [vmem:[%s1735_s7 + $0x58] sm:$0xf]  ;;  %v326_v56 = vld [vmem:[%s1729_s29 + $0x60] sm:$0xf] }
  0x1f   : > { %1591 = vmatprep.mubr.msk.bf16.mxu1 %vm453_vm1, %v1415_v57  ;;  %v1419_v34 = vcombine.low %v753_v26, %v754_v27  ;;  %v756_v43 = vmax.bf16 %v1668_v7, %v724_v35  ;;  %v354_v44 = vmax.bf16 %v1668_v7, %v322_v36  ;;  %v355_v45 = vmax.bf16 %v1668_v7, %v323_v37  ;;  %v728_v55 = vld [vmem:[%s1735_s7 + $0x5c] sm:$0xf]  ;;  %v327_v57 = vld [vmem:[%s1729_s29 + $0x64] sm:$0xf]  ;;  %v729_v58 = vld [vmem:[%s1735_s7 + $0x60] sm:$0xf] }
  0x20   : > { %v757_v46 = vmax.bf16 %v1668_v7, %v725_v38  ;;  %v758_v47 = vmax.bf16 %v1668_v7, %v726_v39  ;;  %v1386_v48 = vcombine.low %v352_v40, %v353_v41  ;;  %v730_v59 = vld [vmem:[%s1735_s7 + $0x64] sm:$0xf]  ;;  %v356_v60 = vmax.bf16 %v1668_v7, %v324_v51  ;;  %v732_v12 = vld [vmem:[%s1735_s7 + $0x6c] sm:$0xf]  ;;  %v330_v13 = vld [vmem:[%s1729_s29 + $0x70] sm:$0xf] }
  0x21   : > { %v1420_v49 = vcombine.low %v755_v42, %v756_v43  ;;  %v1387_v50 = vcombine.low %v354_v44, %v355_v45  ;;  %v357_v61 = vmax.bf16 %v1668_v7, %v325_v52  ;;  %v759_v62 = vmax.bf16 %v1668_v7, %v727_v53  ;;  %v733_v15 = vld [vmem:[%s1735_s7 + $0x70] sm:$0xf]  ;;  %v734_v16 = vld [vmem:[%s1735_s7 + $0x74] sm:$0xf]  ;;  %v735_v31 = vld [vmem:[%s1735_s7 + $0x78] sm:$0xf] }
  0x22   : > { %v1421_v54 = vcombine.low %v757_v46, %v758_v47  ;;  %v760_v63 = vmax.bf16 %v1668_v7, %v728_v55  ;;  %v358_v0 = vmax.bf16 %v1668_v7, %v326_v56  ;;  %v359_v1 = vmax.bf16 %v1668_v7, %v327_v57  ;;  %v736_v32 = vld [vmem:[%s1735_s7 + $0x7c] sm:$0xf]  ;;  %v1900_v39 = vld [vmem:[%s2017_s4] ss:$0 sm:$0xff] }
  0x23   : > { %v761_v2 = vmax.bf16 %v1668_v7, %v729_v58  ;;  %v762_v3 = vmax.bf16 %v1668_v7, %v730_v59  ;;  %v1388_v4 = vcombine.low %v356_v60, %v357_v61  ;;  %v764_v20 = vmax.bf16 %v1668_v7, %v732_v12 }
  0x24   : > { %v1422_v5 = vcombine.low %v759_v62, %v760_v63  ;;  %v1389_v6 = vcombine.low %v358_v0, %v359_v1  ;;  %v362_v21 = vmax.bf16 %v1668_v7, %v330_v13  ;;  %v765_v23 = vmax.bf16 %v1668_v7, %v733_v15 }
  0x25   : > { %1558 = vmatmul.mubr.msk.bf16.gmra.mxu0 %vm453_vm1, %v1382_v8  ;;  %v328_v8 = vld [vmem:[%s1729_s29 + $0x68] sm:$0xf]  ;;  %v1423_v11 = vcombine.low %v761_v2, %v762_v3  ;;  %v766_v24 = vmax.bf16 %v1668_v7, %v734_v16  ;;  %v767_v35 = vmax.bf16 %v1668_v7, %v735_v31  ;;  %v768_v36 = vmax.bf16 %v1668_v7, %v736_v32 }
  0x26   : > { %1592 = vmatmul.mubr.msk.bf16.gmra.mxu1 %vm453_vm1, %v1416_v9  ;;  %1561 = vmatprep.mubr.msk.bf16.mxu0 %vm453_vm1, %v1383_v10  ;;  %v329_v9 = vld [vmem:[%s1729_s29 + $0x6c] sm:$0xf]  ;;  %v731_v10 = vld [vmem:[%s1735_s7 + $0x68] sm:$0xf]  ;;  %v360_v17 = vmax.bf16 %v1668_v7, %v328_v8 }
  0x27   : > { %1595 = vmatprep.mubr.msk.bf16.mxu1 %vm453_vm1, %v1417_v14  ;;  %v331_v14 = vld [vmem:[%s1729_s29 + $0x74] sm:$0xf]  ;;  %v361_v18 = vmax.bf16 %v1668_v7, %v329_v9  ;;  %v763_v19 = vmax.bf16 %v1668_v7, %v731_v10  ;;  %v1426_v38 = vcombine.low %v767_v35, %v768_v36 }
  0x28   : > { %v363_v22 = vmax.bf16 %v1668_v7, %v331_v14 }
  0x29   : > { %v1390_v25 = vcombine.low %v360_v17, %v361_v18  ;;  %v1424_v26 = vcombine.low %v763_v19, %v764_v20 }
  0x2a   : > { %v1391_v27 = vcombine.low %v362_v21, %v363_v22 }
  0x2d   : > { %1562 = vmatmul.mubr.msk.bf16.gmra.mxu0 %vm453_vm1, %v1384_v28  ;;  %v332_v28 = vld [vmem:[%s1729_s29 + $0x78] sm:$0xf] }
  0x2e   : > { %1596 = vmatmul.mubr.msk.bf16.gmra.mxu1 %vm453_vm1, %v1418_v29  ;;  %1565 = vmatprep.mubr.msk.bf16.mxu0 %vm453_vm1, %v1385_v30  ;;  %v333_v29 = vld [vmem:[%s1729_s29 + $0x7c] sm:$0xf]  ;;  %v1425_v30 = vcombine.low %v765_v23, %v766_v24  ;;  %v364_v33 = vmax.bf16 %v1668_v7, %v332_v28 }
  0x2f   : > { %1599 = vmatprep.mubr.msk.bf16.mxu1 %vm453_vm1, %v1419_v34  ;;  %v365_v34 = vmax.bf16 %v1668_v7, %v333_v29 }
  0x31   : > { %v1392_v37 = vcombine.low %v364_v33, %v365_v34 }
  0x35   : > { %1566 = vmatmul.mubr.msk.bf16.gmra.mxu0 %vm453_vm1, %v1386_v48 }
  0x36   : > { %1600 = vmatmul.mubr.msk.bf16.gmra.mxu1 %vm453_vm1, %v1420_v49  ;;  %1569 = vmatprep.mubr.msk.bf16.mxu0 %vm453_vm1, %v1387_v50 }
  0x37   : > { %1603 = vmatprep.mubr.msk.bf16.mxu1 %vm453_vm1, %v1421_v54 }
  0x3d   : > { %1570 = vmatmul.mubr.msk.bf16.gmra.mxu0 %vm453_vm1, %v1388_v4 }
  0x3e   : > { %1604 = vmatmul.mubr.msk.bf16.gmra.mxu1 %vm453_vm1, %v1422_v5  ;;  %1573 = vmatprep.mubr.msk.bf16.mxu0 %vm453_vm1, %v1389_v6 }
  0x3f   : > { %1607 = vmatprep.mubr.msk.bf16.mxu1 %vm453_vm1, %v1423_v11 }
  0x45   : > { %1574 = vmatmul.mubr.msk.bf16.gmra.mxu0 %vm453_vm1, %v1390_v25 }
  0x46   : > { %1608 = vmatmul.mubr.msk.bf16.gmra.mxu1 %vm453_vm1, %v1424_v26  ;;  %1577 = vmatprep.mubr.msk.bf16.mxu0 %vm453_vm1, %v1391_v27 }
  0x47   : > { %1611 = vmatprep.mubr.msk.bf16.mxu1 %vm453_vm1, %v1425_v30 }
  0x4d   : > { %1578 = vmatmul.mubr.msk.bf16.gmra.mxu0 %vm453_vm1, %v1392_v37 }
  0x4e   : > { %1612 = vmatmul.mubr.msk.bf16.gmra.mxu1 %vm453_vm1, %v1426_v38 }
  0xd5   : > { %v1551_v40 = vpop.f32.mrf.mxu0 }
  0xd6   : > { %v675_v41 = vadd.f32 %v1551_v40, %v1900_v39  ;;  %v1585_v42 = vpop.f32.mrf.mxu1 }
  0xd7   : > { %v540_v43 = vpop.f32.mrf.mxu0 }
  0xd8   : > { %v1070_v44 = vadd.f32 %v1585_v42, %v675_v41  ;;  %v673_v7 = vadd.f32 %v1900_v39, %v540_v43  ;;  %v941_v45 = vpop.f32.mrf.mxu1 }
  0xd9   : > { %v1552_v46 = vpop.f32.mrf.mxu0 }
  0xda   : > { %v1483_v47 = vpack.c.bf16 %v1070_v44, %v1070_v44  ;;  %v1068_v48 = vadd.f32 %v941_v45, %v673_v7  ;;  %v676_v49 = vadd.f32 %v1552_v46, %v1900_v39  ;;  %v1586_v50 = vpop.f32.mrf.mxu1 }
  0xdb   : > { %v543_v51 = vpop.f32.mrf.mxu0 }
  0xdc   : > { %1231 = vst.msk [vmem:[%s1908_s12 + $0x8] sm:$0xf] %vm1228_vm2, %v1483_v47  ;;  %v1481_v52 = vpack.c.bf16 %v1068_v48, %v1068_v48  ;;  %v1071_v53 = vadd.f32 %v1586_v50, %v676_v49  ;;  %v674_v54 = vadd.f32 %v1900_v39, %v543_v51  ;;  %v944_v55 = vpop.f32.mrf.mxu1 }
  0xdd   : > { %v1555_v56 = vpop.f32.mrf.mxu0 }
  0xde   : > { %1229 = vst.msk [vmem:[%s1908_s12] sm:$0xf] %vm1228_vm2, %v1481_v52  ;;  %v1484_v57 = vpack.c.bf16 %v1071_v53, %v1071_v53  ;;  %v1069_v58 = vadd.f32 %v944_v55, %v674_v54  ;;  %v679_v59 = vadd.f32 %v1555_v56, %v1900_v39  ;;  %v1589_v60 = vpop.f32.mrf.mxu1 }
  0xdf   : > { %v556_v61 = vpop.f32.mrf.mxu0 }
  0xe0   : > { %1232 = vst.msk [vmem:[%s1908_s12 + $0xc] sm:$0xf] %vm1228_vm2, %v1484_v57  ;;  %v1482_v62 = vpack.c.bf16 %v1069_v58, %v1069_v58  ;;  %v1074_v63 = vadd.f32 %v1589_v60, %v679_v59  ;;  %v677_v0 = vadd.f32 %v1900_v39, %v556_v61  ;;  %v957_v1 = vpop.f32.mrf.mxu1 }
  0xe1   : > { %v1556_v2 = vpop.f32.mrf.mxu0 }
  0xe2   : > { %1230 = vst.msk [vmem:[%s1908_s12 + $0x4] sm:$0xf] %vm1228_vm2, %v1482_v62  ;;  %v1487_v3 = vpack.c.bf16 %v1074_v63, %v1074_v63  ;;  %v1072_v4 = vadd.f32 %v957_v1, %v677_v0  ;;  %v680_v5 = vadd.f32 %v1556_v2, %v1900_v39  ;;  %v1590_v6 = vpop.f32.mrf.mxu1 }
  0xe3   : > { %v559_v8 = vpop.f32.mrf.mxu0 }
  0xe4   : > { %1235 = vst.msk [vmem:[%s1908_s12 + $0x18] sm:$0xf] %vm1228_vm2, %v1487_v3  ;;  %v1485_v9 = vpack.c.bf16 %v1072_v4, %v1072_v4  ;;  %v1075_v10 = vadd.f32 %v1590_v6, %v680_v5  ;;  %v678_v11 = vadd.f32 %v1900_v39, %v559_v8  ;;  %v960_v12 = vpop.f32.mrf.mxu1 }
  0xe5   : > { %v1559_v13 = vpop.f32.mrf.mxu0 }
  0xe6   : > { %1233 = vst.msk [vmem:[%s1908_s12 + $0x10] sm:$0xf] %vm1228_vm2, %v1485_v9  ;;  %v1488_v14 = vpack.c.bf16 %v1075_v10, %v1075_v10  ;;  %v1073_v15 = vadd.f32 %v960_v12, %v678_v11  ;;  %v683_v16 = vadd.f32 %v1559_v13, %v1900_v39  ;;  %v1593_v17 = vpop.f32.mrf.mxu1 }
  0xe7   : > { %v572_v18 = vpop.f32.mrf.mxu0 }
  0xe8   : > { %1236 = vst.msk [vmem:[%s1908_s12 + $0x1c] sm:$0xf] %vm1228_vm2, %v1488_v14  ;;  %v1486_v19 = vpack.c.bf16 %v1073_v15, %v1073_v15  ;;  %v1078_v20 = vadd.f32 %v1593_v17, %v683_v16  ;;  %v681_v21 = vadd.f32 %v1900_v39, %v572_v18  ;;  %v973_v22 = vpop.f32.mrf.mxu1 }
  0xe9   : > { %v1560_v23 = vpop.f32.mrf.mxu0 }
  0xea   : > { %1234 = vst.msk [vmem:[%s1908_s12 + $0x14] sm:$0xf] %vm1228_vm2, %v1486_v19  ;;  %v1491_v24 = vpack.c.bf16 %v1078_v20, %v1078_v20  ;;  %v1076_v25 = vadd.f32 %v973_v22, %v681_v21  ;;  %v684_v26 = vadd.f32 %v1560_v23, %v1900_v39  ;;  %v1594_v27 = vpop.f32.mrf.mxu1 }
  0xeb   : > { %v575_v28 = vpop.f32.mrf.mxu0 }
  0xec   : > { %1239 = vst.msk [vmem:[%s1908_s12 + $0x28] sm:$0xf] %vm1228_vm2, %v1491_v24  ;;  %v1489_v29 = vpack.c.bf16 %v1076_v25, %v1076_v25  ;;  %v1079_v30 = vadd.f32 %v1594_v27, %v684_v26  ;;  %v682_v31 = vadd.f32 %v1900_v39, %v575_v28  ;;  %v976_v32 = vpop.f32.mrf.mxu1 }
  0xed   : > { %v1563_v33 = vpop.f32.mrf.mxu0 }
  0xee   : > { %1237 = vst.msk [vmem:[%s1908_s12 + $0x20] sm:$0xf] %vm1228_vm2, %v1489_v29  ;;  %v1492_v34 = vpack.c.bf16 %v1079_v30, %v1079_v30  ;;  %v1077_v35 = vadd.f32 %v976_v32, %v682_v31  ;;  %v687_v36 = vadd.f32 %v1563_v33, %v1900_v39  ;;  %v1597_v37 = vpop.f32.mrf.mxu1 }
  0xef   : > { %v588_v38 = vpop.f32.mrf.mxu0 }
  0xf0   : > { %1240 = vst.msk [vmem:[%s1908_s12 + $0x2c] sm:$0xf] %vm1228_vm2, %v1492_v34  ;;  %v1490_v40 = vpack.c.bf16 %v1077_v35, %v1077_v35  ;;  %v1082_v41 = vadd.f32 %v1597_v37, %v687_v36  ;;  %v685_v42 = vadd.f32 %v1900_v39, %v588_v38  ;;  %v989_v43 = vpop.f32.mrf.mxu1 }
  0xf1   : > { %v1564_v44 = vpop.f32.mrf.mxu0 }
  0xf2   : > { %1238 = vst.msk [vmem:[%s1908_s12 + $0x24] sm:$0xf] %vm1228_vm2, %v1490_v40  ;;  %v1495_v7 = vpack.c.bf16 %v1082_v41, %v1082_v41  ;;  %v1080_v45 = vadd.f32 %v989_v43, %v685_v42  ;;  %v688_v46 = vadd.f32 %v1564_v44, %v1900_v39  ;;  %v1598_v47 = vpop.f32.mrf.mxu1 }
  0xf3   : > { %v591_v48 = vpop.f32.mrf.mxu0 }
  0xf4   : > { %1243 = vst.msk [vmem:[%s1908_s12 + $0x38] sm:$0xf] %vm1228_vm2, %v1495_v7  ;;  %v1493_v49 = vpack.c.bf16 %v1080_v45, %v1080_v45  ;;  %v1083_v50 = vadd.f32 %v1598_v47, %v688_v46  ;;  %v686_v51 = vadd.f32 %v1900_v39, %v591_v48  ;;  %v992_v52 = vpop.f32.mrf.mxu1 }
  0xf5   : > { %v1567_v53 = vpop.f32.mrf.mxu0 }
  0xf6   : > { %1241 = vst.msk [vmem:[%s1908_s12 + $0x30] sm:$0xf] %vm1228_vm2, %v1493_v49  ;;  %v1496_v54 = vpack.c.bf16 %v1083_v50, %v1083_v50  ;;  %v1081_v55 = vadd.f32 %v992_v52, %v686_v51  ;;  %v691_v56 = vadd.f32 %v1567_v53, %v1900_v39  ;;  %v1601_v57 = vpop.f32.mrf.mxu1 }
  0xf7   : > { %v604_v58 = vpop.f32.mrf.mxu0 }
  0xf8   : > { %1244 = vst.msk [vmem:[%s1908_s12 + $0x3c] sm:$0xf] %vm1228_vm2, %v1496_v54  ;;  %v1494_v59 = vpack.c.bf16 %v1081_v55, %v1081_v55  ;;  %v1086_v60 = vadd.f32 %v1601_v57, %v691_v56  ;;  %v689_v61 = vadd.f32 %v1900_v39, %v604_v58  ;;  %v1005_v62 = vpop.f32.mrf.mxu1 }
  0xf9   : > { %v1568_v63 = vpop.f32.mrf.mxu0 }
  0xfa   : > { %1242 = vst.msk [vmem:[%s1908_s12 + $0x34] sm:$0xf] %vm1228_vm2, %v1494_v59  ;;  %v1499_v0 = vpack.c.bf16 %v1086_v60, %v1086_v60  ;;  %v1084_v1 = vadd.f32 %v1005_v62, %v689_v61  ;;  %v692_v2 = vadd.f32 %v1568_v63, %v1900_v39  ;;  %v1602_v3 = vpop.f32.mrf.mxu1 }
  0xfb   : > { %v607_v4 = vpop.f32.mrf.mxu0 }
  0xfc   : > { %1247 = vst.msk [vmem:[%s1908_s12 + $0x48] sm:$0xf] %vm1228_vm2, %v1499_v0  ;;  %v1497_v5 = vpack.c.bf16 %v1084_v1, %v1084_v1  ;;  %v1087_v6 = vadd.f32 %v1602_v3, %v692_v2  ;;  %v690_v8 = vadd.f32 %v1900_v39, %v607_v4  ;;  %v1008_v9 = vpop.f32.mrf.mxu1 }
  0xfd   : > { %v1571_v10 = vpop.f32.mrf.mxu0 }
  0xfe   : > { %1245 = vst.msk [vmem:[%s1908_s12 + $0x40] sm:$0xf] %vm1228_vm2, %v1497_v5  ;;  %v1500_v11 = vpack.c.bf16 %v1087_v6, %v1087_v6  ;;  %v1085_v12 = vadd.f32 %v1008_v9, %v690_v8  ;;  %v695_v13 = vadd.f32 %v1571_v10, %v1900_v39  ;;  %v1605_v14 = vpop.f32.mrf.mxu1 }
  0xff   : > { %v620_v15 = vpop.f32.mrf.mxu0 }
 0x100   : > { %1248 = vst.msk [vmem:[%s1908_s12 + $0x4c] sm:$0xf] %vm1228_vm2, %v1500_v11  ;;  %v1498_v16 = vpack.c.bf16 %v1085_v12, %v1085_v12  ;;  %v1090_v17 = vadd.f32 %v1605_v14, %v695_v13  ;;  %v693_v18 = vadd.f32 %v1900_v39, %v620_v15  ;;  %v1021_v19 = vpop.f32.mrf.mxu1 }
 0x101   : > { %v1572_v20 = vpop.f32.mrf.mxu0 }
 0x102   : > { %1246 = vst.msk [vmem:[%s1908_s12 + $0x44] sm:$0xf] %vm1228_vm2, %v1498_v16  ;;  %v1503_v21 = vpack.c.bf16 %v1090_v17, %v1090_v17  ;;  %v1088_v22 = vadd.f32 %v1021_v19, %v693_v18  ;;  %v696_v23 = vadd.f32 %v1572_v20, %v1900_v39  ;;  %v1606_v24 = vpop.f32.mrf.mxu1 }
 0x103   : > { %v623_v25 = vpop.f32.mrf.mxu0 }
 0x104   : > { %1251 = vst.msk [vmem:[%s1908_s12 + $0x58] sm:$0xf] %vm1228_vm2, %v1503_v21  ;;  %v1501_v26 = vpack.c.bf16 %v1088_v22, %v1088_v22  ;;  %v1091_v27 = vadd.f32 %v1606_v24, %v696_v23  ;;  %v694_v28 = vadd.f32 %v1900_v39, %v623_v25  ;;  %v1024_v29 = vpop.f32.mrf.mxu1 }
 0x105   : > { %v1575_v30 = vpop.f32.mrf.mxu0 }
 0x106   : > { %1249 = vst.msk [vmem:[%s1908_s12 + $0x50] sm:$0xf] %vm1228_vm2, %v1501_v26  ;;  %v1504_v31 = vpack.c.bf16 %v1091_v27, %v1091_v27  ;;  %v1089_v32 = vadd.f32 %v1024_v29, %v694_v28  ;;  %v699_v33 = vadd.f32 %v1575_v30, %v1900_v39  ;;  %v1609_v34 = vpop.f32.mrf.mxu1 }
 0x107   : > { %v636_v35 = vpop.f32.mrf.mxu0 }
 0x108   : > { %1252 = vst.msk [vmem:[%s1908_s12 + $0x5c] sm:$0xf] %vm1228_vm2, %v1504_v31  ;;  %v1502_v36 = vpack.c.bf16 %v1089_v32, %v1089_v32  ;;  %v1094_v37 = vadd.f32 %v1609_v34, %v699_v33  ;;  %v697_v38 = vadd.f32 %v1900_v39, %v636_v35  ;;  %v1037_v40 = vpop.f32.mrf.mxu1 }
 0x109   : > { %v1576_v41 = vpop.f32.mrf.mxu0 }
 0x10a   : > { %1250 = vst.msk [vmem:[%s1908_s12 + $0x54] sm:$0xf] %vm1228_vm2, %v1502_v36  ;;  %v1507_v42 = vpack.c.bf16 %v1094_v37, %v1094_v37  ;;  %v1092_v43 = vadd.f32 %v1037_v40, %v697_v38  ;;  %v700_v44 = vadd.f32 %v1576_v41, %v1900_v39  ;;  %v1610_v7 = vpop.f32.mrf.mxu1 }
 0x10b   : > { %v639_v45 = vpop.f32.mrf.mxu0 }
 0x10c   : > { %1255 = vst.msk [vmem:[%s1908_s12 + $0x68] sm:$0xf] %vm1228_vm2, %v1507_v42  ;;  %v1505_v46 = vpack.c.bf16 %v1092_v43, %v1092_v43  ;;  %v1095_v47 = vadd.f32 %v1610_v7, %v700_v44  ;;  %v698_v48 = vadd.f32 %v1900_v39, %v639_v45  ;;  %v1040_v49 = vpop.f32.mrf.mxu1 }
 0x10d   : > { %v1579_v50 = vpop.f32.mrf.mxu0 }
 0x10e   : > { %1253 = vst.msk [vmem:[%s1908_s12 + $0x60] sm:$0xf] %vm1228_vm2, %v1505_v46  ;;  %v1508_v51 = vpack.c.bf16 %v1095_v47, %v1095_v47  ;;  %v1093_v52 = vadd.f32 %v1040_v49, %v698_v48  ;;  %v703_v53 = vadd.f32 %v1579_v50, %v1900_v39  ;;  %v1613_v54 = vpop.f32.mrf.mxu1 }
 0x10f   : > { %v652_v55 = vpop.f32.mrf.mxu0 }
 0x110   : > { %1256 = vst.msk [vmem:[%s1908_s12 + $0x6c] sm:$0xf] %vm1228_vm2, %v1508_v51  ;;  %v1506_v56 = vpack.c.bf16 %v1093_v52, %v1093_v52  ;;  %v1098_v57 = vadd.f32 %v1613_v54, %v703_v53  ;;  %v701_v58 = vadd.f32 %v1900_v39, %v652_v55  ;;  %v1053_v59 = vpop.f32.mrf.mxu1 }
 0x111   : > { %v1580_v60 = vpop.f32.mrf.mxu0 }
 0x112   : > { %1254 = vst.msk [vmem:[%s1908_s12 + $0x64] sm:$0xf] %vm1228_vm2, %v1506_v56  ;;  %v1511_v61 = vpack.c.bf16 %v1098_v57, %v1098_v57  ;;  %v1096_v62 = vadd.f32 %v1053_v59, %v701_v58  ;;  %v704_v63 = vadd.f32 %v1580_v60, %v1900_v39  ;;  %v1614_v0 = vpop.f32.mrf.mxu1 }
 0x113   : > { %v655_v1 = vpop.f32.mrf.mxu0 }
 0x114   : > { %1259 = vst.msk [vmem:[%s1908_s12 + $0x78] sm:$0xf] %vm1228_vm2, %v1511_v61  ;;  %v1509_v2 = vpack.c.bf16 %v1096_v62, %v1096_v62  ;;  %v1099_v3 = vadd.f32 %v1614_v0, %v704_v63  ;;  %v702_v4 = vadd.f32 %v1900_v39, %v655_v1  ;;  %v1056_v5 = vpop.f32.mrf.mxu1 }
 0x116   : > { %1257 = vst.msk [vmem:[%s1908_s12 + $0x70] sm:$0xf] %vm1228_vm2, %v1509_v2  ;;  %v1512_v6 = vpack.c.bf16 %v1099_v3, %v1099_v3  ;;  %v1097_v8 = vadd.f32 %v1056_v5, %v702_v4 }
 0x118   : > { %1260 = vst.msk [vmem:[%s1908_s12 + $0x7c] sm:$0xf] %vm1228_vm2, %v1512_v6  ;;  %v1510_v9 = vpack.c.bf16 %v1097_v8, %v1097_v8 }
 0x11a   : > { %1258 = vst.msk [vmem:[%s1908_s12 + $0x74] sm:$0xf] %vm1228_vm2, %v1510_v9 }
 0x11b PF: > { %s15_s20 = sadd.s32 1, %s1666_s20   ;;  %s2019_s18 = smov %s1662_s19 }
 0x11c   : > { %p12_p5 = scmp.ge.s32.totalorder %s15_s20, 4   ;;  %s2020_s19 = smov %s2022_s21 }
 0x11e   :  { %14 = sbr.rel (!%p12_p5) target bundleno = 2 (0x2), region = 73 }

// kernel: _lambda_.7
= control target key start
LH: loop header
LB: loop body
LE: loop exit
PB: predicated region body
PF: predicated region fallthrough
CT: control target
= control target key end

     0   :  { %s2005_s25 = smov 0   ;;  %s2007_s26 = smov 0   ;;  %s2214_s0 = inlined_call_operand.vmem [shape: bf16[2,64,12], index: 0, kind: input, shape index: {}]   ;;  %s2215_s1 = inlined_call_operand.vmem [shape: bf16[2,64,12], index: 1, kind: input, shape index: {}]   ;;  %s2216_s2 = inlined_call_operand.vmem [shape: bf16[2,64,8], index: 2, kind: input, shape index: {}]   ;;  %s2217_s3 = inlined_call_operand.vmem [shape: bf16[2,64,8], index: 3, kind: input, shape index: {}]   ;;  %s2218_s4 = inlined_call_operand.vmem [shape: bf16[12,8], index: 4, kind: input, shape index: {}]   ;;  %s2219_s5 = inlined_call_operand.vmem [shape: f32[1,8], index: 5, kind: input, shape index: {}]   ;;  %s2220_s6 = inlined_call_operand.vmem [shape: bf16[8,8], index: 6, kind: input, shape index: {}]   ;;  %s2221_s7 = inlined_call_operand.vmem [shape: f32[1,8], index: 7, kind: input, shape index: {}]   ;;  %s2222_s8 = inlined_call_operand.vmem [shape: bf16[8,16], index: 8, kind: input, shape index: {}]   ;;  %s2223_s9 = inlined_call_operand.vmem [shape: bf16[8,16], index: 9, kind: input, shape index: {}]   ;;  %s2224_s10 = inlined_call_operand.vmem [shape: bf16[8,16], index: 10, kind: input, shape index: {}]   ;;  %s2225_s11 = inlined_call_operand.vmem [shape: bf16[8,16], index: 11, kind: input, shape index: {}]   ;;  %s2226_s12 = inlined_call_operand.vmem [shape: f32[1,16], index: 12, kind: input, shape index: {}]   ;;  %s2227_s13 = inlined_call_operand.vmem [shape: bf16[2,64,16], index: 13, kind: output, shape index: {}]  }
   0x1   :  { %s2009_s27 = smov 0  }
   0x2 LB: > { %s35_s28 = sadd.s32 1, %s1928_s26  ;;  %p1670_p0 = scmp.ge.s32.totalorder %s1932_s27, 1  ;;  %s1932_s27 = sphi %s2009_s27, %s23_s27   ;;  %s1928_s26 = sphi %s2007_s26, %s2229_s26   ;;  %s1924_s25 = sphi %s2005_s25, %s2228_s25  }
   0x3   : > { %p37_p1 = scmp.ge.s32.totalorder %s35_s28, 2  ;;  %p459_p2 = scmp.lt.s32.totalorder %s1932_s27, 3 }
   0x5   : > { %s2231_s28 = smov (%p37_p1, %s35_s28), 0  ;;  %p460_p3 = pnand %p1670_p0, %p459_p2 }
   0x6   : > { %p539_p4 = scmp.lt.s32.totalorder (!%p460_p3), %s1924_s25, 1 }
   0x7   : > { %463 = sbr.rel (%p460_p3) target bundleno = 457 (0x1c9), region = 72 }
   0xc   : > { %v1909_v0 = vld [vmem:[%s2218_s4] sm:$0x3f]   ;;  %vm652_vm0 = vcmask 1045504   ;;  %vm891_vm1 = vcmask 1043456   ;;  %s2233_s25 = smov (!%p539_p4, %s1924_s25), 1  ;;  %vm639_vm2 = vcmask 97280  }
   0xd   : > { %v850_v1 = vld [vmem:[%s2220_s6] sm:$0xf]  ;;  %1876 = vmatprep.subr.msk.bf16.mxu0 %vm652_vm0, %v1909_v0  ;;  %v654_v2 = vsel %vm652_vm0, %v1909_v0, 0  ;;  %1877 = vmatprep.subr.msk.bf16.mxu1 %vm652_vm0, %v1909_v0  ;;  %s2031_s16 = sshll.u32 %s2233_s25, 5  ;;  %v1934_v7 = vmov 0   ;;  %vm878_vm3 = vcmask 64512  }
   0xe   : > { %1797 = vmatpush3.bf16.msra.mxu0 %v654_v2  ;;  %1807 = vmatpush3.bf16.msra.mxu1 %v654_v2  ;;  %s2037_s19 = scalar_lea.vmem %s2214_s0, %s2031_s16  ;;  %s2043_s22 = scalar_lea.vmem %s2215_s1, %s2031_s16  ;;  %v893_v3 = vsel %vm891_vm1, %v850_v1, 0  ;;  %v1086_v48 = vld [vmem:[%s2222_s8] sm:$0xf]  ;;  %vm1516_vm4 = vcmask 125952  }
   0xf   : > { %1878 = vmatprep.subr.msk.bf16.mxu0 %vm891_vm1, %v850_v1  ;;  %1879 = vmatprep.subr.msk.bf16.mxu1 %vm891_vm1, %v850_v1  ;;  %v589_v4 = vld [vmem:[%s2037_s19] sm:$0xf]  ;;  %v590_v5 = vld [vmem:[%s2037_s19 + $0x4] sm:$0xf]  ;;  %v591_v12 = vld [vmem:[%s2037_s19 + $0x8] sm:$0xf]  ;;  %s2065_s25 = scalar_lea.vmem %s2216_s2, %s2031_s16  ;;  %s2077_s14 = scalar_lea.vmem %s2217_s3, %s2031_s16 }
  0x10   : > { %v721_v6 = vld [vmem:[%s2043_s22] sm:$0xf]  ;;  %v597_v8 = vmax.bf16 %v1934_v7, %v589_v4  ;;  %v598_v9 = vmax.bf16 %v1934_v7, %v590_v5  ;;  %v722_v10 = vld [vmem:[%s2043_s22 + $0x4] sm:$0xf]  ;;  %v592_v13 = vld [vmem:[%s2037_s19 + $0xc] sm:$0xf]  ;;  %v599_v15 = vmax.bf16 %v1934_v7, %v591_v12 }
  0x11   : > { %v729_v11 = vmax.bf16 %v1934_v7, %v721_v6  ;;  %v730_v14 = vmax.bf16 %v1934_v7, %v722_v10  ;;  %v600_v16 = vmax.bf16 %v1934_v7, %v592_v13  ;;  %v723_v17 = vld [vmem:[%s2043_s22 + $0x8] sm:$0xf]  ;;  %v724_v18 = vld [vmem:[%s2043_s22 + $0xc] sm:$0xf]  ;;  %v593_v19 = vld [vmem:[%s2037_s19 + $0x10] sm:$0xf] }
  0x12   : > { %v1682_v20 = vcombine.low %v597_v8, %v598_v9  ;;  %v731_v21 = vmax.bf16 %v1934_v7, %v723_v17  ;;  %v732_v22 = vmax.bf16 %v1934_v7, %v724_v18  ;;  %v594_v23 = vld [vmem:[%s2037_s19 + $0x14] sm:$0xf]  ;;  %v601_v24 = vmax.bf16 %v1934_v7, %v593_v19  ;;  %v725_v25 = vld [vmem:[%s2043_s22 + $0x10] sm:$0xf]  ;;  %v595_v31 = vld [vmem:[%s2037_s19 + $0x18] sm:$0xf] }
  0x13   : > { %v726_v26 = vld [vmem:[%s2043_s22 + $0x14] sm:$0xf]  ;;  %v1691_v27 = vcombine.low %v729_v11, %v730_v14  ;;  %v1683_v28 = vcombine.low %v599_v15, %v600_v16  ;;  %v602_v29 = vmax.bf16 %v1934_v7, %v594_v23  ;;  %v733_v30 = vmax.bf16 %v1934_v7, %v725_v25  ;;  %v596_v32 = vld [vmem:[%s2037_s19 + $0x1c] sm:$0xf]  ;;  %v727_v33 = vld [vmem:[%s2043_s22 + $0x18] sm:$0xf]  ;;  %s2187_s19 = scalar_lea.vmem %s2227_s13, %s2031_s16 }
  0x14   : > { %1798 = vmatprep.mubr.msk.bf16.mxu0 %vm639_vm2, %v1682_v20  ;;  %v1692_v34 = vcombine.low %v731_v21, %v732_v22  ;;  %v734_v35 = vmax.bf16 %v1934_v7, %v726_v26  ;;  %v603_v36 = vmax.bf16 %v1934_v7, %v595_v31  ;;  %v728_v37 = vld [vmem:[%s2043_s22 + $0x1c] sm:$0xf]  ;;  %v834_v38 = vld [vmem:[%s2065_s25] sm:$0xf]  ;;  %v835_v39 = vld [vmem:[%s2065_s25 + $0x4] sm:$0xf]  ;;  %v604_v41 = vmax.bf16 %v1934_v7, %v596_v32 }
  0x15   : > { %1808 = vmatprep.mubr.msk.bf16.mxu1 %vm639_vm2, %v1691_v27  ;;  %1799 = vmatmul.mubr.msk.bf16.vlgmr.msra.gmra.mxu0 %vm639_vm2, %v1683_v28  ;;  %v1684_v40 = vcombine.low %v601_v24, %v602_v29  ;;  %v735_v42 = vmax.bf16 %v1934_v7, %v727_v33  ;;  %v960_v43 = vld [vmem:[%s2077_s14] sm:$0xf]  ;;  %v961_v44 = vld [vmem:[%s2077_s14 + $0x4] sm:$0xf]  ;;  %v736_v46 = vmax.bf16 %v1934_v7, %v728_v37  ;;  %v836_v56 = vld [vmem:[%s2065_s25 + $0x8] sm:$0xf] }
  0x16   : > { %1809 = vmatmul.mubr.msk.bf16.vlgmr.msra.gmra.mxu1 %vm639_vm2, %v1692_v34  ;;  %1817 = vmatpush3.bf16.msra.mxu0 %v893_v3  ;;  %v1693_v45 = vcombine.low %v733_v30, %v734_v35  ;;  %v842_v47 = vmax.bf16 %v1934_v7, %v834_v38  ;;  %v843_v49 = vmax.bf16 %v1934_v7, %v835_v39  ;;  %v1193_v51 = vld [vmem:[%s2223_s9] sm:$0xf]  ;;  %v837_v57 = vld [vmem:[%s2065_s25 + $0xc] sm:$0xf]  ;;  %v962_v58 = vld [vmem:[%s2077_s14 + $0x8] sm:$0xf] }
  0x17   : > { %1827 = vmatpush3.bf16.msra.mxu1 %v893_v3  ;;  %1802 = vmatprep.mubr.msk.bf16.mxu0 %vm639_vm2, %v1684_v40  ;;  %v968_v50 = vmax.bf16 %v1934_v7, %v960_v43  ;;  %v969_v52 = vmax.bf16 %v1934_v7, %v961_v44  ;;  %v1685_v53 = vcombine.low %v603_v36, %v604_v41  ;;  %v963_v60 = vld [vmem:[%s2077_s14 + $0xc] sm:$0xf]  ;;  %v838_v61 = vld [vmem:[%s2065_s25 + $0x10] sm:$0xf]  ;;  %v839_v62 = vld [vmem:[%s2065_s25 + $0x14] sm:$0xf] }
  0x18   : > { %1812 = vmatprep.mubr.msk.bf16.mxu1 %vm639_vm2, %v1693_v45  ;;  %1880 = vmatprep.subr.msk.bf16.mxu0 %vm891_vm1, %v1086_v48  ;;  %v1694_v54 = vcombine.low %v735_v42, %v736_v46  ;;  %v1700_v55 = vcombine.low %v842_v47, %v843_v49  ;;  %v964_v63 = vld [vmem:[%s2077_s14 + $0x10] sm:$0xf]  ;;  %v965_v0 = vld [vmem:[%s2077_s14 + $0x14] sm:$0xf]  ;;  %v844_v1 = vmax.bf16 %v1934_v7, %v836_v56  ;;  %v840_v13 = vld [vmem:[%s2065_s25 + $0x18] sm:$0xf] }
  0x19   : > { %1881 = vmatprep.subr.msk.bf16.mxu1 %vm891_vm1, %v1193_v51  ;;  %v1708_v59 = vcombine.low %v968_v50, %v969_v52  ;;  %v845_v2 = vmax.bf16 %v1934_v7, %v837_v57  ;;  %v970_v3 = vmax.bf16 %v1934_v7, %v962_v58  ;;  %v971_v4 = vmax.bf16 %v1934_v7, %v963_v60  ;;  %v841_v14 = vld [vmem:[%s2065_s25 + $0x1c] sm:$0xf]  ;;  %v966_v16 = vld [vmem:[%s2077_s14 + $0x18] sm:$0xf]  ;;  %v1294_v26 = vld [vmem:[%s2224_s10] sm:$0xf] }
  0x1a   : > { %v846_v5 = vmax.bf16 %v1934_v7, %v838_v61  ;;  %v847_v6 = vmax.bf16 %v1934_v7, %v839_v62  ;;  %v972_v8 = vmax.bf16 %v1934_v7, %v964_v63  ;;  %v973_v9 = vmax.bf16 %v1934_v7, %v965_v0  ;;  %v967_v17 = vld [vmem:[%s2077_s14 + $0x1c] sm:$0xf]  ;;  %v1681_v30 = vld [vmem:[%s2219_s5] ss:$0 sm:$0xff] }
  0x1b   : > { %v1701_v10 = vcombine.low %v844_v1, %v845_v2  ;;  %v1709_v11 = vcombine.low %v970_v3, %v971_v4  ;;  %v1100_v18 = vsel %vm891_vm1, %v1086_v48, 0  ;;  %v848_v19 = vmax.bf16 %v1934_v7, %v840_v13 }
  0x1c   : > { %v1702_v12 = vcombine.low %v846_v5, %v847_v6  ;;  %v1710_v15 = vcombine.low %v972_v8, %v973_v9  ;;  %v849_v20 = vmax.bf16 %v1934_v7, %v841_v14  ;;  %v974_v21 = vmax.bf16 %v1934_v7, %v966_v16 }
  0x1d   : > { %1803 = vmatmul.mubr.msk.bf16.gmra.mxu0 %vm639_vm2, %v1685_v53  ;;  %v975_v22 = vmax.bf16 %v1934_v7, %v967_v17  ;;  %v1207_v25 = vsel %vm891_vm1, %v1193_v51, 0  ;;  %v1395_v7 = vld [vmem:[%s2225_s11] sm:$0xf]  ;;  %v1308_v60 = vsel %vm891_vm1, %v1294_v26, 0 }
  0x1e   : > { %1813 = vmatmul.mubr.msk.bf16.gmra.mxu1 %vm639_vm2, %v1694_v54  ;;  %1818 = vmatprep.mubr.msk.bf16.mxu0 %vm878_vm3, %v1700_v55  ;;  %v1703_v23 = vcombine.low %v848_v19, %v849_v20  ;;  %v1409_v1 = vsel %vm891_vm1, %v1395_v7, 0 }
  0x1f   : > { %1828 = vmatprep.mubr.msk.bf16.mxu1 %vm878_vm3, %v1708_v59  ;;  %v1711_v24 = vcombine.low %v974_v21, %v975_v22 }
  0x25   : > { %1819 = vmatmul.mubr.msk.bf16.vlgmr.msra.gmra.mxu0 %vm878_vm3, %v1701_v10 }
  0x26   : > { %1829 = vmatmul.mubr.msk.bf16.vlgmr.msra.gmra.mxu1 %vm878_vm3, %v1709_v11  ;;  %1822 = vmatprep.mubr.msk.bf16.mxu0 %vm878_vm3, %v1702_v12 }
  0x27   : > { %1832 = vmatprep.mubr.msk.bf16.mxu1 %vm878_vm3, %v1710_v15  ;;  %1837 = vmatpush3.bf16.msra.mxu0 %v1100_v18 }
  0x28   : > { %1847 = vmatpush3.bf16.msra.mxu1 %v1207_v25  ;;  %1882 = vmatprep.subr.msk.bf16.mxu0 %vm891_vm1, %v1294_v26 }
  0x29   : > { %1883 = vmatprep.subr.msk.bf16.mxu1 %vm891_vm1, %v1395_v7 }
  0x2d   : > { %1823 = vmatmul.mubr.msk.bf16.gmra.mxu0 %vm878_vm3, %v1703_v23  ;;  %v1699_v23 = vld [vmem:[%s2221_s7] ss:$0 sm:$0xff] }
  0x2e   : > { %1833 = vmatmul.mubr.msk.bf16.gmra.mxu1 %vm878_vm3, %v1711_v24 }
  0xd5   : > { %v1800_v27 = vpop.f32.mrf.mxu0 }
  0xd6   : > { %v1810_v28 = vpop.f32.mrf.mxu1  ;;  %v699_v36 = vadd.f32 %v1800_v27, %v1681_v30 }
  0xd7   : > { %v690_v29 = vpop.f32.mrf.mxu0  ;;  %v812_v40 = vadd.f32 %v1810_v28, %v1681_v30 }
  0xd8   : > { %v803_v31 = vpop.f32.mrf.mxu1  ;;  %v691_v33 = vadd.f32 %v1681_v30, %v690_v29  ;;  %v1076_v50 = vmax.f32 %v699_v36, 0.0 }
  0xd9   : > { %v1801_v32 = vpop.f32.mrf.mxu0  ;;  %v804_v37 = vadd.f32 %v1681_v30, %v803_v31  ;;  %v1183_v54 = vmax.f32 %v812_v40, 0.0 }
  0xda   : > { %v702_v34 = vadd.f32 %v1801_v32, %v1681_v30  ;;  %v1811_v35 = vpop.f32.mrf.mxu1  ;;  %v1074_v46 = vmax.f32 %v691_v33, 0.0 }
  0xdb   : > { %v815_v38 = vadd.f32 %v1811_v35, %v1681_v30  ;;  %v693_v39 = vpop.f32.mrf.mxu0  ;;  %v1181_v51 = vmax.f32 %v804_v37, 0.0 }
  0xdc   : > { %v694_v41 = vadd.f32 %v1681_v30, %v693_v39  ;;  %v806_v42 = vpop.f32.mrf.mxu1  ;;  %v1077_v43 = vmax.f32 %v702_v34, 0.0 }
  0xdd   : > { %v807_v44 = vadd.f32 %v1681_v30, %v806_v42  ;;  %v1804_v45 = vpop.f32.mrf.mxu0  ;;  %v1184_v47 = vmax.f32 %v815_v38, 0.0 }
  0xde   : > { %v1075_v48 = vmax.f32 %v694_v41, 0.0  ;;  %v1814_v49 = vpop.f32.mrf.mxu1  ;;  %v1083_v57 = vpack.c.bf16 %v1077_v43, %v1076_v50  ;;  %v715_v2 = vadd.f32 %v1804_v45, %v1681_v30 }
  0xdf   : > { %v1182_v52 = vmax.f32 %v807_v44, 0.0  ;;  %v706_v53 = vpop.f32.mrf.mxu0  ;;  %v1190_v61 = vpack.c.bf16 %v1184_v47, %v1183_v54  ;;  %v828_v6 = vadd.f32 %v1814_v49, %v1681_v30 }
  0xe0   : > { %v1082_v55 = vpack.c.bf16 %v1075_v48, %v1074_v46  ;;  %v819_v56 = vpop.f32.mrf.mxu1  ;;  %v707_v62 = vadd.f32 %v1681_v30, %v706_v53  ;;  %v1080_v17 = vmax.f32 %v715_v2, 0.0 }
  0xe1   : > { %v1189_v58 = vpack.c.bf16 %v1182_v52, %v1181_v51  ;;  %v1805_v59 = vpop.f32.mrf.mxu0  ;;  %v820_v3 = vadd.f32 %v1681_v30, %v819_v56  ;;  %v1187_v21 = vmax.f32 %v828_v6, 0.0 }
  0xe2   : > { %v718_v63 = vadd.f32 %v1805_v59, %v1681_v30  ;;  %v1815_v0 = vpop.f32.mrf.mxu1  ;;  %1838 = vmatprep.mubr.msk.bf16.mxu0 %vm878_vm3, %v1082_v55  ;;  %v1078_v13 = vmax.f32 %v707_v62, 0.0 }
  0xe3   : > { %v831_v4 = vadd.f32 %v1815_v0, %v1681_v30  ;;  %1848 = vmatprep.mubr.msk.bf16.mxu1 %vm878_vm3, %v1189_v58  ;;  %v709_v5 = vpop.f32.mrf.mxu0  ;;  %1839 = vmatmul.mubr.msk.bf16.vlgmr.msra.gmra.mxu0 %vm878_vm3, %v1083_v57  ;;  %v1185_v18 = vmax.f32 %v820_v3, 0.0 }
  0xe4   : > { %v710_v8 = vadd.f32 %v1681_v30, %v709_v5  ;;  %v822_v9 = vpop.f32.mrf.mxu1  ;;  %1849 = vmatmul.mubr.msk.bf16.vlgmr.msra.gmra.mxu1 %vm878_vm3, %v1190_v61  ;;  %1857 = vmatpush3.bf16.msra.mxu0 %v1308_v60  ;;  %v1081_v10 = vmax.f32 %v718_v63, 0.0 }
  0xe5   : > { %v823_v11 = vadd.f32 %v1681_v30, %v822_v9  ;;  %v1820_v12 = vpop.f32.mrf.mxu0  ;;  %1867 = vmatpush3.bf16.msra.mxu1 %v1409_v1  ;;  %v1188_v14 = vmax.f32 %v831_v4, 0.0 }
  0xe6   : > { %v1079_v15 = vmax.f32 %v710_v8, 0.0  ;;  %v1830_v16 = vpop.f32.mrf.mxu1  ;;  %v1085_v25 = vpack.c.bf16 %v1081_v10, %v1080_v17  ;;  %v938_v31 = vadd.f32 %v1820_v12, %v1699_v23 }
  0xe7   : > { %v1186_v19 = vmax.f32 %v823_v11, 0.0  ;;  %v929_v20 = vpop.f32.mrf.mxu0  ;;  %v1192_v27 = vpack.c.bf16 %v1188_v14, %v1187_v21  ;;  %v1051_v35 = vadd.f32 %v1830_v16, %v1699_v23 }
  0xe8   : > { %v1084_v22 = vpack.c.bf16 %v1079_v15, %v1078_v13  ;;  %v1042_v24 = vpop.f32.mrf.mxu1  ;;  %v930_v28 = vadd.f32 %v1699_v23, %v929_v20  ;;  %v1284_v45 = vmax.f32 %v938_v31, 0.0 }
  0xe9   : > { %v1191_v26 = vpack.c.bf16 %v1186_v19, %v1185_v18  ;;  %v1821_v7 = vpop.f32.mrf.mxu0  ;;  %v1043_v32 = vadd.f32 %v1699_v23, %v1042_v24  ;;  %v1385_v49 = vmax.f32 %v1051_v35, 0.0  ;;  %v1720_v24 = vld [vmem:[%s2226_s12] ss:$0 sm:$0xff] }
  0xea   : > { %v941_v29 = vadd.f32 %v1821_v7, %v1699_v23  ;;  %v1831_v30 = vpop.f32.mrf.mxu1  ;;  %1842 = vmatprep.mubr.msk.bf16.mxu0 %vm878_vm3, %v1084_v22  ;;  %v1282_v41 = vmax.f32 %v930_v28, 0.0 }
  0xeb   : > { %v1054_v33 = vadd.f32 %v1831_v30, %v1699_v23  ;;  %1852 = vmatprep.mubr.msk.bf16.mxu1 %vm878_vm3, %v1191_v26  ;;  %v932_v34 = vpop.f32.mrf.mxu0  ;;  %1843 = vmatmul.mubr.msk.bf16.gmra.mxu0 %vm878_vm3, %v1085_v25  ;;  %v1383_v46 = vmax.f32 %v1043_v32, 0.0 }
  0xec   : > { %v933_v36 = vadd.f32 %v1699_v23, %v932_v34  ;;  %v1045_v37 = vpop.f32.mrf.mxu1  ;;  %1853 = vmatmul.mubr.msk.bf16.gmra.mxu1 %vm878_vm3, %v1192_v27  ;;  %v1285_v38 = vmax.f32 %v941_v29, 0.0 }
  0xed   : > { %v1046_v39 = vadd.f32 %v1699_v23, %v1045_v37  ;;  %v1824_v40 = vpop.f32.mrf.mxu0  ;;  %v1386_v42 = vmax.f32 %v1054_v33, 0.0 }
  0xee   : > { %v1283_v43 = vmax.f32 %v933_v36, 0.0  ;;  %v1834_v44 = vpop.f32.mrf.mxu1  ;;  %v1291_v52 = vpack.c.bf16 %v1285_v38, %v1284_v45  ;;  %v954_v59 = vadd.f32 %v1824_v40, %v1699_v23 }
  0xef   : > { %v1384_v47 = vmax.f32 %v1046_v39, 0.0  ;;  %v945_v48 = vpop.f32.mrf.mxu0  ;;  %v1392_v55 = vpack.c.bf16 %v1386_v42, %v1385_v49  ;;  %v1067_v63 = vadd.f32 %v1834_v44, %v1699_v23 }
  0xf0   : > { %v1290_v50 = vpack.c.bf16 %v1283_v43, %v1282_v41  ;;  %v1058_v51 = vpop.f32.mrf.mxu1  ;;  %v946_v56 = vadd.f32 %v1699_v23, %v945_v48  ;;  %v1288_v8 = vmax.f32 %v954_v59, 0.0 }
  0xf1   : > { %v1391_v53 = vpack.c.bf16 %v1384_v47, %v1383_v46  ;;  %v1825_v54 = vpop.f32.mrf.mxu0  ;;  %v1059_v60 = vadd.f32 %v1699_v23, %v1058_v51  ;;  %v1389_v11 = vmax.f32 %v1067_v63, 0.0 }
  0xf2   : > { %v957_v57 = vadd.f32 %v1825_v54, %v1699_v23  ;;  %v1835_v58 = vpop.f32.mrf.mxu1  ;;  %1858 = vmatprep.mubr.msk.bf16.mxu0 %vm878_vm3, %v1290_v50  ;;  %v1286_v4 = vmax.f32 %v946_v56, 0.0 }
  0xf3   : > { %v1070_v61 = vadd.f32 %v1835_v58, %v1699_v23  ;;  %1868 = vmatprep.mubr.msk.bf16.mxu1 %vm878_vm3, %v1391_v53  ;;  %v948_v62 = vpop.f32.mrf.mxu0  ;;  %1859 = vmatmul.mubr.msk.bf16.vlgmr.msra.gmra.mxu0 %vm878_vm3, %v1291_v52  ;;  %v1387_v9 = vmax.f32 %v1059_v60, 0.0 }
  0xf4   : > { %v949_v0 = vadd.f32 %v1699_v23, %v948_v62  ;;  %v1061_v1 = vpop.f32.mrf.mxu1  ;;  %1869 = vmatmul.mubr.msk.bf16.vlgmr.msra.gmra.mxu1 %vm878_vm3, %v1392_v55  ;;  %v1289_v2 = vmax.f32 %v957_v57, 0.0 }
  0xf5   : > { %v1062_v3 = vadd.f32 %v1699_v23, %v1061_v1  ;;  %v1390_v5 = vmax.f32 %v1070_v61, 0.0 }
  0xf6   : > { %v1287_v6 = vmax.f32 %v949_v0, 0.0  ;;  %v1293_v13 = vpack.c.bf16 %v1289_v2, %v1288_v8 }
  0xf7   : > { %v1388_v10 = vmax.f32 %v1062_v3, 0.0  ;;  %v1394_v15 = vpack.c.bf16 %v1390_v5, %v1389_v11 }
  0xf8   : > { %v1292_v12 = vpack.c.bf16 %v1287_v6, %v1286_v4 }
  0xf9   : > { %v1393_v14 = vpack.c.bf16 %v1388_v10, %v1387_v9 }
  0xfa   : > { %1862 = vmatprep.mubr.msk.bf16.mxu0 %vm878_vm3, %v1292_v12 }
  0xfb   : > { %1872 = vmatprep.mubr.msk.bf16.mxu1 %vm878_vm3, %v1393_v14  ;;  %1863 = vmatmul.mubr.msk.bf16.gmra.mxu0 %vm878_vm3, %v1293_v13 }
  0xfc   : > { %1873 = vmatmul.mubr.msk.bf16.gmra.mxu1 %vm878_vm3, %v1394_v15 }
 0x1a3   : > { %v1840_v16 = vpop.f32.mrf.mxu0 }
 0x1a4   : > { %v1850_v17 = vpop.f32.mrf.mxu1  ;;  %v1175_v27 = vadd.f32 %v1840_v16, %v1720_v24 }
 0x1a5   : > { %v1136_v18 = vpop.f32.mrf.mxu0 }
 0x1a6   : > { %v1243_v19 = vpop.f32.mrf.mxu1  ;;  %v1173_v30 = vadd.f32 %v1720_v24, %v1136_v18  ;;  %v1276_v33 = vadd.f32 %v1850_v17, %v1175_v27 }
 0x1a7   : > { %v1841_v20 = vpop.f32.mrf.mxu0 }
 0x1a8   : > { %v1851_v21 = vpop.f32.mrf.mxu1  ;;  %v1176_v34 = vadd.f32 %v1841_v20, %v1720_v24  ;;  %v1274_v37 = vadd.f32 %v1243_v19, %v1173_v30 }
 0x1a9   : > { %v1139_v22 = vpop.f32.mrf.mxu0 }
 0x1aa   : > { %v1246_v23 = vpop.f32.mrf.mxu1  ;;  %v1174_v38 = vadd.f32 %v1720_v24, %v1139_v22  ;;  %v1277_v43 = vadd.f32 %v1851_v21, %v1176_v34 }
 0x1ab   : > { %v1844_v25 = vpop.f32.mrf.mxu0 }
 0x1ac   : > { %v1854_v26 = vpop.f32.mrf.mxu1  ;;  %v1179_v41 = vadd.f32 %v1844_v25, %v1720_v24  ;;  %v1275_v49 = vadd.f32 %v1246_v23, %v1174_v38 }
 0x1ad   : > { %v1152_v7 = vpop.f32.mrf.mxu0 }
 0x1ae   : > { %v1259_v28 = vpop.f32.mrf.mxu1  ;;  %v1177_v47 = vadd.f32 %v1720_v24, %v1152_v7  ;;  %v1280_v54 = vadd.f32 %v1854_v26, %v1179_v41 }
 0x1af   : > { %v1845_v29 = vpop.f32.mrf.mxu0 }
 0x1b0   : > { %v1855_v31 = vpop.f32.mrf.mxu1  ;;  %v1180_v56 = vadd.f32 %v1845_v29, %v1720_v24  ;;  %v1278_v61 = vadd.f32 %v1259_v28, %v1177_v47 }
 0x1b1   : > { %v1155_v32 = vpop.f32.mrf.mxu0 }
 0x1b2   : > { %v1262_v35 = vpop.f32.mrf.mxu1  ;;  %v1178_v63 = vadd.f32 %v1720_v24, %v1155_v32  ;;  %v1281_v5 = vadd.f32 %v1855_v31, %v1180_v56 }
 0x1b3   : > { %v1860_v36 = vpop.f32.mrf.mxu0 }
 0x1b4   : > { %v1377_v39 = vadd.f32 %v1860_v36, %v1276_v33  ;;  %v1870_v40 = vpop.f32.mrf.mxu1  ;;  %v1279_v12 = vadd.f32 %v1262_v35, %v1178_v63 }
 0x1b5   : > { %v1344_v42 = vpop.f32.mrf.mxu0 }
 0x1b6   : > { %v1478_v44 = vadd.f32 %v1870_v40, %v1377_v39  ;;  %v1375_v45 = vadd.f32 %v1344_v42, %v1274_v37  ;;  %v1445_v46 = vpop.f32.mrf.mxu1 }
 0x1b7   : > { %v1861_v48 = vpop.f32.mrf.mxu0 }
 0x1b8   : > { %v1750_v50 = vpack.c.bf16 %v1478_v44, %v1478_v44  ;;  %v1476_v51 = vadd.f32 %v1445_v46, %v1375_v45  ;;  %v1378_v52 = vadd.f32 %v1861_v48, %v1277_v43  ;;  %v1871_v53 = vpop.f32.mrf.mxu1 }
 0x1b9   : > { %v1347_v55 = vpop.f32.mrf.mxu0 }
 0x1ba   : > { %1519 = vst.msk [vmem:[%s2187_s19 + $0x8] sm:$0xf] %vm1516_vm4, %v1750_v50  ;;  %v1748_v57 = vpack.c.bf16 %v1476_v51, %v1476_v51  ;;  %v1479_v58 = vadd.f32 %v1871_v53, %v1378_v52  ;;  %v1376_v59 = vadd.f32 %v1347_v55, %v1275_v49  ;;  %v1448_v60 = vpop.f32.mrf.mxu1 }
 0x1bb   : > { %v1864_v62 = vpop.f32.mrf.mxu0 }
 0x1bc   : > { %1517 = vst.msk [vmem:[%s2187_s19] sm:$0xf] %vm1516_vm4, %v1748_v57  ;;  %v1751_v0 = vpack.c.bf16 %v1479_v58, %v1479_v58  ;;  %v1477_v1 = vadd.f32 %v1448_v60, %v1376_v59  ;;  %v1381_v2 = vadd.f32 %v1864_v62, %v1280_v54  ;;  %v1874_v3 = vpop.f32.mrf.mxu1 }
 0x1bd   : > { %v1360_v4 = vpop.f32.mrf.mxu0 }
 0x1be   : > { %1520 = vst.msk [vmem:[%s2187_s19 + $0xc] sm:$0xf] %vm1516_vm4, %v1751_v0  ;;  %v1749_v6 = vpack.c.bf16 %v1477_v1, %v1477_v1  ;;  %v1482_v8 = vadd.f32 %v1874_v3, %v1381_v2  ;;  %v1379_v9 = vadd.f32 %v1360_v4, %v1278_v61  ;;  %v1461_v10 = vpop.f32.mrf.mxu1 }
 0x1bf   : > { %v1865_v11 = vpop.f32.mrf.mxu0 }
 0x1c0   : > { %1518 = vst.msk [vmem:[%s2187_s19 + $0x4] sm:$0xf] %vm1516_vm4, %v1749_v6  ;;  %v1754_v13 = vpack.c.bf16 %v1482_v8, %v1482_v8  ;;  %v1480_v14 = vadd.f32 %v1461_v10, %v1379_v9  ;;  %v1382_v15 = vadd.f32 %v1865_v11, %v1281_v5  ;;  %v1875_v16 = vpop.f32.mrf.mxu1 }
 0x1c1   : > { %v1363_v17 = vpop.f32.mrf.mxu0 }
 0x1c2   : > { %1523 = vst.msk [vmem:[%s2187_s19 + $0x18] sm:$0xf] %vm1516_vm4, %v1754_v13  ;;  %v1752_v18 = vpack.c.bf16 %v1480_v14, %v1480_v14  ;;  %v1483_v19 = vadd.f32 %v1875_v16, %v1382_v15  ;;  %v1380_v20 = vadd.f32 %v1363_v17, %v1279_v12  ;;  %v1464_v21 = vpop.f32.mrf.mxu1 }
 0x1c4   : > { %1521 = vst.msk [vmem:[%s2187_s19 + $0x10] sm:$0xf] %vm1516_vm4, %v1752_v18  ;;  %v1755_v22 = vpack.c.bf16 %v1483_v19, %v1483_v19  ;;  %v1481_v23 = vadd.f32 %v1464_v21, %v1380_v20 }
 0x1c6   : > { %1524 = vst.msk [vmem:[%s2187_s19 + $0x1c] sm:$0xf] %vm1516_vm4, %v1755_v22  ;;  %v1753_v24 = vpack.c.bf16 %v1481_v23, %v1481_v23 }
 0x1c8   : > { %1522 = vst.msk [vmem:[%s2187_s19 + $0x14] sm:$0xf] %vm1516_vm4, %v1753_v24 }
 0x1c9 PF: > { %s23_s27 = sadd.s32 1, %s1932_s27   ;;  %s2228_s25 = smov %s1928_s26 }
 0x1ca   : > { %p20_p5 = scmp.ge.s32.totalorder %s23_s27, 4   ;;  %s2229_s26 = smov %s2231_s28 }
 0x1cc   :  { %22 = sbr.rel (!%p20_p5) target bundleno = 2 (0x2), region = 111 }

// kernel: _lambda_.5
= control target key start
LH: loop header
LB: loop body
LE: loop exit
PB: predicated region body
PF: predicated region fallthrough
CT: control target
= control target key end

     0   :  { %s4000_s12 = smov 0   ;;  %s5597_s0 = inlined_call_operand.vmem [shape: bf16[2,18,18,4], index: 0, kind: input, shape index: {}]   ;;  %s5598_s1 = inlined_call_operand.vmem [shape: bf16[9,4,12], index: 1, kind: input, shape index: {}]   ;;  %s5599_s2 = inlined_call_operand.vmem [shape: f32[1,12], index: 2, kind: input, shape index: {}]   ;;  %s5600_s3 = inlined_call_operand.vmem [shape: bf16[2,256,12], index: 3, kind: output, shape index: {}]  }
   0x1 LB: > { %s3174_s13 = sadd.s32 4294967295, %s3978_s12   ;;  %p3178_p0 = scmp.ge.s32.totalorder %s3978_s12, 1  ;;  %s3978_s12 = sphi %s4000_s12, %s13_s12  }
   0x2   : > { %p137_p1 = scmp.lt.s32.totalorder %s3978_s12, 3 }
   0x4   : > { %p138_p2 = pnand %p3178_p0, %p137_p1 }
   0x6   : > { %141 = sbr.rel (%p138_p2) target bundleno = 526 (0x20e), region = 32 }
   0xb   : > { %v227_v0 = vld [vmem:[%s5598_s1] sm:$0x3]  ;;  %vm357_vm0 = vcmask 1041408   ;;  %p161_p3 = scmp.lt.s32.totalorder %s3174_s13, 1  ;;  %v3215_v2 = vld [vmem:[%s5598_s1 + $0x2] sm:$0x3] }
   0xc   : > { %3936 = vmatprep.subr.msk.bf16.mxu1 %vm357_vm0, %v227_v0  ;;  %3935 = vmatprep.subr.msk.bf16.mxu0 %vm357_vm0, %v227_v0  ;;  %v359_v1 = vsel %vm357_vm0, %v227_v0, 0  ;;  %v3264_v3 = vld [vmem:[%s5598_s1 + $0x4] sm:$0x3]  ;;  %v4027_v4 = vld [vmem:[%s5598_s1 + $0x6] sm:$0x3]  ;;  %vm308_vm1 = vcmask 31744  }
   0xd   : > { %3934 = vmatpush3.bf16.msra.mxu1 %v359_v1  ;;  %3628 = vmatpush3.bf16.msra.mxu0 %v359_v1  ;;  %s5829_s13 = smov (!%p161_p3, %s3174_s13), 1  ;;  %v4032_v5 = vld [vmem:[%s5598_s1 + $0x8] sm:$0x3]  ;;  %v4041_v6 = vsel %vm357_vm0, %v3215_v2, 0  ;;  %v1471_v7 = vsel %vm357_vm0, %v3264_v3, 0  ;;  %v4046_v8 = vsel %vm357_vm0, %v4027_v4, 0 }
   0xe   : > { %3937 = vmatprep.subr.msk.bf16.mxu1 %vm357_vm0, %v3215_v2  ;;  %3938 = vmatprep.subr.msk.bf16.mxu0 %vm357_vm0, %v3264_v3  ;;  %s3945_s24 = smul.u32 216, %s5829_s13  ;;  %v4050_v9 = vsel %vm357_vm0, %v4032_v5, 0  ;;  %vm560_vm2 = vsmask.f32 3328  ;;  %vm561_vm3 = vsmask.f32 7440 }
   0xf   : > { %vm1257_vm4 = vcmask 1042432   ;;  %vm1258_vm5 = vcmask 1046532   ;;  %vm4227_vm6 = vmor %vm560_vm2, %vm561_vm3  ;;  %v5649_v41 = vmov 0  ;;  %s3441_s11 = sshll.u32 %s5829_s13, 7  ;;  %vm3086_vm8 = vcmask 93184  }
  0x10   : > { %s4038_s27 = scalar_lea.vmem %s5597_s0, %s3945_s24  ;;  %vm4254_vm7 = vmor %vm1257_vm4, %vm1258_vm5  ;;  %s5447_s16 = scalar_lea.vmem %s5600_s3, %s3441_s11 }
  0x11   : > { %v4053_v10 = vld [vmem:[%s4038_s27] sm:$0xf]  ;;  %v4056_v11 = vld [vmem:[%s4038_s27 + $0x4] sm:$0xf]  ;;  %v4077_v22 = vld [vmem:[%s4038_s27 + $0xc] sm:$0xf] }
  0x12   : > { %v4059_v12 = vld [vmem:[%s4038_s27 + $0x60] sm:$0xf]  ;;  %v3182_v13 = vcombine.low %v4053_v10, %v4056_v11  ;;  %v564_v14 = vshrl.u32 %v4053_v10, 16  ;;  %v567_v15 = vshll.u32 %v4053_v10, 16  ;;  %v573_v16 = vshll.u32 %v4056_v11, 16 }
  0x13   : > { %v4067_v17 = vld [vmem:[%s4038_s27 + $0x64] sm:$0xf]  ;;  %v577_v18 = vshrl.u32 %v4056_v11, 16  ;;  %v3248_v19 = vrot.slane %v4053_v10, 9  ;;  %v1262_v20 = vrot.slane %v4056_v11, 5  ;;  %v756_v26 = vshrl.u32 %v4059_v12, 16 }
  0x14   : > { %v4074_v21 = vcombine.low %v4059_v12, %v4067_v17  ;;  %3629 = vmatprep.mubr.msk.bf16.mxu0 %vm308_vm1, %v3182_v13  ;;  %v566_v23 = vrot.slane %v564_v14, 4  ;;  %v569_v24 = vrot.slane %v567_v15, 5  ;;  %v4080_v25 = vrot.slane %v573_v16, 5  ;;  %v4084_v27 = vld [vmem:[%s4038_s27 + $0x10] sm:$0xf] }
  0x15   : > { %v579_v28 = vrot.slane %v577_v18, 4  ;;  %v4088_v29 = vrot.slane %v1262_v20, 4  ;;  %v759_v30 = vshll.u32 %v4059_v12, 16  ;;  %v765_v31 = vshll.u32 %v4067_v17, 16  ;;  %v4095_v32 = vld [vmem:[%s4038_s27 + $0x6c] sm:$0xf] }
  0x16   : > { %5637 = vst [vmem:[#allocation2_spill] sm:$0xff] %v4074_v21  ;;  %3645 = vmatprep.mubr.msk.bf16.mxu1 %vm308_vm1, %v4074_v21  ;;  %v570_v33 = vor.u32 %v569_v24, %v566_v23  ;;  %v4097_v34 = vrot.slane %v756_v26, 4  ;;  %v769_v35 = vshrl.u32 %v4067_v17, 16  ;;  %v4102_v37 = vld [vmem:[%s4038_s27 + $0x70] sm:$0xf]  ;;  %v4119_v45 = vcombine.low %v4077_v22, %v4084_v27 }
  0x17   : > { %v580_v38 = vor.u32 %v579_v28, %v4080_v25  ;;  %v4105_v39 = vrot.slane %v759_v30, 5  ;;  %v4107_v40 = vrot.slane %v765_v31, 5  ;;  %v4111_v42 = vld [vmem:[%s4038_s27 + $0x18] sm:$0xf]  ;;  %v588_v46 = vshrl.u32 %v4077_v22, 16 }
  0x18   : > { %v4113_v43 = vrot.slane %v570_v33, 4  ;;  %v4115_v44 = vrot.slane %v769_v35, 4  ;;  %5638 = vst [vmem:[#allocation3_spill] sm:$0xff] %v4119_v45  ;;  %v4123_v47 = vld [vmem:[%s4038_s27 + $0x1c] sm:$0xf]  ;;  %v591_v49 = vshll.u32 %v4077_v22, 16  ;;  %3630 = vmatmul.mubr.msk.bf16.vlgmr.msra.gmra.mxu0 %vm308_vm1, %v4119_v45  ;;  %v4139_v56 = vcombine.low %v4095_v32, %v4102_v37 }
  0x19   : > { %v4125_v48 = vrot.slane %v580_v38, 4  ;;  %v597_v50 = vshll.u32 %v4084_v27, 16  ;;  %v601_v51 = vshrl.u32 %v4084_v27, 16  ;;  %v4131_v52 = vld [vmem:[%s4038_s27 + $0x78] sm:$0xf]  ;;  %v590_v53 = vrot.slane %v588_v46, 4  ;;  %3696 = vmatpush3.bf16.msra.mxu0 %v1471_v7 }
  0x1a   : > { %v3249_v54 = vrot.slane %v4077_v22, 9  ;;  %v1269_v55 = vrot.slane %v4084_v27, 5  ;;  %5639 = vst [vmem:[#allocation4_spill] sm:$0xff] %v4139_v56  ;;  %v4142_v57 = vld [vmem:[%s4038_s27 + $0x7c] sm:$0xf]  ;;  %v593_v58 = vrot.slane %v591_v49, 5  ;;  %3646 = vmatmul.mubr.msk.bf16.vlgmr.msra.gmra.mxu1 %vm308_vm1, %v4139_v56  ;;  %v4160_v2 = vcombine.low %v4111_v42, %v4123_v47  ;;  %3940 = vmatprep.subr.msk.bf16.mxu0 %vm357_vm0, %v4032_v5 }
  0x1b   : > { %v4144_v59 = vrot.slane %v597_v50, 5  ;;  %v603_v60 = vrot.slane %v601_v51, 4  ;;  %v4148_v62 = vld [vmem:[%s4038_s27 + $0x24] sm:$0xf]  ;;  %v4163_v3 = vld [vmem:[%s4038_s27 + $0x28] sm:$0xf]  ;;  %3662 = vmatpush3.bf16.msra.mxu1 %v4041_v6  ;;  %v4182_v5 = vcombine.low %v4131_v52, %v4142_v57  ;;  %v4302_v6 = vsel %vm4254_vm7, %v3248_v19, %v1262_v20 }
  0x1c   : > { %v4152_v63 = vrot.slane %v1269_v55, 4  ;;  %5640 = vst [vmem:[#allocation5_spill] sm:$0xff] %v4160_v2  ;;  %v594_v7 = vor.u32 %v593_v58, %v590_v53  ;;  %v612_v14 = vshrl.u32 %v4111_v42, 16  ;;  %v4172_v16 = vld [vmem:[%s4038_s27 + $0x84] sm:$0xf]  ;;  %3633 = vmatprep.mubr.msk.bf16.mxu0 %vm308_vm1, %v4160_v2  ;;  %3939 = vmatprep.subr.msk.bf16.mxu1 %vm357_vm0, %v4027_v4  ;;  %v4198_v33 = vcombine.low %v4148_v62, %v4163_v3 }
  0x1d   : > { %v604_v13 = vor.u32 %v603_v60, %v4144_v59  ;;  %v4175_v18 = vld [vmem:[%s4038_s27 + $0x88] sm:$0xf]  ;;  %5641 = vst [vmem:[#allocation6_spill] sm:$0xff] %v4182_v5  ;;  %v4187_v26 = vld [vmem:[%s4038_s27 + $0x30] sm:$0xf]  ;;  %3649 = vmatprep.mubr.msk.bf16.mxu1 %vm308_vm1, %v4182_v5  ;;  %v5650_v41 = vsel %vm4254_vm7, 4294967295, %v5649_v41  ;;  %v576_v58 = vsel %vm4227_vm6, %v4113_v43, %v4080_v25  ;;  %v1270_v10 = vsel %vm4254_vm7, %v3249_v54, %v1269_v55 }
  0x1e   : > { %v4191_v28 = vrot.slane %v594_v7, 4  ;;  %5642 = vst [vmem:[#allocation7_spill] sm:$0xff] %v4198_v33  ;;  %v4201_v35 = vld [vmem:[%s4038_s27 + $0x34] sm:$0xf]  ;;  %v4210_v49 = vcombine.low %v4172_v16, %v4175_v18  ;;  %v4213_v50 = vld [vmem:[%s4038_s27 + $0x90] sm:$0xf] }
  0x1f   : > { %v4193_v30 = vrot.slane %v604_v13, 4  ;;  %v4220_v60 = vcombine.low %v4187_v26, %v4201_v35  ;;  %v4223_v7 = vld [vmem:[%s4038_s27 + $0x94] sm:$0xf]  ;;  %v5645_v13 = vmov 0  ;;  %v4241_v24 = vld [vmem:[%s4038_s27 + $0x3c] sm:$0xf] }
  0x20   : > { %5643 = vst [vmem:[#allocation8_spill] sm:$0xff] %v4210_v49  ;;  %v5646_v13 = vsel %vm4227_vm6, 4294967295, %v5645_v13  ;;  %3634 = vmatmul.mubr.msk.bf16.gmra.mxu0 %vm308_vm1, %v4198_v33  ;;  %v4238_v31 = vcombine.low %v4213_v50, %v4223_v7  ;;  %v4249_v61 = vld [vmem:[%s4038_s27 + $0x40] sm:$0xf]  ;;  %5651 = vst [vmem:[#allocation12_spill] sm:$0xff] %v5650_v41  ;;  %v600_v46 = vsel %vm4227_vm6, %v4191_v28, %v4144_v59  ;;  %v614_v19 = vrot.slane %v612_v14, 4 }
  0x21   : > { %5644 = vst [vmem:[#allocation9_spill] sm:$0xff] %v4220_v60  ;;  %5647 = vst [vmem:[#allocation10_spill] sm:$0xff] %v5646_v13  ;;  %3637 = vmatprep.mubr.msk.bf16.mxu0 %vm308_vm1, %v4220_v60  ;;  %v4262_v1 = vcombine.low %v4241_v24, %v4249_v61  ;;  %v4267_v53 = vld [vmem:[%s4038_s27 + $0x9c] sm:$0xf]  ;;  %v4270_v36 = vld [vmem:[%s4038_s27 + $0xa0] sm:$0xf] }
  0x22   : > { %5648 = vst [vmem:[#allocation11_spill] sm:$0xff] %v4238_v31  ;;  %3650 = vmatmul.mubr.msk.bf16.gmra.mxu1 %vm308_vm1, %v4210_v49  ;;  %v4280_v51 = vcombine.low %v4267_v53, %v4270_v36  ;;  %v4286_v4 = vld [vmem:[%s4038_s27 + $0x48] sm:$0xf]  ;;  %v4289_v38 = vld [vmem:[%s4038_s27 + $0x4c] sm:$0xf]  ;;  %v5657_v15 = vshll.u32 %v4111_v42, 16 }
  0x23   : > { %5652 = vst [vmem:[#allocation13_spill] sm:$0xff] %v4262_v1  ;;  %3653 = vmatprep.mubr.msk.bf16.mxu1 %vm308_vm1, %v4238_v31  ;;  %v4294_v23 = vld [vmem:[%s4038_s27 + $0xa8] sm:$0xf]  ;;  %v4310_v0 = vcombine.low %v4286_v4, %v4289_v38  ;;  %v4314_v11 = vld [vmem:[%s4038_s27 + $0xac] sm:$0xf]  ;;  %v5658_v49 = vshrl.u32 %v4123_v47, 16 }
  0x24   : > { %5653 = vst [vmem:[#allocation14_spill] sm:$0xff] %v4280_v51  ;;  %v4320_v20 = vcombine.low %v4294_v23, %v4314_v11  ;;  %v4324_v28 = vld [vmem:[%s4038_s27 + $0x54] sm:$0xf]  ;;  %v4327_v25 = vld [vmem:[%s4038_s27 + $0x58] sm:$0xf] }
  0x25   : > { %5654 = vst [vmem:[#allocation15_spill] sm:$0xff] %v4310_v0  ;;  %v4339_v43 = vcombine.low %v4324_v28, %v4327_v25  ;;  %v4345_v27 = vld [vmem:[%s4038_s27 + $0xb4] sm:$0xf]  ;;  %v4350_v22 = vld [vmem:[%s4038_s27 + $0xb8] sm:$0xf]  ;;  %v627_v33 = vrot.slane %v5658_v49, 4 }
  0x26   : > { %5655 = vst [vmem:[#allocation16_spill] sm:$0xff] %v4320_v20  ;;  %5656 = vst [vmem:[#allocation17_spill] sm:$0xff] %v4350_v22  ;;  %v174_v14 = vld [vmem:[%s4038_s27 + $0x8] sm:$0x1]  ;;  %v4363_v31 = vcombine.low %v4345_v27, %v4350_v22  ;;  %v177_v56 = vld [vmem:[%s4038_s27 + $0x14] sm:$0x1] }
  0x27   : > { %v583_v5 = vshll.u32 %v174_v14, 16  ;;  %v1265_v54 = vrot.slane %v174_v14, 5  ;;  %v607_v55 = vshll.u32 %v177_v56, 16  ;;  %v1272_v59 = vrot.slane %v177_v56, 5  ;;  %v180_v21 = vld [vmem:[%s4038_s27 + $0x20] sm:$0x1] }
  0x28   : > { %3638 = vmatmul.mubr.msk.bf16.gmra.mxu0 %vm308_vm1, %v4262_v1  ;;  %v617_v1 = vrot.slane %v5657_v15, 5 }
  0x29   : > { %3641 = vmatprep.mubr.msk.bf16.mxu0 %vm308_vm1, %v4310_v0  ;;  %v621_v0 = vshll.u32 %v4123_v47, 16  ;;  %v585_v60 = vrot.slane %v583_v5, 5  ;;  %v1266_v14 = vsel %vm4254_vm7, %v4088_v29, %v1265_v54  ;;  %v609_v2 = vrot.slane %v607_v55, 5 }
  0x2a   : > { %3654 = vmatmul.mubr.msk.bf16.gmra.mxu1 %vm308_vm1, %v4280_v51  ;;  %v631_v51 = vshll.u32 %v180_v21, 16  ;;  %v3265_v56 = vcombine.low %v4302_v6, %v1266_v14  ;;  %v1273_v15 = vsel %vm4254_vm7, %v4152_v63, %v1272_v59  ;;  %v618_v45 = vor.u32 %v617_v1, %v614_v19  ;;  %v183_v59 = vld [vmem:[%s4038_s27 + $0x2c] sm:$0x1] }
  0x2b   : > { %3657 = vmatprep.mubr.msk.bf16.mxu1 %vm308_vm1, %v4320_v20  ;;  %v586_v5 = vsel %vm4227_vm6, %v4125_v48, %v585_v60  ;;  %v4387_v20 = vcombine.low %v1270_v10, %v1273_v15  ;;  %v623_v29 = vrot.slane %v621_v0, 5  ;;  %v610_v6 = vsel %vm4227_vm6, %v4193_v30, %v609_v2 }
  0x2c   : > { %v633_v54 = vrot.slane %v631_v51, 5  ;;  %v3216_v22 = vcombine.low %v576_v58, %v586_v5  ;;  %v619_v49 = vrot.slane %v618_v45, 4  ;;  %v3250_v55 = vrot.slane %v4111_v42, 9 }
  0x2d   : > { %v4393_v14 = vcombine.low %v600_v46, %v610_v6  ;;  %v628_v63 = vor.u32 %v627_v33, %v623_v29  ;;  %v1276_v1 = vrot.slane %v4123_v47, 5  ;;  %v1279_v19 = vrot.slane %v180_v21, 5 }
  0x2e   : > { %v624_v48 = vsel %vm4227_vm6, %v619_v49, %v623_v29  ;;  %v5659_v0 = vshrl.u32 %v4148_v62, 16  ;;  %v5660_v45 = vshll.u32 %v4148_v62, 16  ;;  %v645_v42 = vshll.u32 %v4163_v3, 16 }
  0x2f   : > { %v629_v30 = vrot.slane %v628_v63, 4  ;;  %v1277_v21 = vsel %vm4254_vm7, %v3250_v55, %v1276_v1  ;;  %v1278_v47 = vrot.slane %v1276_v1, 4  ;;  %v5661_v33 = vshrl.u32 %v4163_v3, 16 }
  0x30   : > { %3642 = vmatmul.mubr.msk.bf16.gmra.mxu0 %vm308_vm1, %v4339_v43  ;;  %v638_v51 = vrot.slane %v5659_v0, 4  ;;  %v641_v2 = vrot.slane %v5660_v45, 5  ;;  %v647_v60 = vrot.slane %v645_v42, 5  ;;  %v655_v10 = vshll.u32 %v183_v59, 16  ;;  %v186_v0 = vld [vmem:[%s4038_s27 + $0x38] sm:$0x1] }
  0x31   : > { %3697 = vmatprep.mubr.msk.bf16.mxu0 %vm308_vm1, %v3265_v56  ;;  %v651_v46 = vrot.slane %v5661_v33, 4  ;;  %v3251_v15 = vrot.slane %v4148_v62, 9  ;;  %v634_v56 = vsel %vm4227_vm6, %v629_v30, %v633_v54  ;;  %v1280_v5 = vsel %vm4254_vm7, %v1278_v47, %v1279_v19 }
  0x32   : > { %3658 = vmatmul.mubr.msk.bf16.gmra.mxu1 %vm308_vm1, %v4363_v31  ;;  %v642_v58 = vor.u32 %v641_v2, %v638_v51  ;;  %v1283_v29 = vrot.slane %v4163_v3, 5  ;;  %v1286_v6 = vrot.slane %v183_v59, 5  ;;  %v4420_v49 = vcombine.low %v624_v48, %v634_v56  ;;  %v4453_v56 = vld [vmem:[%s5598_s1 + $0xa] sm:$0x3] }
  0x33   : > { %3663 = vmatprep.mubr.msk.bf16.mxu1 %vm308_vm1, %v3216_v22  ;;  %v4422_v55 = vcombine.low %v1277_v21, %v1280_v5  ;;  %v652_v1 = vor.u32 %v651_v46, %v647_v60  ;;  %v657_v51 = vrot.slane %v655_v10, 5  ;;  %v5662_v54 = vshrl.u32 %v4187_v26, 16  ;;  %v4442_v46 = vld [vmem:[%s5598_s1 + $0xc] sm:$0x3] }
  0x34   : > { %v643_v63 = vrot.slane %v642_v58, 4  ;;  %v1284_v62 = vsel %vm4254_vm7, %v3251_v15, %v1283_v29  ;;  %v1285_v22 = vrot.slane %v1283_v29, 4  ;;  %v5663_v59 = vshll.u32 %v4187_v26, 16 }
  0x35   : > { %v662_v45 = vrot.slane %v5662_v54, 4  ;;  %v653_v3 = vrot.slane %v652_v1, 4  ;;  %v669_v2 = vshll.u32 %v4201_v35, 16  ;;  %v5664_v30 = vshrl.u32 %v4201_v35, 16 }
  0x36   : > { %v648_v19 = vsel %vm4227_vm6, %v643_v63, %v647_v60  ;;  %v665_v48 = vrot.slane %v5663_v59, 5  ;;  %v1287_v42 = vsel %vm4254_vm7, %v1285_v22, %v1286_v6  ;;  %v679_v47 = vshll.u32 %v186_v0, 16  ;;  %v189_v63 = vld [vmem:[%s4038_s27 + $0x44] sm:$0x1] }
  0x37   : > { %v675_v21 = vrot.slane %v5664_v30, 4  ;;  %v3252_v33 = vrot.slane %v4187_v26, 9  ;;  %v658_v58 = vsel %vm4227_vm6, %v653_v3, %v657_v51  ;;  %v4448_v60 = vcombine.low %v1284_v62, %v1287_v42 }
  0x38   : > { %3698 = vmatmul.mubr.msk.bf16.vlgmr.msra.gmra.mxu0 %vm308_vm1, %v4387_v20  ;;  %v666_v10 = vor.u32 %v665_v48, %v662_v45  ;;  %v671_v15 = vrot.slane %v669_v2, 5  ;;  %v4458_v26 = vcombine.low %v648_v19, %v658_v58  ;;  %v681_v5 = vrot.slane %v679_v47, 5 }
  0x39   : > { %3764 = vmatpush3.bf16.msra.mxu0 %v4050_v9  ;;  %3701 = vmatprep.mubr.msk.bf16.mxu0 %vm308_vm1, %v4422_v55  ;;  %v1290_v29 = vrot.slane %v4201_v35, 5  ;;  %v1293_v6 = vrot.slane %v186_v0, 5  ;;  %v5665_v62 = vshrl.u32 %v4241_v24, 16  ;;  %v5666_v9 = vshll.u32 %v4241_v24, 16 }
  0x3a   : > { %3664 = vmatmul.mubr.msk.bf16.vlgmr.msra.gmra.mxu1 %vm308_vm1, %v4393_v14  ;;  %v667_v1 = vrot.slane %v666_v10, 4  ;;  %v676_v51 = vor.u32 %v675_v21, %v671_v15  ;;  %3942 = vmatprep.subr.msk.bf16.mxu0 %vm357_vm0, %v4442_v46  ;;  %v693_v45 = vshll.u32 %v4249_v61, 16  ;;  %v5667_v19 = vshrl.u32 %v4249_v61, 16 }
  0x3b   : > { %v686_v22 = vrot.slane %v5665_v62, 4  ;;  %v689_v54 = vrot.slane %v5666_v9, 5  ;;  %3730 = vmatpush3.bf16.msra.mxu1 %v4046_v8  ;;  %3667 = vmatprep.mubr.msk.bf16.mxu1 %vm308_vm1, %v4420_v49  ;;  %v1291_v35 = vsel %vm4254_vm7, %v3252_v33, %v1290_v29  ;;  %v1292_v0 = vrot.slane %v1290_v29, 4  ;;  %v192_v29 = vld [vmem:[%s4038_s27 + $0x50] sm:$0x1] }
  0x3c   : > { %v699_v3 = vrot.slane %v5667_v19, 4  ;;  %v672_v59 = vsel %vm4227_vm6, %v667_v1, %v671_v15  ;;  %v677_v48 = vrot.slane %v676_v51, 4  ;;  %v703_v42 = vshll.u32 %v189_v63, 16  ;;  %3941 = vmatprep.subr.msk.bf16.mxu1 %vm357_vm0, %v4453_v56 }
  0x3d   : > { %v690_v2 = vor.u32 %v689_v54, %v686_v22  ;;  %v1294_v8 = vsel %vm4254_vm7, %v1292_v0, %v1293_v6  ;;  %v695_v30 = vrot.slane %v693_v45, 5  ;;  %v3253_v21 = vrot.slane %v4241_v24, 9 }
  0x3e   : > { %v1297_v47 = vrot.slane %v4249_v61, 5  ;;  %v682_v33 = vsel %vm4227_vm6, %v677_v48, %v681_v5  ;;  %v4488_v58 = vcombine.low %v1291_v35, %v1294_v8  ;;  %v705_v15 = vrot.slane %v703_v42, 5 }
  0x3f   : > { %v691_v10 = vrot.slane %v690_v2, 4  ;;  %v4491_v1 = vcombine.low %v672_v59, %v682_v33  ;;  %v700_v51 = vor.u32 %v699_v3, %v695_v30  ;;  %v1300_v24 = vrot.slane %v189_v63, 5 }
  0x40   : > { %v1298_v62 = vsel %vm4254_vm7, %v3253_v21, %v1297_v47  ;;  %v1299_v6 = vrot.slane %v1297_v47, 4  ;;  %3702 = vmatmul.mubr.msk.bf16.gmra.mxu0 %vm308_vm1, %v4448_v60  ;;  %v5668_v5 = vshrl.u32 %v4286_v4, 16  ;;  %v5669_v9 = vshll.u32 %v4286_v4, 16  ;;  %v195_v47 = vld [vmem:[%s4038_s27 + $0x5c] sm:$0x1] }
  0x41   : > { %v696_v61 = vsel %vm4227_vm6, %v691_v10, %v695_v30  ;;  %3705 = vmatprep.mubr.msk.bf16.mxu0 %vm308_vm1, %v4488_v58  ;;  %v701_v35 = vrot.slane %v700_v51, 4  ;;  %v717_v0 = vshll.u32 %v4289_v38, 16  ;;  %v5670_v45 = vshrl.u32 %v4289_v38, 16 }
  0x42   : > { %v710_v22 = vrot.slane %v5668_v5, 4  ;;  %v713_v54 = vrot.slane %v5669_v9, 5  ;;  %v727_v3 = vshll.u32 %v192_v29, 16  ;;  %3668 = vmatmul.mubr.msk.bf16.gmra.mxu1 %vm308_vm1, %v4458_v26  ;;  %v1301_v63 = vsel %vm4254_vm7, %v1299_v6, %v1300_v24 }
  0x43   : > { %v723_v19 = vrot.slane %v5670_v45, 4  ;;  %v3254_v48 = vrot.slane %v4286_v4, 9  ;;  %v1304_v2 = vrot.slane %v4289_v38, 5  ;;  %3671 = vmatprep.mubr.msk.bf16.mxu1 %vm308_vm1, %v4491_v1  ;;  %v706_v42 = vsel %vm4227_vm6, %v701_v35, %v705_v15 }
  0x44   : > { %v714_v59 = vor.u32 %v713_v54, %v710_v22  ;;  %v4518_v8 = vcombine.low %v1298_v62, %v1301_v63  ;;  %v719_v30 = vrot.slane %v717_v0, 5  ;;  %v729_v21 = vrot.slane %v727_v3, 5 }
  0x45   : > { %v4521_v33 = vcombine.low %v696_v61, %v706_v42  ;;  %v1305_v51 = vsel %vm4254_vm7, %v3254_v48, %v1304_v2  ;;  %v1306_v4 = vrot.slane %v1304_v2, 4  ;;  %v1307_v38 = vrot.slane %v192_v29, 5  ;;  %v198_v2 = vld [vmem:[%s4038_s27 + $0x68] sm:$0x1] }
  0x46   : > { %v715_v10 = vrot.slane %v714_v59, 4  ;;  %v724_v6 = vor.u32 %v723_v19, %v719_v30  ;;  %v5671_v24 = vshrl.u32 %v4324_v28, 16  ;;  %v5672_v15 = vshll.u32 %v4324_v28, 16 }
  0x47   : > { %v741_v61 = vshll.u32 %v4327_v25, 16  ;;  %v5673_v9 = vshrl.u32 %v4327_v25, 16  ;;  %v751_v35 = vshll.u32 %v195_v47, 16  ;;  %v1308_v29 = vsel %vm4254_vm7, %v1306_v4, %v1307_v38 }
  0x48   : > { %v734_v5 = vrot.slane %v5671_v24, 4  ;;  %v737_v62 = vrot.slane %v5672_v15, 5  ;;  %v720_v22 = vsel %vm4227_vm6, %v715_v10, %v719_v30  ;;  %v725_v0 = vrot.slane %v724_v6, 4  ;;  %3706 = vmatmul.mubr.msk.bf16.gmra.mxu0 %vm308_vm1, %v4518_v8 }
  0x49   : > { %v747_v54 = vrot.slane %v5673_v9, 4  ;;  %v3255_v19 = vrot.slane %v4324_v28, 9  ;;  %v4539_v3 = vcombine.low %v1305_v51, %v1308_v29  ;;  %v743_v63 = vrot.slane %v741_v61, 5 }
  0x4a   : > { %v738_v45 = vor.u32 %v737_v62, %v734_v5  ;;  %v753_v59 = vrot.slane %v751_v35, 5  ;;  %v1311_v48 = vrot.slane %v4327_v25, 5  ;;  %v730_v42 = vsel %vm4227_vm6, %v725_v0, %v729_v21  ;;  %3672 = vmatmul.mubr.msk.bf16.gmra.mxu1 %vm308_vm1, %v4521_v33 }
  0x4b   : > { %v1314_v10 = vrot.slane %v195_v47, 5  ;;  %v5674_v4 = vor.u32 %v4105_v39, %v4097_v34  ;;  %v4550_v28 = vcombine.low %v720_v22, %v730_v42  ;;  %3709 = vmatprep.mubr.msk.bf16.mxu0 %vm308_vm1, %v4539_v3  ;;  %v748_v25 = vor.u32 %v747_v54, %v743_v63 }
  0x4c   : > { %v739_v30 = vrot.slane %v738_v45, 4  ;;  %v1312_v51 = vsel %vm4254_vm7, %v3255_v19, %v1311_v48  ;;  %v1313_v21 = vrot.slane %v1311_v48, 4  ;;  %v5675_v39 = vor.u32 %v4115_v44, %v4107_v40 }
  0x4d   : > { %v763_v6 = vrot.slane %v5674_v4, 4  ;;  %v775_v24 = vshll.u32 %v198_v2, 16  ;;  %3675 = vmatprep.mubr.msk.bf16.mxu1 %vm308_vm1, %v4550_v28  ;;  %v749_v5 = vrot.slane %v748_v25, 4  ;;  %v5676_v62 = vrot.slane %v4067_v17, 5 }
  0x4e   : > { %v744_v47 = vsel %vm4227_vm6, %v739_v30, %v743_v63  ;;  %v773_v38 = vrot.slane %v5675_v39, 4  ;;  %v1315_v15 = vsel %vm4254_vm7, %v1313_v21, %v1314_v10  ;;  %v5677_v22 = vrot.slane %v4059_v12, 9 }
  0x4f   : > { %v768_v34 = vsel %vm4227_vm6, %v763_v6, %v4107_v40  ;;  %v5678_v9 = vmov %v5676_v62  ;;  %v201_v40 = vld [vmem:[%s4038_s27 + $0x74] sm:$0x1]  ;;  %v4577_v44 = vcombine.low %v1312_v51, %v1315_v15  ;;  %v777_v35 = vrot.slane %v775_v24, 5 }
  0x50   : > { %v1319_v61 = vsel %vm4254_vm7, %v5677_v22, %v5676_v62  ;;  %v1320_v54 = vrot.slane %v5678_v9, 4  ;;  %v1321_v0 = vrot.slane %v198_v2, 5  ;;  %v5679_v29 = vshrl.u32 %v4095_v32, 16 }
  0x51   : > { %v754_v19 = vsel %vm4227_vm6, %v749_v5, %v753_v59  ;;  %v5680_v63 = vshll.u32 %v4095_v32, 16  ;;  %v789_v48 = vshll.u32 %v4102_v37, 16  ;;  %v5681_v17 = vshrl.u32 %v4102_v37, 16  ;;  %3710 = vmatmul.mubr.msk.bf16.gmra.mxu0 %vm308_vm1, %v4577_v44 }
  0x52   : > { %v782_v45 = vrot.slane %v5679_v29, 4  ;;  %v4588_v30 = vcombine.low %v744_v47, %v754_v19  ;;  %v778_v2 = vsel %vm4227_vm6, %v773_v38, %v777_v35  ;;  %v1322_v10 = vsel %vm4254_vm7, %v1320_v54, %v1321_v0  ;;  %v204_v38 = vld [vmem:[%s4038_s27 + $0x80] sm:$0x1] }
  0x53   : > { %v785_v12 = vrot.slane %v5680_v63, 5  ;;  %v795_v42 = vrot.slane %v5681_v17, 4  ;;  %v799_v4 = vshll.u32 %v201_v40, 16  ;;  %v4596_v59 = vcombine.low %v768_v34, %v778_v2 }
  0x54   : > { %v4598_v6 = vcombine.low %v1319_v61, %v1322_v10  ;;  %v791_v51 = vrot.slane %v789_v48, 5  ;;  %v3257_v47 = vrot.slane %v4095_v32, 9  ;;  %v1325_v39 = vrot.slane %v4102_v37, 5  ;;  %3676 = vmatmul.mubr.msk.bf16.gmra.mxu1 %vm308_vm1, %v4588_v30 }
  0x55   : > { %v786_v25 = vor.u32 %v785_v12, %v782_v45  ;;  %v801_v21 = vrot.slane %v799_v4, 5  ;;  %v1328_v24 = vrot.slane %v201_v40, 5  ;;  %v5682_v15 = vshrl.u32 %v4131_v52, 16  ;;  %3679 = vmatprep.mubr.msk.bf16.mxu1 %vm308_vm1, %v4596_v59  ;;  %v207_v4 = vld [vmem:[%s4038_s27 + $0x8c] sm:$0x1] }
  0x56   : > { %3713 = vmatprep.mubr.msk.bf16.mxu0 %vm308_vm1, %v4598_v6  ;;  %v796_v34 = vor.u32 %v795_v42, %v791_v51  ;;  %v5683_v22 = vshll.u32 %v4131_v52, 16  ;;  %v1326_v32 = vsel %vm4254_vm7, %v3257_v47, %v1325_v39  ;;  %v1327_v37 = vrot.slane %v1325_v39, 4 }
  0x57   : > { %v787_v5 = vrot.slane %v786_v25, 4  ;;  %v806_v62 = vrot.slane %v5682_v15, 4  ;;  %v813_v9 = vshll.u32 %v4142_v57, 16  ;;  %v5684_v54 = vshrl.u32 %v4142_v57, 16 }
  0x58   : > { %v809_v61 = vrot.slane %v5683_v22, 5  ;;  %v797_v0 = vrot.slane %v796_v34, 4  ;;  %v823_v45 = vshll.u32 %v204_v38, 16  ;;  %v1329_v19 = vsel %vm4254_vm7, %v1327_v37, %v1328_v24 }
  0x59   : > { %v819_v40 = vrot.slane %v5684_v54, 4  ;;  %v792_v35 = vsel %vm4227_vm6, %v787_v5, %v791_v51  ;;  %v815_v63 = vrot.slane %v813_v9, 5  ;;  %v3258_v12 = vrot.slane %v4131_v52, 9 }
  0x5a   : > { %v810_v29 = vor.u32 %v809_v61, %v806_v62  ;;  %v1332_v48 = vrot.slane %v4142_v57, 5  ;;  %v802_v17 = vsel %vm4227_vm6, %v797_v0, %v801_v21  ;;  %v4626_v42 = vcombine.low %v1326_v32, %v1329_v19 }
  0x5b   : > { %v825_v10 = vrot.slane %v823_v45, 5  ;;  %v4629_v25 = vcombine.low %v792_v35, %v802_v17  ;;  %v820_v51 = vor.u32 %v819_v40, %v815_v63  ;;  %v1335_v57 = vrot.slane %v204_v38, 5  ;;  %v210_v45 = vld [vmem:[%s4038_s27 + $0x98] sm:$0x1] }
  0x5c   : > { %v811_v2 = vrot.slane %v810_v29, 4  ;;  %v1333_v47 = vsel %vm4254_vm7, %v3258_v12, %v1332_v48  ;;  %v1334_v39 = vrot.slane %v1332_v48, 4  ;;  %3714 = vmatmul.mubr.msk.bf16.gmra.mxu0 %vm308_vm1, %v4626_v42  ;;  %v5685_v21 = vshrl.u32 %v4172_v16, 16 }
  0x5d   : > { %v5686_v5 = vshll.u32 %v4172_v16, 16  ;;  %v821_v15 = vrot.slane %v820_v51, 4  ;;  %v837_v62 = vshll.u32 %v4175_v18, 16  ;;  %v5687_v22 = vshrl.u32 %v4175_v18, 16  ;;  %3680 = vmatmul.mubr.msk.bf16.gmra.mxu1 %vm308_vm1, %v4629_v25 }
  0x5e   : > { %v816_v52 = vsel %vm4227_vm6, %v811_v2, %v815_v63  ;;  %v830_v24 = vrot.slane %v5685_v21, 4  ;;  %v847_v32 = vshll.u32 %v207_v4, 16  ;;  %v1336_v38 = vsel %vm4254_vm7, %v1334_v39, %v1335_v57 }
  0x5f   : > { %v833_v34 = vrot.slane %v5686_v5, 5  ;;  %v843_v61 = vrot.slane %v5687_v22, 4  ;;  %v3259_v9 = vrot.slane %v4172_v16, 9  ;;  %v1339_v54 = vrot.slane %v4175_v18, 5 }
  0x60   : > { %v826_v40 = vsel %vm4227_vm6, %v821_v15, %v825_v10  ;;  %v4652_v35 = vcombine.low %v1333_v47, %v1336_v38  ;;  %v839_v0 = vrot.slane %v837_v62, 5  ;;  %v849_v29 = vrot.slane %v847_v32, 5 }
  0x61   : > { %v834_v37 = vor.u32 %v833_v34, %v830_v24  ;;  %v4655_v19 = vcombine.low %v816_v52, %v826_v40  ;;  %v1340_v12 = vsel %vm4254_vm7, %v3259_v9, %v1339_v54  ;;  %v1341_v48 = vrot.slane %v1339_v54, 4  ;;  %v213_v9 = vld [vmem:[%s4038_s27 + $0xa4] sm:$0x1] }
  0x62   : > { %3717 = vmatprep.mubr.msk.bf16.mxu0 %vm308_vm1, %v4652_v35  ;;  %v844_v16 = vor.u32 %v843_v61, %v839_v0  ;;  %v1342_v18 = vrot.slane %v207_v4, 5  ;;  %v5688_v17 = vshrl.u32 %v4213_v50, 16  ;;  %v5689_v10 = vshll.u32 %v4213_v50, 16 }
  0x63   : > { %v835_v63 = vrot.slane %v834_v37, 4  ;;  %3683 = vmatprep.mubr.msk.bf16.mxu1 %vm308_vm1, %v4655_v19  ;;  %v861_v39 = vshll.u32 %v4223_v7, 16  ;;  %v5690_v52 = vshrl.u32 %v4223_v7, 16  ;;  %v871_v21 = vshll.u32 %v210_v45, 16 }
  0x64   : > { %v854_v2 = vrot.slane %v5688_v17, 4  ;;  %v857_v51 = vrot.slane %v5689_v10, 5  ;;  %v845_v4 = vrot.slane %v844_v16, 4  ;;  %v1343_v24 = vsel %vm4254_vm7, %v1341_v48, %v1342_v18 }
  0x65   : > { %v840_v47 = vsel %vm4227_vm6, %v835_v63, %v839_v0  ;;  %v867_v57 = vrot.slane %v5690_v52, 4  ;;  %v3260_v34 = vrot.slane %v4213_v50, 9  ;;  %v4675_v15 = vcombine.low %v1340_v12, %v1343_v24 }
  0x66   : > { %v858_v5 = vor.u32 %v857_v51, %v854_v2  ;;  %v863_v62 = vrot.slane %v861_v39, 5  ;;  %v873_v22 = vrot.slane %v871_v21, 5  ;;  %v1346_v61 = vrot.slane %v4223_v7, 5 }
  0x67   : > { %v850_v32 = vsel %vm4227_vm6, %v845_v4, %v849_v29  ;;  %v1349_v37 = vrot.slane %v210_v45, 5  ;;  %v5691_v54 = vshrl.u32 %v4267_v53, 16  ;;  %3718 = vmatmul.mubr.msk.bf16.gmra.mxu0 %vm308_vm1, %v4675_v15  ;;  %v5692_v29 = vshll.u32 %v4267_v53, 16 }
  0x68   : > { %v859_v38 = vrot.slane %v858_v5, 4  ;;  %v4683_v0 = vcombine.low %v840_v47, %v850_v32  ;;  %v868_v50 = vor.u32 %v867_v57, %v863_v62  ;;  %v1347_v63 = vsel %vm4254_vm7, %v3260_v34, %v1346_v61  ;;  %v216_v5 = vld [vmem:[%s4038_s27 + $0xb0] sm:$0x1] }
  0x69   : > { %v878_v40 = vrot.slane %v5691_v54, 4  ;;  %v1348_v12 = vrot.slane %v1346_v61, 4  ;;  %v881_v45 = vrot.slane %v5692_v29, 5  ;;  %v885_v48 = vshll.u32 %v4270_v36, 16 }
  0x6a   : > { %v864_v7 = vsel %vm4227_vm6, %v859_v38, %v863_v62  ;;  %v5693_v16 = vshrl.u32 %v4270_v36, 16  ;;  %3684 = vmatmul.mubr.msk.bf16.gmra.mxu1 %vm308_vm1, %v4683_v0  ;;  %v869_v17 = vrot.slane %v868_v50, 4  ;;  %v895_v10 = vshll.u32 %v213_v9, 16 }
  0x6b   : > { %v1350_v2 = vsel %vm4254_vm7, %v1348_v12, %v1349_v37  ;;  %v3261_v51 = vrot.slane %v4267_v53, 9  ;;  %v882_v39 = vor.u32 %v881_v45, %v878_v40  ;;  %v887_v52 = vrot.slane %v885_v48, 5 }
  0x6c   : > { %v891_v18 = vrot.slane %v5693_v16, 4  ;;  %v4701_v47 = vcombine.low %v1347_v63, %v1350_v2  ;;  %v1353_v57 = vrot.slane %v4270_v36, 5  ;;  %v874_v21 = vsel %vm4227_vm6, %v869_v17, %v873_v22 }
  0x6d   : > { %v897_v4 = vrot.slane %v895_v10, 5  ;;  %v1356_v24 = vrot.slane %v213_v9, 5  ;;  %v5694_v34 = vshrl.u32 %v4294_v23, 16  ;;  %v4709_v61 = vcombine.low %v864_v7, %v874_v21 }
  0x6e   : > { %3721 = vmatprep.mubr.msk.bf16.mxu0 %vm308_vm1, %v4701_v47  ;;  %v883_v53 = vrot.slane %v882_v39, 4  ;;  %v892_v32 = vor.u32 %v891_v18, %v887_v52  ;;  %v1354_v38 = vsel %vm4254_vm7, %v3261_v51, %v1353_v57  ;;  %v1355_v36 = vrot.slane %v1353_v57, 4  ;;  %v219_v51 = vld [vmem:[%s4038_s27 + $0xbc] sm:$0x1] }
  0x6f   : > { %v902_v62 = vrot.slane %v5694_v34, 4  ;;  %v5695_v37 = vshll.u32 %v4294_v23, 16  ;;  %v909_v9 = vshll.u32 %v4314_v11, 16  ;;  %v5696_v54 = vshrl.u32 %v4314_v11, 16  ;;  %3687 = vmatprep.mubr.msk.bf16.mxu1 %vm308_vm1, %v4709_v61 }
  0x70   : > { %v888_v50 = vsel %vm4227_vm6, %v883_v53, %v887_v52  ;;  %v893_v63 = vrot.slane %v892_v32, 4  ;;  %v919_v12 = vshll.u32 %v216_v5, 16  ;;  %v3262_v7 = vrot.slane %v4294_v23, 9 }
  0x71   : > { %v905_v22 = vrot.slane %v5695_v37, 5  ;;  %v915_v40 = vrot.slane %v5696_v54, 4  ;;  %v1357_v29 = vsel %vm4254_vm7, %v1355_v36, %v1356_v24  ;;  %v911_v48 = vrot.slane %v909_v9, 5 }
  0x72   : > { %v1360_v16 = vrot.slane %v4314_v11, 5  ;;  %v898_v18 = vsel %vm4227_vm6, %v893_v63, %v897_v4  ;;  %v4730_v17 = vcombine.low %v1354_v38, %v1357_v29  ;;  %v921_v2 = vrot.slane %v919_v12, 5 }
  0x73   : > { %v906_v45 = vor.u32 %v905_v22, %v902_v62  ;;  %v1363_v10 = vrot.slane %v216_v5, 5  ;;  %v4733_v39 = vcombine.low %v888_v50, %v898_v18  ;;  %v916_v57 = vor.u32 %v915_v40, %v911_v48  ;;  %v5699_v62 = vld [vmem:[#allocation17_spill] sm:$0xff] }
  0x74   : > { %v1361_v23 = vsel %vm4254_vm7, %v3262_v7, %v1360_v16  ;;  %3722 = vmatmul.mubr.msk.bf16.gmra.mxu0 %vm308_vm1, %v4730_v17  ;;  %v1362_v21 = vrot.slane %v1360_v16, 4  ;;  %v5697_v11 = vshrl.u32 %v4345_v27, 16  ;;  %v5698_v4 = vshll.u32 %v4345_v27, 16 }
  0x75   : > { %v907_v52 = vrot.slane %v906_v45, 4  ;;  %v933_v5 = vshll.u32 %v5699_v62, 16  ;;  %3688 = vmatmul.mubr.msk.bf16.gmra.mxu1 %vm308_vm1, %v4733_v39  ;;  %v917_v32 = vrot.slane %v916_v57, 4  ;;  %v5700_v38 = vshrl.u32 %v5699_v62, 16 }
  0x76   : > { %v926_v24 = vrot.slane %v5697_v11, 4  ;;  %v929_v34 = vrot.slane %v5698_v4, 5  ;;  %v943_v37 = vshll.u32 %v219_v51, 16  ;;  %v1364_v22 = vsel %vm4254_vm7, %v1362_v21, %v1363_v10  ;;  %v4777_v21 = vld [vmem:[%s4038_s27 + $0xc0] sm:$0xf] }
  0x77   : > { %v912_v53 = vsel %vm4227_vm6, %v907_v52, %v911_v48  ;;  %v939_v36 = vrot.slane %v5700_v38, 4  ;;  %v935_v54 = vrot.slane %v933_v5, 5  ;;  %v3263_v40 = vrot.slane %v4345_v27, 9  ;;  %v4780_v11 = vld [vmem:[%s4038_s27 + $0xc4] sm:$0xf]  ;;  %v5704_v5 = vld [vmem:[#allocation3_spill] sm:$0xff] }
  0x78   : > { %v930_v9 = vor.u32 %v929_v34, %v926_v24  ;;  %v922_v50 = vsel %vm4227_vm6, %v917_v32, %v921_v2  ;;  %v4755_v63 = vcombine.low %v1361_v23, %v1364_v22  ;;  %v945_v12 = vrot.slane %v943_v37, 5  ;;  %v222_v24 = vld [vmem:[%s4038_s27 + $0xc8] sm:$0x1] }
  0x79   : > { %v1367_v7 = vrot.slane %v5699_v62, 5  ;;  %v4758_v29 = vcombine.low %v912_v53, %v922_v50  ;;  %v940_v48 = vor.u32 %v939_v36, %v935_v54  ;;  %v1370_v16 = vrot.slane %v219_v51, 5  ;;  %v5710_v50 = vld [vmem:[#allocation15_spill] sm:$0xff] }
  0x7a   : > { %v931_v45 = vrot.slane %v930_v9, 4  ;;  %3725 = vmatprep.mubr.msk.bf16.mxu0 %vm308_vm1, %v4755_v63  ;;  %v3333_v4 = vrot.slane %v4777_v21, 9  ;;  %v2103_v34 = vrot.slane %v4780_v11, 5  ;;  %v2106_v62 = vrot.slane %v222_v24, 5  ;;  %v5706_v9 = vld [vmem:[#allocation5_spill] sm:$0xff] }
  0x7b   : > { %5701 = vst [vmem:[#allocation17_spill] sm:$0xff] %v4758_v29  ;;  %v1368_v27 = vsel %vm4254_vm7, %v3263_v40, %v1367_v7  ;;  %v1369_v18 = vrot.slane %v1367_v7, 4  ;;  %3691 = vmatprep.mubr.msk.bf16.mxu1 %vm308_vm1, %v4758_v29  ;;  %v941_v10 = vrot.slane %v940_v48, 4  ;;  %v2323_v37 = vsel %vm357_vm0, %v4442_v46, 0  ;;  %v5707_v46 = vld [vmem:[#allocation7_spill] sm:$0xff]  ;;  %v5709_v40 = vld [vmem:[#allocation13_spill] sm:$0xff] }
  0x7c   : > { %v936_v2 = vsel %vm4227_vm6, %v931_v45, %v935_v54  ;;  %v2104_v53 = vsel %vm4254_vm7, %v3333_v4, %v2103_v34  ;;  %v2105_v32 = vrot.slane %v2103_v34, 4  ;;  %v2117_v22 = vsel %vm357_vm0, %v4453_v56, 0  ;;  %v3389_v54 = vld [vmem:[%s5598_s1 + $0x10] sm:$0x3]  ;;  %v5708_v56 = vld [vmem:[#allocation9_spill] sm:$0xff]  ;;  %v5713_v45 = vld [vmem:[#allocation6_spill] sm:$0xff] }
  0x7d   : > { %v1371_v52 = vsel %vm4254_vm7, %v1369_v18, %v1370_v16  ;;  %v946_v51 = vsel %vm4227_vm6, %v941_v10, %v945_v12  ;;  %v5711_v12 = vld [vmem:[#allocation2_spill] sm:$0xff]  ;;  %v5712_v7 = vld [vmem:[#allocation4_spill] sm:$0xff]  ;;  %v1873_v48 = vshrl.u32 %v4777_v21, 16  ;;  %v1876_v16 = vshll.u32 %v4777_v21, 16  ;;  %v5715_v34 = vld [vmem:[#allocation11_spill] sm:$0xff] }
  0x7e   : > { %v4772_v57 = vcombine.low %v1368_v27, %v1371_v52  ;;  %v4774_v23 = vcombine.low %v936_v2, %v946_v51  ;;  %v2107_v38 = vsel %vm4254_vm7, %v2105_v32, %v2106_v62  ;;  %v1886_v27 = vshrl.u32 %v4780_v11, 16  ;;  %v5714_v2 = vld [vmem:[#allocation8_spill] sm:$0xff]  ;;  %v5716_v32 = vld [vmem:[#allocation14_spill] sm:$0xff] }
  0x7f   : > { %v4797_v36 = vcombine.low %v2104_v53, %v2107_v38  ;;  %v1882_v18 = vshll.u32 %v4780_v11, 16  ;;  %v1875_v10 = vrot.slane %v1873_v48, 4  ;;  %v1878_v52 = vrot.slane %v1876_v16, 5  ;;  %v5717_v48 = vld [vmem:[#allocation16_spill] sm:$0xff] }
  0x80   : > { %5702 = vst [vmem:[#allocation18_spill] sm:$0xff] %v4772_v57  ;;  %5703 = vst [vmem:[#allocation19_spill] sm:$0xff] %v4774_v23  ;;  %3726 = vmatmul.mubr.msk.bf16.gmra.mxu0 %vm308_vm1, %v4772_v57  ;;  %3692 = vmatmul.mubr.msk.bf16.gmra.mxu1 %vm308_vm1, %v4774_v23  ;;  %v1888_v4 = vrot.slane %v1886_v27, 4  ;;  %v1892_v53 = vshll.u32 %v222_v24, 16 }
  0x81   : > { %3765 = vmatprep.mubr.msk.bf16.mxu0 %vm308_vm1, %v4393_v14  ;;  %3731 = vmatprep.mubr.msk.bf16.mxu1 %vm308_vm1, %v5704_v5  ;;  %5705 = vst [vmem:[#allocation3_spill] sm:$0xff] %v4797_v36  ;;  %v3370_v14 = vld [vmem:[%s5598_s1 + $0xe] sm:$0x3]  ;;  %v1884_v51 = vrot.slane %v1882_v18, 5  ;;  %v1879_v62 = vor.u32 %v1878_v52, %v1875_v10  ;;  %v3298_v18 = vcombine.low %v4777_v21, %v4780_v11  ;;  %v2763_v10 = vsel %vm357_vm0, %v3389_v54, 0 }
  0x82   : > { %v2551_v52 = vsel %vm357_vm0, %v3370_v14, 0 }
  0x83   : > { %v1889_v5 = vor.u32 %v1888_v4, %v1884_v51  ;;  %v1880_v38 = vrot.slane %v1879_v62, 4 }
  0x85   : > { %v1885_v16 = vsel %vm4227_vm6, %v1880_v38, %v1884_v51 }
  0x88   : > { %3766 = vmatmul.mubr.msk.bf16.vlgmr.msra.gmra.mxu0 %vm308_vm1, %v4420_v49  ;;  %3732 = vmatmul.mubr.msk.bf16.vlgmr.msra.gmra.mxu1 %vm308_vm1, %v5706_v9 }
  0x89   : > { %3832 = vmatpush3.bf16.msra.mxu0 %v2323_v37  ;;  %3798 = vmatpush3.bf16.msra.mxu1 %v2117_v22  ;;  %v1890_v37 = vrot.slane %v1889_v5, 4  ;;  %v1894_v22 = vrot.slane %v1892_v53, 5 }
  0x8a   : > { %3735 = vmatprep.mubr.msk.bf16.mxu1 %vm308_vm1, %v5707_v46  ;;  %3769 = vmatprep.mubr.msk.bf16.mxu0 %vm308_vm1, %v4458_v26 }
  0x8b   : > { %3943 = vmatprep.subr.msk.bf16.mxu1 %vm357_vm0, %v3370_v14  ;;  %3944 = vmatprep.subr.msk.bf16.mxu0 %vm357_vm0, %v3389_v54  ;;  %v1895_v24 = vsel %vm4227_vm6, %v1890_v37, %v1894_v22 }
  0x8c   : > { %v4875_v27 = vcombine.low %v1885_v16, %v1895_v24  ;;  %v4985_v16 = vld [vmem:[%s4038_s27 + $0xd0] sm:$0xf] }
  0x8e   : > { %5718 = vst [vmem:[#allocation5_spill] sm:$0xff] %v4875_v27 }
  0x90   : > { %3770 = vmatmul.mubr.msk.bf16.gmra.mxu0 %vm308_vm1, %v4491_v1  ;;  %3736 = vmatmul.mubr.msk.bf16.gmra.mxu1 %vm308_vm1, %v5708_v56 }
  0x91   : > { %3773 = vmatprep.mubr.msk.bf16.mxu0 %vm308_vm1, %v4521_v33  ;;  %3739 = vmatprep.mubr.msk.bf16.mxu1 %vm308_vm1, %v5709_v40 }
  0x98   : > { %3774 = vmatmul.mubr.msk.bf16.gmra.mxu0 %vm308_vm1, %v4550_v28  ;;  %3740 = vmatmul.mubr.msk.bf16.gmra.mxu1 %vm308_vm1, %v5710_v50 }
  0x99   : > { %3777 = vmatprep.mubr.msk.bf16.mxu0 %vm308_vm1, %v4588_v30  ;;  %3743 = vmatprep.mubr.msk.bf16.mxu1 %vm308_vm1, %v4339_v43 }
  0xa0   : > { %3778 = vmatmul.mubr.msk.bf16.gmra.mxu0 %vm308_vm1, %v4596_v59  ;;  %3744 = vmatmul.mubr.msk.bf16.gmra.mxu1 %vm308_vm1, %v5711_v12 }
  0xa1   : > { %3781 = vmatprep.mubr.msk.bf16.mxu0 %vm308_vm1, %v4629_v25  ;;  %3747 = vmatprep.mubr.msk.bf16.mxu1 %vm308_vm1, %v5712_v7 }
  0xa8   : > { %3782 = vmatmul.mubr.msk.bf16.gmra.mxu0 %vm308_vm1, %v4655_v19  ;;  %3748 = vmatmul.mubr.msk.bf16.gmra.mxu1 %vm308_vm1, %v5713_v45 }
  0xa9   : > { %3785 = vmatprep.mubr.msk.bf16.mxu0 %vm308_vm1, %v4683_v0  ;;  %3751 = vmatprep.mubr.msk.bf16.mxu1 %vm308_vm1, %v5714_v2 }
  0xb0   : > { %3786 = vmatmul.mubr.msk.bf16.gmra.mxu0 %vm308_vm1, %v4709_v61  ;;  %3752 = vmatmul.mubr.msk.bf16.gmra.mxu1 %vm308_vm1, %v5715_v34 }
  0xb1   : > { %3789 = vmatprep.mubr.msk.bf16.mxu0 %vm308_vm1, %v4733_v39  ;;  %3755 = vmatprep.mubr.msk.bf16.mxu1 %vm308_vm1, %v5716_v32 }
  0xb8   : > { %3790 = vmatmul.mubr.msk.bf16.gmra.mxu0 %vm308_vm1, %v4758_v29  ;;  %3756 = vmatmul.mubr.msk.bf16.gmra.mxu1 %vm308_vm1, %v5717_v48 }
  0xb9   : > { %3793 = vmatprep.mubr.msk.bf16.mxu0 %vm308_vm1, %v4774_v23  ;;  %3759 = vmatprep.mubr.msk.bf16.mxu1 %vm308_vm1, %v4363_v31 }
  0xc0   : > { %3794 = vmatmul.mubr.msk.bf16.gmra.mxu0 %vm308_vm1, %v4875_v27  ;;  %3760 = vmatmul.mubr.msk.bf16.gmra.mxu1 %vm308_vm1, %v3298_v18 }
  0xc1   : > { %3833 = vmatprep.mubr.msk.bf16.mxu0 %vm308_vm1, %v5706_v9  ;;  %3799 = vmatprep.mubr.msk.bf16.mxu1 %vm308_vm1, %v4387_v20 }
  0xc8   : > { %3834 = vmatmul.mubr.msk.bf16.vlgmr.msra.gmra.mxu0 %vm308_vm1, %v5707_v46  ;;  %3800 = vmatmul.mubr.msk.bf16.vlgmr.msra.gmra.mxu1 %vm308_vm1, %v4422_v55 }
  0xc9   : > { %3900 = vmatpush3.bf16.msra.mxu0 %v2763_v10  ;;  %3866 = vmatpush3.bf16.msra.mxu1 %v2551_v52 }
  0xca   : > { %3803 = vmatprep.mubr.msk.bf16.mxu1 %vm308_vm1, %v4448_v60  ;;  %3837 = vmatprep.mubr.msk.bf16.mxu0 %vm308_vm1, %v5708_v56 }
  0xd0   : > { %3838 = vmatmul.mubr.msk.bf16.gmra.mxu0 %vm308_vm1, %v5709_v40  ;;  %3804 = vmatmul.mubr.msk.bf16.gmra.mxu1 %vm308_vm1, %v4488_v58 }
  0xd1   : > { %3841 = vmatprep.mubr.msk.bf16.mxu0 %vm308_vm1, %v5710_v50  ;;  %3807 = vmatprep.mubr.msk.bf16.mxu1 %vm308_vm1, %v4518_v8 }
  0xd8   : > { %3842 = vmatmul.mubr.msk.bf16.gmra.mxu0 %vm308_vm1, %v4339_v43  ;;  %3808 = vmatmul.mubr.msk.bf16.gmra.mxu1 %vm308_vm1, %v4539_v3  ;;  %v3631_v20 = vpop.f32.mrf.mxu0 }
  0xd9   : > { %3845 = vmatprep.mubr.msk.bf16.mxu0 %vm308_vm1, %v5711_v12  ;;  %3811 = vmatprep.mubr.msk.bf16.mxu1 %vm308_vm1, %v4577_v44 }
  0xda   : > { %v4920_v43 = vpop.f32.mrf.mxu1  ;;  %v395_v21 = vpop.f32.mrf.mxu0 }
  0xdc   : > { %v4922_v11 = vpop.f32.mrf.mxu1  ;;  %v3632_v14 = vpop.f32.mrf.mxu0 }
  0xde   : > { %v4924_v9 = vpop.f32.mrf.mxu1  ;;  %v398_v54 = vpop.f32.mrf.mxu0 }
  0xe0   : > { %3846 = vmatmul.mubr.msk.bf16.gmra.mxu0 %vm308_vm1, %v5712_v7  ;;  %3812 = vmatmul.mubr.msk.bf16.gmra.mxu1 %vm308_vm1, %v4598_v6  ;;  %v4930_v46 = vpop.f32.mrf.mxu1  ;;  %v3635_v56 = vpop.f32.mrf.mxu0 }
  0xe1   : > { %3849 = vmatprep.mubr.msk.bf16.mxu0 %vm308_vm1, %v5713_v45  ;;  %3815 = vmatprep.mubr.msk.bf16.mxu1 %vm308_vm1, %v4626_v42 }
  0xe2   : > { %v4936_v40 = vpop.f32.mrf.mxu1  ;;  %v4938_v50 = vpop.f32.mrf.mxu0 }
  0xe4   : > { %v4940_v12 = vpop.f32.mrf.mxu1  ;;  %v4942_v7 = vpop.f32.mrf.mxu0 }
  0xe6   : > { %v4944_v45 = vpop.f32.mrf.mxu1 }
  0xe8   : > { %3850 = vmatmul.mubr.msk.bf16.gmra.mxu0 %vm308_vm1, %v5714_v2  ;;  %3816 = vmatmul.mubr.msk.bf16.gmra.mxu1 %vm308_vm1, %v4652_v35  ;;  %v4946_v2 = vpop.f32.mrf.mxu0  ;;  %v4952_v51 = vpop.f32.mrf.mxu1 }
  0xe9   : > { %3853 = vmatprep.mubr.msk.bf16.mxu0 %vm308_vm1, %v5715_v34  ;;  %3819 = vmatprep.mubr.msk.bf16.mxu1 %vm308_vm1, %v4675_v15  ;;  %5719 = vst [vmem:[#allocation7_spill] sm:$0xff] %v4952_v51 }
  0xea   : > { %v4956_v4 = vpop.f32.mrf.mxu0  ;;  %v4960_v34 = vpop.f32.mrf.mxu1 }
  0xeb   : > { %5720 = vst [vmem:[#allocation9_spill] sm:$0xff] %v4960_v34 }
  0xec   : > { %v4962_v62 = vpop.f32.mrf.mxu0  ;;  %v4964_v5 = vpop.f32.mrf.mxu1 }
  0xed   : > { %5721 = vst [vmem:[#allocation13_spill] sm:$0xff] %v4964_v5 }
  0xee   : > { %v4966_v53 = vpop.f32.mrf.mxu0 }
  0xf0   : > { %3854 = vmatmul.mubr.msk.bf16.gmra.mxu0 %vm308_vm1, %v5716_v32  ;;  %3820 = vmatmul.mubr.msk.bf16.gmra.mxu1 %vm308_vm1, %v4701_v47  ;;  %v4968_v32 = vpop.f32.mrf.mxu1  ;;  %v4970_v38 = vpop.f32.mrf.mxu0 }
  0xf1   : > { %3857 = vmatprep.mubr.msk.bf16.mxu0 %vm308_vm1, %v5717_v48  ;;  %3823 = vmatprep.mubr.msk.bf16.mxu1 %vm308_vm1, %v4730_v17  ;;  %5722 = vst [vmem:[#allocation15_spill] sm:$0xff] %v4968_v32  ;;  %v4982_v48 = vld [vmem:[%s4038_s27 + $0xcc] sm:$0xf]  ;;  %v5007_v32 = vld [vmem:[%s5599_s2] ss:$0 sm:$0xff] }
  0xf2   : > { %v4976_v37 = vpop.f32.mrf.mxu1  ;;  %v4979_v22 = vpop.f32.mrf.mxu0  ;;  %v528_v13 = vadd.f32 %v5007_v32, %v395_v21  ;;  %v529_v51 = vadd.f32 %v5007_v32, %v398_v54 }
  0xf3   : > { %5723 = vst [vmem:[#allocation2_spill] sm:$0xff] %v4976_v37 }
  0xf4   : > { %v4989_v24 = vpop.f32.mrf.mxu1  ;;  %v4991_v10 = vpop.f32.mrf.mxu0 }
  0xf5   : > { %5724 = vst [vmem:[#allocation4_spill] sm:$0xff] %v4989_v24 }
  0xf6   : > { %v4995_v52 = vpop.f32.mrf.mxu1  ;;  %v4997_v37 = vpop.f32.mrf.mxu0 }
  0xf7   : > { %5725 = vst [vmem:[#allocation6_spill] sm:$0xff] %v4995_v52 }
  0xf8   : > { %3858 = vmatmul.mubr.msk.bf16.gmra.mxu0 %vm308_vm1, %v4363_v31  ;;  %3824 = vmatmul.mubr.msk.bf16.gmra.mxu1 %vm308_vm1, %v4755_v63  ;;  %v3353_v31 = vcombine.low %v4982_v48, %v4985_v16  ;;  %v5001_v27 = vpop.f32.mrf.mxu0 }
  0xf9   : > { %3861 = vmatprep.mubr.msk.bf16.mxu0 %vm308_vm1, %v3298_v18  ;;  %3827 = vmatprep.mubr.msk.bf16.mxu1 %vm308_vm1, %v4772_v57  ;;  %v4999_v18 = vpop.f32.mrf.mxu1 }
  0xfa   : > { %5726 = vst [vmem:[#allocation8_spill] sm:$0xff] %v4999_v18  ;;  %v3699_v52 = vpop.f32.mrf.mxu0  ;;  %v530_v18 = vadd.f32 %v3631_v20, %v5007_v32 }
  0xfb   : > { %v5011_v24 = vpop.f32.mrf.mxu1 }
  0xfc   : > { %5727 = vst [vmem:[#allocation11_spill] sm:$0xff] %v5011_v24  ;;  %v1507_v41 = vpop.f32.mrf.mxu0 }
  0xfe   : > { %v3700_v5 = vpop.f32.mrf.mxu0 }
 0x100   : > { %3862 = vmatmul.mubr.msk.bf16.gmra.mxu0 %vm308_vm1, %v3353_v31  ;;  %3828 = vmatmul.mubr.msk.bf16.gmra.mxu1 %vm308_vm1, %v4797_v36  ;;  %v3665_v31 = vpop.f32.mrf.mxu1  ;;  %v531_v36 = vadd.f32 %v3632_v14, %v5007_v32 }
 0x101   : > { %3901 = vmatprep.mubr.msk.bf16.mxu0 %vm308_vm1, %v4422_v55  ;;  %3867 = vmatprep.mubr.msk.bf16.mxu1 %vm308_vm1, %v4420_v49  ;;  %v1211_v23 = vadd.f32 %v3665_v31, %v530_v18  ;;  %v1510_v55 = vpop.f32.mrf.mxu0 }
 0x102   : > { %v1082_v57 = vpop.f32.mrf.mxu1 }
 0x103   : > { %v5020_v34 = vadd.f32 %v3699_v52, %v1211_v23  ;;  %v1209_v24 = vadd.f32 %v1082_v57, %v528_v13  ;;  %v3703_v23 = vpop.f32.mrf.mxu0  ;;  %v534_v13 = vadd.f32 %v3635_v56, %v5007_v32 }
 0x104   : > { %v3666_v29 = vpop.f32.mrf.mxu1 }
 0x105   : > { %v5025_v49 = vadd.f32 %v1507_v41, %v1209_v24  ;;  %v1212_v20 = vadd.f32 %v3666_v29, %v531_v36  ;;  %v1523_v41 = vpop.f32.mrf.mxu0  ;;  %v532_v29 = vadd.f32 %v5007_v32, %v4938_v50 }
 0x106   : > { %v1085_v21 = vpop.f32.mrf.mxu1 }
 0x107   : > { %v5032_v57 = vadd.f32 %v3700_v5, %v1212_v20  ;;  %v1210_v14 = vadd.f32 %v1085_v21, %v529_v51  ;;  %v3704_v24 = vpop.f32.mrf.mxu0 }
 0x108   : > { %3902 = vmatmul.mubr.msk.bf16.vlgmr.msra.gmra.mxu0 %vm308_vm1, %v4448_v60  ;;  %3868 = vmatmul.mubr.msk.bf16.vlgmr.msra.gmra.mxu1 %vm308_vm1, %v4458_v26  ;;  %v3669_v60 = vpop.f32.mrf.mxu1 }
 0x109   : > { %3905 = vmatprep.mubr.msk.bf16.mxu0 %vm308_vm1, %v4488_v58  ;;  %3871 = vmatprep.mubr.msk.bf16.mxu1 %vm308_vm1, %v4491_v1  ;;  %v5038_v36 = vadd.f32 %v1510_v55, %v1210_v14  ;;  %v1215_v26 = vadd.f32 %v3669_v60, %v534_v13  ;;  %v535_v58 = vadd.f32 %v4942_v7, %v5007_v32  ;;  %v1526_v52 = vpop.f32.mrf.mxu0 }
 0x10a   : > { %v1098_v54 = vpop.f32.mrf.mxu1  ;;  %v533_v1 = vadd.f32 %v5007_v32, %v4946_v2  ;;  %v538_v55 = vadd.f32 %v4956_v4, %v5007_v32  ;;  %v539_v60 = vadd.f32 %v4966_v53, %v5007_v32 }
 0x10b   : > { %v5042_v56 = vadd.f32 %v3703_v23, %v1215_v26  ;;  %v1213_v5 = vadd.f32 %v1098_v54, %v532_v29  ;;  %v3707_v7 = vpop.f32.mrf.mxu0  ;;  %v536_v23 = vadd.f32 %v5007_v32, %v4962_v62 }
 0x10c   : > { %v3670_v51 = vpop.f32.mrf.mxu1 }
 0x10d   : > { %v5048_v50 = vadd.f32 %v1523_v41, %v1213_v5  ;;  %v1216_v18 = vadd.f32 %v3670_v51, %v535_v58  ;;  %v1539_v21 = vpop.f32.mrf.mxu0  ;;  %v542_v58 = vadd.f32 %v4979_v22, %v5007_v32 }
 0x10e   : > { %v1101_v31 = vpop.f32.mrf.mxu1 }
 0x10f   : > { %v5056_v20 = vadd.f32 %v3704_v24, %v1216_v18  ;;  %v1214_v2 = vadd.f32 %v1101_v31, %v533_v1  ;;  %v543_v31 = vadd.f32 %v4997_v37, %v5007_v32 }
 0x110   : > { %3906 = vmatmul.mubr.msk.bf16.gmra.mxu0 %vm308_vm1, %v4518_v8  ;;  %3872 = vmatmul.mubr.msk.bf16.gmra.mxu1 %vm308_vm1, %v4521_v33  ;;  %v3673_v8 = vpop.f32.mrf.mxu1 }
 0x111   : > { %3909 = vmatprep.mubr.msk.bf16.mxu0 %vm308_vm1, %v4539_v3  ;;  %3875 = vmatprep.mubr.msk.bf16.mxu1 %vm308_vm1, %v4550_v28  ;;  %v5062_v33 = vadd.f32 %v1526_v52, %v1214_v2  ;;  %v1219_v13 = vadd.f32 %v3673_v8, %v538_v55  ;;  %v3708_v3 = vpop.f32.mrf.mxu0  ;;  %v537_v28 = vadd.f32 %v5007_v32, %v4970_v38 }
 0x112   : > { %v1114_v14 = vpop.f32.mrf.mxu1  ;;  %v540_v52 = vadd.f32 %v5007_v32, %v4991_v10 }
 0x113   : > { %v5066_v4 = vadd.f32 %v3707_v7, %v1219_v13  ;;  %v1217_v41 = vadd.f32 %v1114_v14, %v536_v23  ;;  %v1542_v26 = vpop.f32.mrf.mxu0  ;;  %v546_v23 = vadd.f32 %v4920_v43, %v5007_v32 }
 0x114   : > { %v3674_v29 = vpop.f32.mrf.mxu1 }
 0x115   : > { %v5072_v62 = vadd.f32 %v1539_v21, %v1217_v41  ;;  %v1220_v54 = vadd.f32 %v3674_v29, %v539_v60  ;;  %v3711_v53 = vpop.f32.mrf.mxu0  ;;  %v547_v29 = vadd.f32 %v4924_v9, %v5007_v32  ;;  %v2528_v9 = vshll.u32 %v4985_v16, 16 }
 0x116   : > { %v1117_v24 = vpop.f32.mrf.mxu1 }
 0x117   : > { %v5080_v5 = vadd.f32 %v3708_v3, %v1220_v54  ;;  %v1218_v38 = vadd.f32 %v1117_v24, %v537_v28  ;;  %v1555_v51 = vpop.f32.mrf.mxu0  ;;  %v544_v3 = vadd.f32 %v5007_v32, %v4922_v11 }
 0x118   : > { %3910 = vmatmul.mubr.msk.bf16.gmra.mxu0 %vm308_vm1, %v4577_v44  ;;  %3876 = vmatmul.mubr.msk.bf16.gmra.mxu1 %vm308_vm1, %v4588_v30  ;;  %v3677_v44 = vpop.f32.mrf.mxu1 }
 0x119   : > { %3913 = vmatprep.mubr.msk.bf16.mxu0 %vm308_vm1, %v4598_v6  ;;  %3879 = vmatprep.mubr.msk.bf16.mxu1 %vm308_vm1, %v4596_v59  ;;  %v5086_v30 = vadd.f32 %v1542_v26, %v1218_v38  ;;  %v1223_v1 = vadd.f32 %v3677_v44, %v542_v58  ;;  %v3712_v6 = vpop.f32.mrf.mxu0  ;;  %v541_v59 = vadd.f32 %v5007_v32, %v5001_v27  ;;  %v2522_v58 = vshll.u32 %v4982_v48, 16 }
 0x11a   : > { %v1130_v18 = vpop.f32.mrf.mxu1  ;;  %v2532_v38 = vshrl.u32 %v4985_v16, 16 }
 0x11b   : > { %v5090_v22 = vadd.f32 %v3711_v53, %v1223_v1  ;;  %v1221_v7 = vadd.f32 %v1130_v18, %v540_v52  ;;  %v1558_v2 = vpop.f32.mrf.mxu0  ;;  %v2519_v53 = vshrl.u32 %v4982_v48, 16  ;;  %v550_v52 = vadd.f32 %v4936_v40, %v5007_v32 }
 0x11c   : > { %v3678_v55 = vpop.f32.mrf.mxu1 }
 0x11d   : > { %v5096_v10 = vadd.f32 %v1555_v51, %v1221_v7  ;;  %v1224_v8 = vadd.f32 %v3678_v55, %v543_v31  ;;  %v3715_v37 = vpop.f32.mrf.mxu0  ;;  %v2521_v18 = vrot.slane %v2519_v53, 4  ;;  %v2534_v31 = vrot.slane %v2532_v38, 4 }
 0x11e   : > { %v1133_v21 = vpop.f32.mrf.mxu1 }
 0x11f   : > { %v5104_v13 = vadd.f32 %v3712_v6, %v1224_v8  ;;  %v1222_v27 = vadd.f32 %v1133_v21, %v541_v59  ;;  %v1571_v14 = vpop.f32.mrf.mxu0  ;;  %v2524_v6 = vrot.slane %v2522_v58, 5  ;;  %v225_v21 = vld [vmem:[%s4038_s27 + $0xd4] sm:$0x1] }
 0x120   : > { %3914 = vmatmul.mubr.msk.bf16.gmra.mxu0 %vm308_vm1, %v4626_v42  ;;  %3880 = vmatmul.mubr.msk.bf16.gmra.mxu1 %vm308_vm1, %v4629_v25  ;;  %v3681_v42 = vpop.f32.mrf.mxu1 }
 0x121   : > { %3917 = vmatprep.mubr.msk.bf16.mxu0 %vm308_vm1, %v4652_v35  ;;  %3883 = vmatprep.mubr.msk.bf16.mxu1 %vm308_vm1, %v4655_v19  ;;  %v5110_v25 = vadd.f32 %v1558_v2, %v1222_v27  ;;  %v1227_v60 = vadd.f32 %v3681_v42, %v546_v23  ;;  %v3716_v35 = vpop.f32.mrf.mxu0  ;;  %v545_v19 = vadd.f32 %v5007_v32, %v4930_v46  ;;  %v2749_v23 = vrot.slane %v4985_v16, 5 }
 0x122   : > { %v1146_v41 = vpop.f32.mrf.mxu1  ;;  %v2538_v16 = vshll.u32 %v225_v21, 16 }
 0x123   : > { %v5114_v43 = vadd.f32 %v3715_v37, %v1227_v60  ;;  %v1225_v26 = vadd.f32 %v1146_v41, %v544_v3  ;;  %v1574_v54 = vpop.f32.mrf.mxu0 }
 0x124   : > { %v3682_v28 = vpop.f32.mrf.mxu1  ;;  %v2540_v38 = vrot.slane %v2538_v16, 5 }
 0x125   : > { %v5120_v11 = vadd.f32 %v1571_v14, %v1225_v26  ;;  %v1228_v24 = vadd.f32 %v3682_v28, %v547_v29  ;;  %v5728_v14 = vld [vmem:[#allocation7_spill] sm:$0xff]  ;;  %v3388_v26 = vrot.slane %v4982_v48, 9  ;;  %v2751_v28 = vrot.slane %v2749_v23, 4 }
 0x126   : > { %v1149_v44 = vpop.f32.mrf.mxu1 }
 0x127   : > { %v5130_v46 = vadd.f32 %v3716_v35, %v1228_v24  ;;  %v3719_v51 = vpop.f32.mrf.mxu0 }
 0x128   : > { %3918 = vmatmul.mubr.msk.bf16.gmra.mxu0 %vm308_vm1, %v4675_v15  ;;  %3884 = vmatmul.mubr.msk.bf16.gmra.mxu1 %vm308_vm1, %v4683_v0  ;;  %v1226_v15 = vadd.f32 %v1149_v44, %v545_v19  ;;  %v2530_v0 = vrot.slane %v2528_v9, 5  ;;  %v5730_v19 = vld [vmem:[#allocation9_spill] sm:$0xff] }
 0x129   : > { %3921 = vmatprep.mubr.msk.bf16.mxu0 %vm308_vm1, %v4701_v47  ;;  %3887 = vmatprep.mubr.msk.bf16.mxu1 %vm308_vm1, %v4709_v61  ;;  %v1587_v55 = vpop.f32.mrf.mxu0  ;;  %v548_v47 = vadd.f32 %v5007_v32, %v4940_v12  ;;  %v551_v61 = vadd.f32 %v4944_v45, %v5007_v32  ;;  %v2525_v12 = vor.u32 %v2524_v6, %v2521_v18  ;;  %v5732_v18 = vld [vmem:[#allocation18_spill] sm:$0xff]  ;;  %v5733_v6 = vld [vmem:[#allocation19_spill] sm:$0xff] }
 0x12a   : > { %v5136_v1 = vadd.f32 %v1574_v54, %v1226_v15  ;;  %v3685_v7 = vpop.f32.mrf.mxu1  ;;  %v2535_v42 = vor.u32 %v2534_v31, %v2530_v0  ;;  %v549_v45 = vadd.f32 %v5007_v32, %v5728_v14  ;;  %v2752_v54 = vrot.slane %v225_v21, 5  ;;  %v5731_v15 = vld [vmem:[#allocation13_spill] sm:$0xff]  ;;  %v5737_v21 = vld [vmem:[#allocation15_spill] sm:$0xff] }
 0x12b   : > { %v1231_v2 = vadd.f32 %v3685_v7, %v550_v52  ;;  %v3720_v8 = vpop.f32.mrf.mxu0  ;;  %v554_v24 = vadd.f32 %v5730_v19, %v5007_v32  ;;  %v5734_v7 = vld [vmem:[#allocation3_spill] sm:$0xff] }
 0x12c   : > { %v1162_v59 = vpop.f32.mrf.mxu1  ;;  %v2536_v9 = vrot.slane %v2535_v42, 4  ;;  %v5738_v42 = vld [vmem:[#allocation5_spill] sm:$0xff] }
 0x12d   : > { %v5143_v37 = vadd.f32 %v3719_v51, %v1231_v2  ;;  %v1229_v40 = vadd.f32 %v1162_v59, %v548_v47  ;;  %v1590_v41 = vpop.f32.mrf.mxu0  ;;  %v552_v51 = vadd.f32 %v5007_v32, %v5731_v15  ;;  %v2750_v59 = vsel %vm4254_vm7, %v3388_v26, %v2749_v23 }
 0x12e   : > { %v3686_v27 = vpop.f32.mrf.mxu1  ;;  %v2541_v14 = vsel %vm4227_vm6, %v2536_v9, %v2540_v38  ;;  %v5741_v9 = vld [vmem:[#allocation6_spill] sm:$0xff] }
 0x12f   : > { %v5154_v3 = vadd.f32 %v1587_v55, %v1229_v40  ;;  %v1232_v60 = vadd.f32 %v3686_v27, %v551_v61  ;;  %v555_v61 = vadd.f32 %v5737_v21, %v5007_v32  ;;  %v556_v38 = vadd.f32 %v5007_v32, %v5741_v9  ;;  %v5743_v55 = vld [vmem:[#allocation11_spill] sm:$0xff] }
 0x130   : > { %3922 = vmatmul.mubr.msk.bf16.gmra.mxu0 %vm308_vm1, %v4730_v17  ;;  %3888 = vmatmul.mubr.msk.bf16.gmra.mxu1 %vm308_vm1, %v4733_v39  ;;  %v5729_v17 = vld [vmem:[#allocation17_spill] sm:$0xff]  ;;  %v1165_v35 = vpop.f32.mrf.mxu1 }
 0x131   : > { %3925 = vmatprep.mubr.msk.bf16.mxu0 %vm308_vm1, %v4755_v63  ;;  %3891 = vmatprep.mubr.msk.bf16.mxu1 %vm308_vm1, %v5729_v17  ;;  %v5158_v29 = vadd.f32 %v3720_v8, %v1232_v60  ;;  %v1230_v39 = vadd.f32 %v1165_v35, %v549_v45  ;;  %v2526_v63 = vrot.slane %v2525_v12, 4  ;;  %v2753_v8 = vsel %vm4254_vm7, %v2751_v28, %v2752_v54  ;;  %v5739_v45 = vld [vmem:[#allocation2_spill] sm:$0xff]  ;;  %v5740_v28 = vld [vmem:[#allocation4_spill] sm:$0xff] }
 0x132   : > { %v553_v23 = vadd.f32 %v5007_v32, %v5739_v45  ;;  %v3390_v16 = vcombine.low %v2750_v59, %v2753_v8  ;;  %v558_v54 = vadd.f32 %v5740_v28, %v5007_v32 }
 0x133   : > { %v5163_v53 = vadd.f32 %v1590_v41, %v1230_v39  ;;  %v2531_v47 = vsel %vm4227_vm6, %v2526_v63, %v2530_v0 }
 0x134   : > { %v3723_v58 = vpop.f32.mrf.mxu0  ;;  %v3371_v39 = vcombine.low %v2531_v47, %v2541_v14  ;;  %v557_v47 = vadd.f32 %v5007_v32, %v5743_v55 }
 0x135   : > { %v3689_v44 = vpop.f32.mrf.mxu1 }
 0x136   : > { %v1235_v52 = vadd.f32 %v3689_v44, %v554_v24  ;;  %v1603_v48 = vpop.f32.mrf.mxu0 }
 0x137   : > { %v1178_v31 = vpop.f32.mrf.mxu1 }
 0x138   : > { %3926 = vmatmul.mubr.msk.bf16.gmra.mxu0 %vm308_vm1, %v5732_v18  ;;  %3892 = vmatmul.mubr.msk.bf16.gmra.mxu1 %vm308_vm1, %v5733_v6  ;;  %v5181_v40 = vadd.f32 %v3723_v58, %v1235_v52  ;;  %v1233_v27 = vadd.f32 %v1178_v31, %v552_v51  ;;  %v3724_v12 = vpop.f32.mrf.mxu0  ;;  %v5742_v52 = vld [vmem:[#allocation8_spill] sm:$0xff] }
 0x139   : > { %3929 = vmatprep.mubr.msk.bf16.mxu0 %vm308_vm1, %v5734_v7  ;;  %3895 = vmatprep.mubr.msk.bf16.mxu1 %vm308_vm1, %v5738_v42  ;;  %v3690_v0 = vpop.f32.mrf.mxu1  ;;  %v559_v18 = vadd.f32 %v5742_v52, %v5007_v32 }
 0x13a   : > { %v5189_v60 = vadd.f32 %v1603_v48, %v1233_v27  ;;  %v1236_v41 = vadd.f32 %v3690_v0, %v555_v61  ;;  %v1606_v17 = vpop.f32.mrf.mxu0 }
 0x13b   : > { %v1181_v35 = vpop.f32.mrf.mxu1 }
 0x13c   : > { %v5191_v26 = vadd.f32 %v3724_v12, %v1236_v41  ;;  %v1234_v63 = vadd.f32 %v1181_v35, %v553_v23 }
 0x13e   : > { %v5195_v19 = vadd.f32 %v1606_v17, %v1234_v63 }
 0x140   : > { %v3727_v24 = vpop.f32.mrf.mxu0  ;;  %3930 = vmatmul.mubr.msk.bf16.gmra.mxu0 %vm308_vm1, %v3390_v16  ;;  %v3693_v58 = vpop.f32.mrf.mxu1  ;;  %3896 = vmatmul.mubr.msk.bf16.gmra.mxu1 %vm308_vm1, %v3371_v39 }
 0x141   : > { %v1239_v44 = vadd.f32 %v3693_v58, %v558_v54 }
 0x142   : > { %v1619_v15 = vpop.f32.mrf.mxu0  ;;  %v1194_v51 = vpop.f32.mrf.mxu1 }
 0x143   : > { %v5203_v48 = vadd.f32 %v3727_v24, %v1239_v44  ;;  %v1237_v6 = vadd.f32 %v1194_v51, %v556_v38 }
 0x144   : > { %v3728_v31 = vpop.f32.mrf.mxu0  ;;  %v3694_v7 = vpop.f32.mrf.mxu1 }
 0x145   : > { %v5207_v2 = vadd.f32 %v1619_v15, %v1237_v6  ;;  %v1240_v59 = vadd.f32 %v3694_v7, %v559_v18 }
 0x146   : > { %v1622_v8 = vpop.f32.mrf.mxu0  ;;  %v1197_v21 = vpop.f32.mrf.mxu1 }
 0x147   : > { %v5209_v61 = vadd.f32 %v3728_v31, %v1240_v59  ;;  %v1238_v27 = vadd.f32 %v1197_v21, %v557_v47 }
 0x148   : > { %v3767_v12 = vpop.f32.mrf.mxu0  ;;  %v3733_v42 = vpop.f32.mrf.mxu1 }
 0x149   : > { %v5211_v14 = vadd.f32 %v1622_v8, %v1238_v27  ;;  %v1842_v0 = vadd.f32 %v3733_v42, %v5020_v34 }
 0x14a   : > { %v1941_v45 = vpop.f32.mrf.mxu0  ;;  %v1713_v23 = vpop.f32.mrf.mxu1 }
 0x14b   : > { %v5214_v41 = vadd.f32 %v3767_v12, %v1842_v0  ;;  %v1840_v32 = vadd.f32 %v1713_v23, %v5025_v49 }
 0x14c   : > { %v3768_v17 = vpop.f32.mrf.mxu0  ;;  %v3734_v16 = vpop.f32.mrf.mxu1 }
 0x14d   : > { %v5217_v35 = vadd.f32 %v1941_v45, %v1840_v32  ;;  %v1843_v39 = vadd.f32 %v3734_v16, %v5032_v57 }
 0x14e   : > { %v1944_v63 = vpop.f32.mrf.mxu0  ;;  %v1716_v28 = vpop.f32.mrf.mxu1 }
 0x14f   : > { %v5220_v54 = vadd.f32 %v3768_v17, %v1843_v39  ;;  %v1841_v24 = vadd.f32 %v1716_v28, %v5038_v36 }
 0x150   : > { %v3771_v58 = vpop.f32.mrf.mxu0  ;;  %v3737_v34 = vpop.f32.mrf.mxu1 }
 0x151   : > { %v5223_v9 = vadd.f32 %v1944_v63, %v1841_v24  ;;  %v1846_v38 = vadd.f32 %v3737_v34, %v5042_v56 }
 0x152   : > { %v1957_v44 = vpop.f32.mrf.mxu0  ;;  %v1729_v49 = vpop.f32.mrf.mxu1 }
 0x153   : > { %v5226_v15 = vadd.f32 %v3771_v58, %v1846_v38  ;;  %v1844_v51 = vadd.f32 %v1729_v49, %v5048_v50 }
 0x154   : > { %v3772_v52 = vpop.f32.mrf.mxu0  ;;  %v3738_v57 = vpop.f32.mrf.mxu1 }
 0x155   : > { %v5229_v18 = vadd.f32 %v1957_v44, %v1844_v51  ;;  %v1847_v6 = vadd.f32 %v3738_v57, %v5056_v20 }
 0x156   : > { %v1960_v31 = vpop.f32.mrf.mxu0  ;;  %v1732_v36 = vpop.f32.mrf.mxu1 }
 0x157   : > { %v5232_v7 = vadd.f32 %v3772_v52, %v1847_v6  ;;  %v1845_v55 = vadd.f32 %v1732_v36, %v5062_v33 }
 0x158   : > { %v3775_v47 = vpop.f32.mrf.mxu0  ;;  %v3741_v56 = vpop.f32.mrf.mxu1 }
 0x159   : > { %v5235_v59 = vadd.f32 %v1960_v31, %v1845_v55  ;;  %v1850_v8 = vadd.f32 %v3741_v56, %v5066_v4 }
 0x15a   : > { %v1973_v21 = vpop.f32.mrf.mxu0  ;;  %v1745_v50 = vpop.f32.mrf.mxu1 }
 0x15b   : > { %v5238_v27 = vadd.f32 %v3775_v47, %v1850_v8  ;;  %v1848_v12 = vadd.f32 %v1745_v50, %v5072_v62 }
 0x15c   : > { %v3776_v42 = vpop.f32.mrf.mxu0  ;;  %v3742_v20 = vpop.f32.mrf.mxu1 }
 0x15d   : > { %v5241_v0 = vadd.f32 %v1973_v21, %v1848_v12  ;;  %v1851_v45 = vadd.f32 %v3742_v20, %v5080_v5 }
 0x15e   : > { %v1976_v23 = vpop.f32.mrf.mxu0  ;;  %v1748_v33 = vpop.f32.mrf.mxu1 }
 0x15f   : > { %v5244_v32 = vadd.f32 %v3776_v42, %v1851_v45  ;;  %v1849_v17 = vadd.f32 %v1748_v33, %v5086_v30 }
 0x160   : > { %v3779_v16 = vpop.f32.mrf.mxu0  ;;  %v3745_v4 = vpop.f32.mrf.mxu1 }
 0x161   : > { %v5247_v39 = vadd.f32 %v1976_v23, %v1849_v17  ;;  %v1854_v63 = vadd.f32 %v3745_v4, %v5090_v22 }
 0x162   : > { %v1989_v28 = vpop.f32.mrf.mxu0  ;;  %v1761_v62 = vpop.f32.mrf.mxu1 }
 0x163   : > { %v5250_v24 = vadd.f32 %v3779_v16, %v1854_v63  ;;  %v1852_v58 = vadd.f32 %v1761_v62, %v5096_v10 }
 0x164   : > { %v3780_v34 = vpop.f32.mrf.mxu0  ;;  %v3746_v5 = vpop.f32.mrf.mxu1 }
 0x165   : > { %v5253_v38 = vadd.f32 %v1989_v28, %v1852_v58  ;;  %v1855_v44 = vadd.f32 %v3746_v5, %v5104_v13 }
 0x166   : > { %v1992_v49 = vpop.f32.mrf.mxu0  ;;  %v1764_v30 = vpop.f32.mrf.mxu1 }
 0x167   : > { %v5256_v51 = vadd.f32 %v3780_v34, %v1855_v44  ;;  %v1853_v52 = vadd.f32 %v1764_v30, %v5110_v25 }
 0x168   : > { %v3783_v57 = vpop.f32.mrf.mxu0  ;;  %v3749_v22 = vpop.f32.mrf.mxu1 }
 0x169   : > { %v5259_v6 = vadd.f32 %v1992_v49, %v1853_v52  ;;  %v1858_v31 = vadd.f32 %v3749_v22, %v5114_v43 }
 0x16a   : > { %v2005_v36 = vpop.f32.mrf.mxu0  ;;  %v1777_v10 = vpop.f32.mrf.mxu1 }
 0x16b   : > { %v5262_v55 = vadd.f32 %v3783_v57, %v1858_v31  ;;  %v1856_v47 = vadd.f32 %v1777_v10, %v5120_v11 }
 0x16c   : > { %v3784_v56 = vpop.f32.mrf.mxu0  ;;  %v3750_v13 = vpop.f32.mrf.mxu1 }
 0x16d   : > { %v5265_v8 = vadd.f32 %v2005_v36, %v1856_v47  ;;  %v1859_v21 = vadd.f32 %v3750_v13, %v5130_v46 }
 0x16e   : > { %v2008_v50 = vpop.f32.mrf.mxu0  ;;  %v1780_v25 = vpop.f32.mrf.mxu1 }
 0x16f   : > { %v5268_v12 = vadd.f32 %v3784_v56, %v1859_v21  ;;  %v1857_v42 = vadd.f32 %v1780_v25, %v5136_v1 }
 0x170   : > { %v3787_v20 = vpop.f32.mrf.mxu0  ;;  %v3753_v43 = vpop.f32.mrf.mxu1 }
 0x171   : > { %5744 = vst [vmem:[#allocation14_spill] sm:$0xff] %v5268_v12  ;;  %v5271_v45 = vadd.f32 %v2008_v50, %v1857_v42  ;;  %v1862_v23 = vadd.f32 %v3753_v43, %v5143_v37 }
 0x172   : > { %v2021_v33 = vpop.f32.mrf.mxu0  ;;  %v1793_v11 = vpop.f32.mrf.mxu1 }
 0x173   : > { %5745 = vst [vmem:[#allocation16_spill] sm:$0xff] %v5271_v45  ;;  %v5274_v17 = vadd.f32 %v3787_v20, %v1862_v23  ;;  %v1860_v16 = vadd.f32 %v1793_v11, %v5154_v3 }
 0x174   : > { %v3788_v4 = vpop.f32.mrf.mxu0  ;;  %v3754_v46 = vpop.f32.mrf.mxu1 }
 0x175   : > { %5746 = vst [vmem:[#allocation7_spill] sm:$0xff] %v5274_v17  ;;  %v5277_v63 = vadd.f32 %v2021_v33, %v1860_v16  ;;  %v1863_v28 = vadd.f32 %v3754_v46, %v5158_v29 }
 0x176   : > { %v2024_v62 = vpop.f32.mrf.mxu0  ;;  %v1796_v1 = vpop.f32.mrf.mxu1 }
 0x177   : > { %5747 = vst [vmem:[#allocation17_spill] sm:$0xff] %v5277_v63  ;;  %v5280_v58 = vadd.f32 %v3788_v4, %v1863_v28  ;;  %v1861_v34 = vadd.f32 %v1796_v1, %v5163_v53 }
 0x178   : > { %v3791_v5 = vpop.f32.mrf.mxu0  ;;  %v3757_v37 = vpop.f32.mrf.mxu1 }
 0x179   : > { %5748 = vst [vmem:[#allocation9_spill] sm:$0xff] %v5280_v58  ;;  %v5283_v44 = vadd.f32 %v2024_v62, %v1861_v34  ;;  %v1866_v49 = vadd.f32 %v3757_v37, %v5181_v40 }
 0x17a   : > { %v2037_v30 = vpop.f32.mrf.mxu0  ;;  %v1809_v3 = vpop.f32.mrf.mxu1 }
 0x17b   : > { %5749 = vst [vmem:[#allocation13_spill] sm:$0xff] %v5283_v44  ;;  %v5286_v52 = vadd.f32 %v3791_v5, %v1866_v49  ;;  %v1864_v57 = vadd.f32 %v1809_v3, %v5189_v60 }
 0x17c   : > { %v3792_v22 = vpop.f32.mrf.mxu0  ;;  %v3758_v29 = vpop.f32.mrf.mxu1 }
 0x17d   : > { %5750 = vst [vmem:[#allocation18_spill] sm:$0xff] %v5286_v52  ;;  %v5289_v31 = vadd.f32 %v2037_v30, %v1864_v57  ;;  %v1867_v36 = vadd.f32 %v3758_v29, %v5191_v26 }
 0x17e   : > { %v2040_v10 = vpop.f32.mrf.mxu0  ;;  %v1812_v53 = vpop.f32.mrf.mxu1 }
 0x17f   : > { %5751 = vst [vmem:[#allocation19_spill] sm:$0xff] %v5289_v31  ;;  %v5292_v47 = vadd.f32 %v3792_v22, %v1867_v36  ;;  %v1865_v56 = vadd.f32 %v1812_v53, %v5195_v19 }
 0x180   : > { %v3795_v13 = vpop.f32.mrf.mxu0  ;;  %v3761_v40 = vpop.f32.mrf.mxu1 }
 0x181   : > { %5752 = vst [vmem:[#allocation3_spill] sm:$0xff] %v5292_v47  ;;  %v5295_v21 = vadd.f32 %v2040_v10, %v1865_v56  ;;  %v1870_v50 = vadd.f32 %v3761_v40, %v5203_v48 }
 0x182   : > { %v2053_v25 = vpop.f32.mrf.mxu0  ;;  %v1825_v60 = vpop.f32.mrf.mxu1 }
 0x183   : > { %5753 = vst [vmem:[#allocation10_spill] sm:$0xff] %v5295_v21  ;;  %v5298_v42 = vadd.f32 %v3795_v13, %v1870_v50  ;;  %v1868_v20 = vadd.f32 %v1825_v60, %v5207_v2 }
 0x184   : > { %v3796_v43 = vpop.f32.mrf.mxu0  ;;  %v3762_v26 = vpop.f32.mrf.mxu1 }
 0x185   : > { %5754 = vst [vmem:[#allocation12_spill] sm:$0xff] %v5298_v42  ;;  %v5301_v23 = vadd.f32 %v2053_v25, %v1868_v20  ;;  %v1871_v33 = vadd.f32 %v3762_v26, %v5209_v61 }
 0x186   : > { %v2056_v11 = vpop.f32.mrf.mxu0  ;;  %v1828_v19 = vpop.f32.mrf.mxu1 }
 0x187   : > { %5755 = vst [vmem:[#allocation15_spill] sm:$0xff] %v5301_v23  ;;  %v5304_v16 = vadd.f32 %v3796_v43, %v1871_v33  ;;  %v1869_v4 = vadd.f32 %v1828_v19, %v5211_v14 }
 0x188   : > { %v5307_v46 = vpop.f32.mrf.mxu0  ;;  %v3801_v48 = vpop.f32.mrf.mxu1 }
 0x189   : > { %5756 = vst [vmem:[#allocation5_spill] sm:$0xff] %v5304_v16  ;;  %v5309_v28 = vadd.f32 %v2056_v11, %v1869_v4 }
 0x18a   : > { %v5311_v62 = vpop.f32.mrf.mxu0  ;;  %v2153_v2 = vpop.f32.mrf.mxu1 }
 0x18b   : > { %5757 = vst [vmem:[#allocation2_spill] sm:$0xff] %v5309_v28 }
 0x18c   : > { %v5313_v1 = vpop.f32.mrf.mxu0  ;;  %v3802_v34 = vpop.f32.mrf.mxu1 }
 0x18e   : > { %v5315_v5 = vpop.f32.mrf.mxu0  ;;  %v5317_v61 = vpop.f32.mrf.mxu1 }
 0x190   : > { %v5319_v37 = vpop.f32.mrf.mxu0  ;;  %v5321_v49 = vpop.f32.mrf.mxu1 }
 0x192   : > { %v5323_v14 = vpop.f32.mrf.mxu0  ;;  %v5325_v30 = vpop.f32.mrf.mxu1 }
 0x194   : > { %v5327_v3 = vpop.f32.mrf.mxu0  ;;  %v5329_v57 = vpop.f32.mrf.mxu1 }
 0x196   : > { %v5331_v22 = vpop.f32.mrf.mxu0  ;;  %v5333_v29 = vpop.f32.mrf.mxu1 }
 0x198   : > { %v5335_v36 = vpop.f32.mrf.mxu0  ;;  %v5337_v10 = vpop.f32.mrf.mxu1 }
 0x19a   : > { %v5339_v53 = vpop.f32.mrf.mxu0  ;;  %v5341_v56 = vpop.f32.mrf.mxu1 }
 0x19c   : > { %v5343_v13 = vpop.f32.mrf.mxu0  ;;  %v5345_v40 = vpop.f32.mrf.mxu1 }
 0x19e   : > { %v5347_v50 = vpop.f32.mrf.mxu0  ;;  %v5349_v25 = vpop.f32.mrf.mxu1 }
 0x1a0   : > { %v5351_v60 = vpop.f32.mrf.mxu0  ;;  %v5353_v20 = vpop.f32.mrf.mxu1 }
 0x1a2   : > { %v5355_v43 = vpop.f32.mrf.mxu0  ;;  %v5357_v26 = vpop.f32.mrf.mxu1 }
 0x1a4   : > { %v5359_v33 = vpop.f32.mrf.mxu0  ;;  %v5361_v11 = vpop.f32.mrf.mxu1 }
 0x1a6   : > { %v5363_v19 = vpop.f32.mrf.mxu0  ;;  %v5365_v4 = vpop.f32.mrf.mxu1 }
 0x1a8   : > { %v5367_v28 = vpop.f32.mrf.mxu0  ;;  %v5369_v16 = vpop.f32.mrf.mxu1 }
 0x1aa   : > { %v5371_v23 = vpop.f32.mrf.mxu0  ;;  %v5373_v42 = vpop.f32.mrf.mxu1 }
 0x1ab   : > { %5758 = vst [vmem:[#allocation4_spill] sm:$0xff] %v5371_v23 }
 0x1ac   : > { %v5375_v21 = vpop.f32.mrf.mxu0  ;;  %v5377_v47 = vpop.f32.mrf.mxu1 }
 0x1ad   : > { %5759 = vst [vmem:[#allocation6_spill] sm:$0xff] %v5375_v21  ;;  %5760 = vst [vmem:[#allocation8_spill] sm:$0xff] %v5377_v47 }
 0x1ae   : > { %v5379_v31 = vpop.f32.mrf.mxu0  ;;  %v5381_v52 = vpop.f32.mrf.mxu1 }
 0x1af   : > { %5761 = vst [vmem:[#allocation11_spill] sm:$0xff] %v5379_v31  ;;  %5762 = vst [vmem:[#allocation20_spill] sm:$0xff] %v5381_v52 }
 0x1b0   : > { %v5383_v44 = vpop.f32.mrf.mxu0  ;;  %v5385_v58 = vpop.f32.mrf.mxu1 }
 0x1b1   : > { %5763 = vst [vmem:[#allocation21_spill] sm:$0xff] %v5383_v44  ;;  %5764 = vst [vmem:[#allocation22_spill] sm:$0xff] %v5385_v58 }
 0x1b2   : > { %v5387_v63 = vpop.f32.mrf.mxu0  ;;  %v5389_v17 = vpop.f32.mrf.mxu1 }
 0x1b3   : > { %5765 = vst [vmem:[#allocation23_spill] sm:$0xff] %v5387_v63  ;;  %5766 = vst [vmem:[#allocation24_spill] sm:$0xff] %v5389_v17 }
 0x1b4   : > { %v5391_v45 = vpop.f32.mrf.mxu0  ;;  %v5393_v23 = vpop.f32.mrf.mxu1 }
 0x1b5   : > { %5767 = vst [vmem:[#allocation25_spill] sm:$0xff] %v5391_v45  ;;  %5768 = vst [vmem:[#allocation26_spill] sm:$0xff] %v5393_v23 }
 0x1b6   : > { %v5395_v12 = vpop.f32.mrf.mxu0  ;;  %v5397_v21 = vpop.f32.mrf.mxu1 }
 0x1b7   : > { %5769 = vst [vmem:[#allocation27_spill] sm:$0xff] %v5395_v12  ;;  %5770 = vst [vmem:[#allocation28_spill] sm:$0xff] %v5397_v21 }
 0x1b8   : > { %v5399_v47 = vpop.f32.mrf.mxu0  ;;  %v5401_v31 = vpop.f32.mrf.mxu1 }
 0x1b9   : > { %5771 = vst [vmem:[#allocation29_spill] sm:$0xff] %v5399_v47  ;;  %5772 = vst [vmem:[#allocation30_spill] sm:$0xff] %v5401_v31 }
 0x1ba   : > { %v5403_v52 = vpop.f32.mrf.mxu0  ;;  %v5405_v44 = vpop.f32.mrf.mxu1 }
 0x1bb   : > { %5773 = vst [vmem:[#allocation31_spill] sm:$0xff] %v5403_v52  ;;  %5774 = vst [vmem:[#allocation32_spill] sm:$0xff] %v5405_v44  ;;  %v2282_v52 = vadd.f32 %v3801_v48, %v5214_v41  ;;  %v2281_v41 = vadd.f32 %v5317_v61, %v5223_v9 }
 0x1bc   : > { %v5407_v58 = vpop.f32.mrf.mxu0  ;;  %v5409_v63 = vpop.f32.mrf.mxu1 }
 0x1bd   : > { %5775 = vst [vmem:[#allocation33_spill] sm:$0xff] %v5407_v58  ;;  %5776 = vst [vmem:[#allocation34_spill] sm:$0xff] %v5409_v63  ;;  %v2280_v63 = vadd.f32 %v2153_v2, %v5217_v35  ;;  %v2286_v35 = vadd.f32 %v5321_v49, %v5226_v15 }
 0x1be   : > { %v5411_v17 = vpop.f32.mrf.mxu0  ;;  %v5413_v45 = vpop.f32.mrf.mxu1 }
 0x1bf   : > { %5777 = vst [vmem:[#allocation35_spill] sm:$0xff] %v5411_v17  ;;  %5778 = vst [vmem:[#allocation36_spill] sm:$0xff] %v5413_v45 }
 0x1c0   : > { %v5415_v23 = vpop.f32.mrf.mxu0  ;;  %v5417_v12 = vpop.f32.mrf.mxu1 }
 0x1c1   : > { %5779 = vst [vmem:[#allocation37_spill] sm:$0xff] %v5415_v23  ;;  %5780 = vst [vmem:[#allocation38_spill] sm:$0xff] %v5417_v12  ;;  %v2488_v23 = vadd.f32 %v5307_v46, %v2282_v52  ;;  %v2283_v12 = vadd.f32 %v3802_v34, %v5220_v54  ;;  %v2284_v54 = vadd.f32 %v5325_v30, %v5229_v18 }
 0x1c2   : > { %v5419_v47 = vpop.f32.mrf.mxu0  ;;  %v5421_v31 = vpop.f32.mrf.mxu1  ;;  %v2287_v18 = vadd.f32 %v5329_v57, %v5232_v7  ;;  %v2290_v30 = vadd.f32 %v5337_v10, %v5238_v27 }
 0x1c3   : > { %5781 = vst [vmem:[#allocation39_spill] sm:$0xff] %v5419_v47  ;;  %5782 = vst [vmem:[#allocation40_spill] sm:$0xff] %v5421_v31  ;;  %v2486_v31 = vadd.f32 %v5311_v62, %v2280_v63  ;;  %v2487_v63 = vadd.f32 %v5315_v5, %v2281_v41  ;;  %v2490_v5 = vadd.f32 %v5323_v14, %v2284_v54 }
 0x1c4   : > { %v5424_v44 = vpop.f32.mrf.mxu0  ;;  %v5426_v58 = vpop.f32.mrf.mxu1  ;;  %v2493_v41 = vadd.f32 %v5327_v3, %v2287_v18  ;;  %v2496_v54 = vadd.f32 %v5335_v36, %v2290_v30 }
 0x1c5   : > { %5783 = vst [vmem:[#allocation41_spill] sm:$0xff] %v5424_v44 }
 0x1c6   : > { %v5429_v17 = vpop.f32.mrf.mxu0  ;;  %v5431_v45 = vpop.f32.mrf.mxu1 }
 0x1c7   : > { %5784 = vst [vmem:[#allocation42_spill] sm:$0xff] %v5429_v17  ;;  %5785 = vst [vmem:[#allocation43_spill] sm:$0xff] %v5431_v45  ;;  %v2489_v17 = vadd.f32 %v5313_v1, %v2283_v12 }
 0x1c8   : > { %v3903_v21 = vpop.f32.mrf.mxu0  ;;  %v3869_v47 = vpop.f32.mrf.mxu1 }
 0x1c9   : > { %v2716_v48 = vadd.f32 %v3869_v47, %v2488_v23 }
 0x1ca   : > { %v2799_v44 = vpop.f32.mrf.mxu0  ;;  %v2587_v2 = vpop.f32.mrf.mxu1 }
 0x1cb   : > { %v2928_v45 = vadd.f32 %v3903_v21, %v2716_v48  ;;  %v2714_v52 = vadd.f32 %v2587_v2, %v2486_v31  ;;  %v2492_v31 = vadd.f32 %v5319_v37, %v2286_v35 }
 0x1cc   : > { %v3904_v46 = vpop.f32.mrf.mxu0  ;;  %v3870_v9 = vpop.f32.mrf.mxu1 }
 0x1cd   : > { %v3444_v15 = vpack.c.bf16 %v2928_v45, %v2928_v45  ;;  %v2926_v47 = vadd.f32 %v2799_v44, %v2714_v52  ;;  %v2717_v12 = vadd.f32 %v3870_v9, %v2489_v17  ;;  %v2285_v45 = vadd.f32 %v5333_v29, %v5235_v59 }
 0x1ce   : > { %v2802_v21 = vpop.f32.mrf.mxu0  ;;  %v2590_v23 = vpop.f32.mrf.mxu1  ;;  %v2288_v29 = vadd.f32 %v5341_v56, %v5241_v0 }
 0x1cf   : > { %3089 = vst.msk [vmem:[%s5447_s16 + $0x8] sm:$0xf] %vm3086_vm8, %v3444_v15  ;;  %v3442_v62 = vpack.c.bf16 %v2926_v47, %v2926_v47  ;;  %v2929_v1 = vadd.f32 %v3904_v46, %v2717_v12  ;;  %v2715_v34 = vadd.f32 %v2590_v23, %v2487_v63  ;;  %v2491_v52 = vadd.f32 %v5331_v22, %v2285_v45 }
 0x1d0   : > { %v3907_v61 = vpop.f32.mrf.mxu0  ;;  %v3873_v49 = vpop.f32.mrf.mxu1  ;;  %v2291_v63 = vadd.f32 %v5345_v40, %v5244_v32  ;;  %v2494_v47 = vadd.f32 %v5339_v53, %v2288_v29  ;;  %v2294_v40 = vadd.f32 %v5353_v20, %v5250_v24 }
 0x1d1   : > { %3087 = vst.msk [vmem:[%s5447_s16] sm:$0xf] %vm3086_vm8, %v3442_v62  ;;  %v3445_v17 = vpack.c.bf16 %v2929_v1, %v2929_v1  ;;  %v2927_v44 = vadd.f32 %v2802_v21, %v2715_v34  ;;  %v2720_v37 = vadd.f32 %v3873_v49, %v2492_v31  ;;  %v2289_v21 = vadd.f32 %v5349_v25, %v5247_v39 }
 0x1d2   : > { %v2815_v7 = vpop.f32.mrf.mxu0  ;;  %v2603_v57 = vpop.f32.mrf.mxu1  ;;  %v2497_v62 = vadd.f32 %v5343_v13, %v2291_v63  ;;  %v2292_v25 = vadd.f32 %v5357_v26, %v5253_v38  ;;  %v2500_v45 = vadd.f32 %v5351_v60, %v2294_v40 }
 0x1d3   : > { %3090 = vst.msk [vmem:[%s5447_s16 + $0xc] sm:$0xf] %vm3086_vm8, %v3445_v17  ;;  %v3443_v14 = vpack.c.bf16 %v2927_v44, %v2927_v44  ;;  %v2932_v48 = vadd.f32 %v3907_v61, %v2720_v37  ;;  %v2718_v35 = vadd.f32 %v2603_v57, %v2490_v5  ;;  %v2495_v5 = vadd.f32 %v5347_v50, %v2289_v21 }
 0x1d4   : > { %v3908_v59 = vpop.f32.mrf.mxu0  ;;  %v3874_v2 = vpop.f32.mrf.mxu1  ;;  %v2295_v44 = vadd.f32 %v5361_v11, %v5256_v51  ;;  %v2293_v57 = vadd.f32 %v5365_v4, %v5259_v6  ;;  %v2298_v11 = vadd.f32 %v5369_v16, %v5262_v55  ;;  %v2296_v4 = vadd.f32 %v5373_v42, %v5265_v8 }
 0x1d5   : > { %3088 = vst.msk [vmem:[%s5447_s16 + $0x4] sm:$0xf] %vm3086_vm8, %v3443_v14  ;;  %v3448_v27 = vpack.c.bf16 %v2932_v48, %v2932_v48  ;;  %v2930_v10 = vadd.f32 %v2815_v7, %v2718_v35  ;;  %v2721_v46 = vadd.f32 %v3874_v2, %v2493_v41  ;;  %v2498_v7 = vadd.f32 %v5355_v43, %v2292_v25 }
 0x1d6   : > { %v2818_v3 = vpop.f32.mrf.mxu0  ;;  %v2606_v9 = vpop.f32.mrf.mxu1  ;;  %v2501_v35 = vadd.f32 %v5359_v33, %v2295_v44 }
 0x1d7   : > { %3093 = vst.msk [vmem:[%s5447_s16 + $0x18] sm:$0xf] %vm3086_vm8, %v3448_v27  ;;  %v3446_v0 = vpack.c.bf16 %v2930_v10, %v2930_v10  ;;  %v2933_v56 = vadd.f32 %v3908_v59, %v2721_v46  ;;  %v2719_v15 = vadd.f32 %v2606_v9, %v2491_v52  ;;  %v2499_v52 = vadd.f32 %v5363_v19, %v2293_v57 }
 0x1d8   : > { %v3911_v22 = vpop.f32.mrf.mxu0  ;;  %v3877_v12 = vpop.f32.mrf.mxu1  ;;  %v2504_v10 = vadd.f32 %v5367_v28, %v2298_v11  ;;  %v5800_v11 = vld [vmem:[#allocation23_spill] sm:$0xff] }
 0x1d9   : > { %3091 = vst.msk [vmem:[%s5447_s16 + $0x10] sm:$0xf] %vm3086_vm8, %v3446_v0  ;;  %v3449_v36 = vpack.c.bf16 %v2933_v56, %v2933_v56  ;;  %v2931_v31 = vadd.f32 %v2818_v3, %v2719_v15  ;;  %v2724_v23 = vadd.f32 %v3877_v12, %v2496_v54  ;;  %v5786_v3 = vld [vmem:[#allocation14_spill] sm:$0xff]  ;;  %v5787_v54 = vld [vmem:[#allocation8_spill] sm:$0xff] }
 0x1da   : > { %v2831_v32 = vpop.f32.mrf.mxu0  ;;  %v2619_v18 = vpop.f32.mrf.mxu1  ;;  %v2299_v9 = vadd.f32 %v5787_v54, %v5786_v3  ;;  %v5788_v0 = vld [vmem:[#allocation4_spill] sm:$0xff] }
 0x1db   : > { %3094 = vst.msk [vmem:[%s5447_s16 + $0x1c] sm:$0xf] %vm3086_vm8, %v3449_v36  ;;  %v3447_v53 = vpack.c.bf16 %v2931_v31, %v2931_v31  ;;  %v2936_v1 = vadd.f32 %v3911_v22, %v2724_v23  ;;  %v2722_v34 = vadd.f32 %v2619_v18, %v2494_v47  ;;  %v2502_v56 = vadd.f32 %v5788_v0, %v2296_v4  ;;  %v5789_v22 = vld [vmem:[#allocation16_spill] sm:$0xff]  ;;  %v5791_v23 = vld [vmem:[#allocation7_spill] sm:$0xff] }
 0x1dc   : > { %v3912_v39 = vpop.f32.mrf.mxu0  ;;  %v3878_v61 = vpop.f32.mrf.mxu1  ;;  %v5790_v47 = vld [vmem:[#allocation20_spill] sm:$0xff] }
 0x1dd   : > { %3092 = vst.msk [vmem:[%s5447_s16 + $0x14] sm:$0xf] %vm3086_vm8, %v3447_v53  ;;  %v3452_v24 = vpack.c.bf16 %v2936_v1, %v2936_v1  ;;  %v2934_v20 = vadd.f32 %v2831_v32, %v2722_v34  ;;  %v2725_v49 = vadd.f32 %v3878_v61, %v2497_v62  ;;  %v2297_v12 = vadd.f32 %v5790_v47, %v5789_v22  ;;  %v5792_v32 = vld [vmem:[#allocation22_spill] sm:$0xff]  ;;  %v5794_v61 = vld [vmem:[#allocation17_spill] sm:$0xff] }
 0x1de   : > { %v2834_v13 = vpop.f32.mrf.mxu0  ;;  %v2622_v17 = vpop.f32.mrf.mxu1  ;;  %v2302_v40 = vadd.f32 %v5792_v32, %v5791_v23  ;;  %v5793_v62 = vld [vmem:[#allocation6_spill] sm:$0xff]  ;;  %v5810_v23 = vld [vmem:[#allocation3_spill] sm:$0xff] }
 0x1df   : > { %3097 = vst.msk [vmem:[%s5447_s16 + $0x28] sm:$0xf] %vm3086_vm8, %v3452_v24  ;;  %v3450_v38 = vpack.c.bf16 %v2934_v20, %v2934_v20  ;;  %v2937_v26 = vadd.f32 %v3912_v39, %v2725_v49  ;;  %v2723_v37 = vadd.f32 %v2622_v17, %v2495_v5  ;;  %v2505_v53 = vadd.f32 %v5793_v62, %v2299_v9  ;;  %v5795_v5 = vld [vmem:[#allocation24_spill] sm:$0xff]  ;;  %v5796_v49 = vld [vmem:[#allocation11_spill] sm:$0xff]  ;;  %v5811_v32 = vld [vmem:[#allocation34_spill] sm:$0xff] }
 0x1e0   : > { %v3915_v50 = vpop.f32.mrf.mxu0  ;;  %v3881_v30 = vpop.f32.mrf.mxu1  ;;  %v2300_v24 = vadd.f32 %v5795_v5, %v5794_v61  ;;  %v5813_v61 = vld [vmem:[#allocation10_spill] sm:$0xff]  ;;  %v5814_v5 = vld [vmem:[#allocation36_spill] sm:$0xff] }
 0x1e1   : > { %3095 = vst.msk [vmem:[%s5447_s16 + $0x20] sm:$0xf] %vm3086_vm8, %v3450_v38  ;;  %v3453_v60 = vpack.c.bf16 %v2937_v26, %v2937_v26  ;;  %v2935_v41 = vadd.f32 %v2834_v13, %v2723_v37  ;;  %v2728_v14 = vadd.f32 %v3881_v30, %v2500_v45  ;;  %v2503_v13 = vadd.f32 %v5796_v49, %v2297_v12  ;;  %v5797_v26 = vld [vmem:[#allocation21_spill] sm:$0xff]  ;;  %v5799_v30 = vld [vmem:[#allocation26_spill] sm:$0xff] }
 0x1e2   : > { %v2847_v51 = vpop.f32.mrf.mxu0  ;;  %v2635_v48 = vpop.f32.mrf.mxu1  ;;  %v2508_v37 = vadd.f32 %v5797_v26, %v2302_v40  ;;  %v2307_v40 = vadd.f32 %v5811_v32, %v5810_v23  ;;  %v5827_v23 = vld [vmem:[#allocation42_spill] sm:$0xff] }
 0x1e3   : > { %3098 = vst.msk [vmem:[%s5447_s16 + $0x2c] sm:$0xf] %vm3086_vm8, %v3453_v60  ;;  %v3451_v43 = vpack.c.bf16 %v2935_v41, %v2935_v41  ;;  %v2940_v59 = vadd.f32 %v3915_v50, %v2728_v14  ;;  %v2726_v29 = vadd.f32 %v2635_v48, %v2498_v7  ;;  %v5798_v7 = vld [vmem:[#allocation9_spill] sm:$0xff]  ;;  %v2506_v48 = vadd.f32 %v5800_v11, %v2300_v24 }
 0x1e4   : > { %v3916_v6 = vpop.f32.mrf.mxu0  ;;  %v3882_v2 = vpop.f32.mrf.mxu1  ;;  %v2303_v57 = vadd.f32 %v5799_v30, %v5798_v7  ;;  %v2305_v24 = vadd.f32 %v5814_v5, %v5813_v61 }
 0x1e5   : > { %3096 = vst.msk [vmem:[%s5447_s16 + $0x24] sm:$0xf] %vm3086_vm8, %v3451_v43  ;;  %v3456_v55 = vpack.c.bf16 %v2940_v59, %v2940_v59  ;;  %v2938_v16 = vadd.f32 %v2847_v51, %v2726_v29  ;;  %v2729_v27 = vadd.f32 %v3882_v2, %v2501_v35  ;;  %v5801_v43 = vld [vmem:[#allocation13_spill] sm:$0xff]  ;;  %v5802_v59 = vld [vmem:[#allocation28_spill] sm:$0xff] }
 0x1e6   : > { %v2850_v33 = vpop.f32.mrf.mxu0  ;;  %v2638_v46 = vpop.f32.mrf.mxu1  ;;  %v2301_v29 = vadd.f32 %v5802_v59, %v5801_v43 }
 0x1e7   : > { %3101 = vst.msk [vmem:[%s5447_s16 + $0x38] sm:$0xf] %vm3086_vm8, %v3456_v55  ;;  %v3454_v8 = vpack.c.bf16 %v2938_v16, %v2938_v16  ;;  %v2941_v42 = vadd.f32 %v3916_v6, %v2729_v27  ;;  %v2727_v63 = vadd.f32 %v2638_v46, %v2499_v52  ;;  %v5803_v55 = vld [vmem:[#allocation18_spill] sm:$0xff] }
 0x1e8   : > { %v3919_v19 = vpop.f32.mrf.mxu0  ;;  %v3885_v15 = vpop.f32.mrf.mxu1  ;;  %v5804_v16 = vld [vmem:[#allocation30_spill] sm:$0xff] }
 0x1e9   : > { %3099 = vst.msk [vmem:[%s5447_s16 + $0x30] sm:$0xf] %vm3086_vm8, %v3454_v8  ;;  %v3457_v28 = vpack.c.bf16 %v2941_v42, %v2941_v42  ;;  %v2939_v21 = vadd.f32 %v2850_v33, %v2727_v63  ;;  %v2732_v36 = vadd.f32 %v3885_v15, %v2504_v10  ;;  %v2306_v27 = vadd.f32 %v5804_v16, %v5803_v55  ;;  %v5805_v10 = vld [vmem:[#allocation25_spill] sm:$0xff]  ;;  %v5806_v42 = vld [vmem:[#allocation19_spill] sm:$0xff]  ;;  %v5807_v63 = vld [vmem:[#allocation32_spill] sm:$0xff] }
 0x1ea   : > { %v2863_v31 = vpop.f32.mrf.mxu0  ;;  %v2651_v18 = vpop.f32.mrf.mxu1  ;;  %v2509_v46 = vadd.f32 %v5805_v10, %v2303_v57  ;;  %v5822_v55 = vld [vmem:[#allocation5_spill] sm:$0xff] }
 0x1eb   : > { %3102 = vst.msk [vmem:[%s5447_s16 + $0x3c] sm:$0xf] %vm3086_vm8, %v3457_v28  ;;  %v3455_v1 = vpack.c.bf16 %v2939_v21, %v2939_v21  ;;  %v2944_v34 = vadd.f32 %v3919_v19, %v2732_v36  ;;  %v2730_v39 = vadd.f32 %v2651_v18, %v2502_v56  ;;  %v2304_v19 = vadd.f32 %v5807_v63, %v5806_v42  ;;  %v5808_v56 = vld [vmem:[#allocation27_spill] sm:$0xff]  ;;  %v5809_v21 = vld [vmem:[#allocation29_spill] sm:$0xff] }
 0x1ec   : > { %v3920_v25 = vpop.f32.mrf.mxu0  ;;  %v3886_v20 = vpop.f32.mrf.mxu1  ;;  %v2507_v15 = vadd.f32 %v5808_v56, %v2301_v29  ;;  %v2512_v36 = vadd.f32 %v5809_v21, %v2306_v27  ;;  %v2311_v16 = vadd.f32 %v5426_v58, %v5822_v55  ;;  %v5825_v42 = vld [vmem:[#allocation43_spill] sm:$0xff] }
 0x1ed   : > { %3100 = vst.msk [vmem:[%s5447_s16 + $0x34] sm:$0xf] %vm3086_vm8, %v3455_v1  ;;  %v3460_v45 = vpack.c.bf16 %v2944_v34, %v2944_v34  ;;  %v2942_v17 = vadd.f32 %v2863_v31, %v2730_v39  ;;  %v2733_v44 = vadd.f32 %v3886_v20, %v2505_v53  ;;  %v5812_v34 = vld [vmem:[#allocation31_spill] sm:$0xff] }
 0x1ee   : > { %v2866_v38 = vpop.f32.mrf.mxu0  ;;  %v2654_v50 = vpop.f32.mrf.mxu1  ;;  %v2510_v39 = vadd.f32 %v5812_v34, %v2304_v19 }
 0x1ef   : > { %3105 = vst.msk [vmem:[%s5447_s16 + $0x48] sm:$0xf] %vm3086_vm8, %v3460_v45  ;;  %v3458_v60 = vpack.c.bf16 %v2942_v17, %v2942_v17  ;;  %v2945_v41 = vadd.f32 %v3920_v25, %v2733_v44  ;;  %v2731_v14 = vadd.f32 %v2654_v50, %v2503_v13  ;;  %v5815_v17 = vld [vmem:[#allocation12_spill] sm:$0xff]  ;;  %v5816_v44 = vld [vmem:[#allocation38_spill] sm:$0xff] }
 0x1f0   : > { %v3923_v51 = vpop.f32.mrf.mxu0  ;;  %v3889_v35 = vpop.f32.mrf.mxu1 }
 0x1f1   : > { %3103 = vst.msk [vmem:[%s5447_s16 + $0x40] sm:$0xf] %vm3086_vm8, %v3458_v60  ;;  %v3461_v6 = vpack.c.bf16 %v2945_v41, %v2945_v41  ;;  %v2943_v4 = vadd.f32 %v2866_v38, %v2731_v14  ;;  %v2736_v2 = vadd.f32 %v3889_v35, %v2508_v37  ;;  %v2310_v38 = vadd.f32 %v5816_v44, %v5815_v17  ;;  %v5817_v37 = vld [vmem:[#allocation33_spill] sm:$0xff]  ;;  %v5818_v41 = vld [vmem:[#allocation15_spill] sm:$0xff]  ;;  %v5819_v14 = vld [vmem:[#allocation40_spill] sm:$0xff] }
 0x1f2   : > { %v2879_v52 = vpop.f32.mrf.mxu0  ;;  %v2667_v33 = vpop.f32.mrf.mxu1  ;;  %v2513_v50 = vadd.f32 %v5817_v37, %v2307_v40 }
 0x1f3   : > { %3106 = vst.msk [vmem:[%s5447_s16 + $0x4c] sm:$0xf] %vm3086_vm8, %v3461_v6  ;;  %v3459_v3 = vpack.c.bf16 %v2943_v4, %v2943_v4  ;;  %v2948_v54 = vadd.f32 %v3923_v51, %v2736_v2  ;;  %v2734_v9 = vadd.f32 %v2667_v33, %v2506_v48  ;;  %v2308_v51 = vadd.f32 %v5819_v14, %v5818_v41  ;;  %v5820_v48 = vld [vmem:[#allocation35_spill] sm:$0xff]  ;;  %v5821_v4 = vld [vmem:[#allocation37_spill] sm:$0xff] }
 0x1f4   : > { %v3924_v8 = vpop.f32.mrf.mxu0  ;;  %v3890_v0 = vpop.f32.mrf.mxu1  ;;  %v2511_v35 = vadd.f32 %v5820_v48, %v2305_v24  ;;  %v2516_v2 = vadd.f32 %v5821_v4, %v2310_v38 }
 0x1f5   : > { %3104 = vst.msk [vmem:[%s5447_s16 + $0x44] sm:$0xf] %vm3086_vm8, %v3459_v3  ;;  %v3464_v22 = vpack.c.bf16 %v2948_v54, %v2948_v54  ;;  %v2946_v47 = vadd.f32 %v2879_v52, %v2734_v9  ;;  %v2737_v12 = vadd.f32 %v3890_v0, %v2509_v46  ;;  %v5823_v3 = vld [vmem:[#allocation39_spill] sm:$0xff] }
 0x1f6   : > { %v2882_v28 = vpop.f32.mrf.mxu0  ;;  %v2670_v31 = vpop.f32.mrf.mxu1  ;;  %v2514_v54 = vadd.f32 %v5823_v3, %v2308_v51 }
 0x1f7   : > { %3109 = vst.msk [vmem:[%s5447_s16 + $0x58] sm:$0xf] %vm3086_vm8, %v3464_v22  ;;  %v3462_v18 = vpack.c.bf16 %v2946_v47, %v2946_v47  ;;  %v2949_v62 = vadd.f32 %v3924_v8, %v2737_v12  ;;  %v2735_v53 = vadd.f32 %v2670_v31, %v2507_v15  ;;  %v5824_v8 = vld [vmem:[#allocation2_spill] sm:$0xff]  ;;  %v5826_v22 = vld [vmem:[#allocation41_spill] sm:$0xff] }
 0x1f8   : > { %v3927_v1 = vpop.f32.mrf.mxu0  ;;  %v3893_v25 = vpop.f32.mrf.mxu1  ;;  %v2309_v63 = vadd.f32 %v5825_v42, %v5824_v8  ;;  %v2517_v47 = vadd.f32 %v5826_v22, %v2311_v16 }
 0x1f9   : > { %3107 = vst.msk [vmem:[%s5447_s16 + $0x50] sm:$0xf] %vm3086_vm8, %v3462_v18  ;;  %v3465_v20 = vpack.c.bf16 %v2949_v62, %v2949_v62  ;;  %v2947_v49 = vadd.f32 %v2882_v28, %v2735_v53  ;;  %v2740_v13 = vadd.f32 %v3893_v25, %v2512_v36 }
 0x1fa   : > { %v2895_v45 = vpop.f32.mrf.mxu0  ;;  %v2683_v26 = vpop.f32.mrf.mxu1  ;;  %v2515_v32 = vadd.f32 %v5827_v23, %v2309_v63 }
 0x1fb   : > { %3110 = vst.msk [vmem:[%s5447_s16 + $0x5c] sm:$0xf] %vm3086_vm8, %v3465_v20  ;;  %v3463_v7 = vpack.c.bf16 %v2947_v49, %v2947_v49  ;;  %v2952_v30 = vadd.f32 %v3927_v1, %v2740_v13  ;;  %v2738_v57 = vadd.f32 %v2683_v26, %v2510_v39 }
 0x1fc   : > { %v3928_v60 = vpop.f32.mrf.mxu0  ;;  %v3894_v11 = vpop.f32.mrf.mxu1 }
 0x1fd   : > { %3108 = vst.msk [vmem:[%s5447_s16 + $0x54] sm:$0xf] %vm3086_vm8, %v3463_v7  ;;  %v3468_v43 = vpack.c.bf16 %v2952_v30, %v2952_v30  ;;  %v2950_v59 = vadd.f32 %v2895_v45, %v2738_v57  ;;  %v2741_v29 = vadd.f32 %v3894_v11, %v2513_v50 }
 0x1fe   : > { %v2898_v6 = vpop.f32.mrf.mxu0  ;;  %v2686_v52 = vpop.f32.mrf.mxu1 }
 0x1ff   : > { %3113 = vst.msk [vmem:[%s5447_s16 + $0x68] sm:$0xf] %vm3086_vm8, %v3468_v43  ;;  %v3466_v27 = vpack.c.bf16 %v2950_v59, %v2950_v59  ;;  %v2953_v33 = vadd.f32 %v3928_v60, %v2741_v29  ;;  %v2739_v10 = vadd.f32 %v2686_v52, %v2511_v35 }
 0x200   : > { %v3931_v46 = vpop.f32.mrf.mxu0  ;;  %v3897_v9 = vpop.f32.mrf.mxu1 }
 0x201   : > { %3111 = vst.msk [vmem:[%s5447_s16 + $0x60] sm:$0xf] %vm3086_vm8, %v3466_v27  ;;  %v3469_v19 = vpack.c.bf16 %v2953_v33, %v2953_v33  ;;  %v2951_v0 = vadd.f32 %v2898_v6, %v2739_v10  ;;  %v2744_v56 = vadd.f32 %v3897_v9, %v2516_v2 }
 0x202   : > { %v2911_v58 = vpop.f32.mrf.mxu0  ;;  %v2699_v15 = vpop.f32.mrf.mxu1 }
 0x203   : > { %3114 = vst.msk [vmem:[%s5447_s16 + $0x6c] sm:$0xf] %vm3086_vm8, %v3469_v19  ;;  %v3467_v12 = vpack.c.bf16 %v2951_v0, %v2951_v0  ;;  %v2956_v28 = vadd.f32 %v3931_v46, %v2744_v56  ;;  %v2742_v21 = vadd.f32 %v2699_v15, %v2514_v54 }
 0x204   : > { %v3898_v36 = vpop.f32.mrf.mxu1  ;;  %v3932_v31 = vpop.f32.mrf.mxu0 }
 0x205   : > { %3112 = vst.msk [vmem:[%s5447_s16 + $0x64] sm:$0xf] %vm3086_vm8, %v3467_v12  ;;  %v3472_v40 = vpack.c.bf16 %v2956_v28, %v2956_v28  ;;  %v2954_v18 = vadd.f32 %v2911_v58, %v2742_v21  ;;  %v2745_v62 = vadd.f32 %v3898_v36, %v2517_v47 }
 0x206   : > { %v2702_v53 = vpop.f32.mrf.mxu1  ;;  %v2914_v25 = vpop.f32.mrf.mxu0 }
 0x207   : > { %3117 = vst.msk [vmem:[%s5447_s16 + $0x78] sm:$0xf] %vm3086_vm8, %v3472_v40  ;;  %v3470_v1 = vpack.c.bf16 %v2954_v18, %v2954_v18  ;;  %v2957_v34 = vadd.f32 %v3932_v31, %v2745_v62  ;;  %v2743_v39 = vadd.f32 %v2702_v53, %v2515_v32 }
 0x209   : > { %3115 = vst.msk [vmem:[%s5447_s16 + $0x70] sm:$0xf] %vm3086_vm8, %v3470_v1  ;;  %v3473_v61 = vpack.c.bf16 %v2957_v34, %v2957_v34  ;;  %v2955_v5 = vadd.f32 %v2914_v25, %v2743_v39 }
 0x20b   : > { %3118 = vst.msk [vmem:[%s5447_s16 + $0x7c] sm:$0xf] %vm3086_vm8, %v3473_v61  ;;  %v3471_v24 = vpack.c.bf16 %v2955_v5, %v2955_v5 }
 0x20d   : > { %3116 = vst.msk [vmem:[%s5447_s16 + $0x74] sm:$0xf] %vm3086_vm8, %v3471_v24 }
 0x20e PF: > { %s13_s12 = sadd.s32 1, %s3978_s12  }
 0x20f   : > { %p10_p4 = scmp.ge.s32.totalorder %s13_s12, 4  }
 0x211   :  { %12 = sbr.rel (!%p10_p4) target bundleno = 1 (0x1), region = 70 }

// kernel: _lambda_.9
= control target key start
LH: loop header
LB: loop body
LE: loop exit
PB: predicated region body
PF: predicated region fallthrough
CT: control target
= control target key end

     0   :  { %v188_v1 = vmov 0.0   ;;  %vm189_vm0 = vmmov 0   ;;  %vm24_vm1 = vcmask 261120   ;;  %s234_s0 = inlined_call_operand.vmem [shape: bf16[2,16,32], index: 0, kind: input, shape index: {}]   ;;  %s235_s1 = inlined_call_operand.vmem [shape: bf16[32,10], index: 1, kind: input, shape index: {}]   ;;  %s236_s2 = inlined_call_operand.vmem [shape: f32[1,10], index: 2, kind: input, shape index: {}]   ;;  %s237_s3 = inlined_call_operand.hbm [shape: f32[2,10], index: 3, kind: output, shape index: {}]  }
   0x1   :  { %v164_v0 = vld [vmem:[%s235_s1 + $0x8] sm:$0xff]   ;;  %153 = vmatprep.subr.bf16.mxu0 %v188_v1  ;;  %v165_v2 = vld [vmem:[%s235_s1] sm:$0xff]   ;;  %157 = vmatprep.mubr.msk.bf16.mxu0 %vm189_vm0, %v188_v1 }
   0x2   :  { %154 = vmatpush3.bf16.msra.mxu0 %v164_v0  ;;  %v142_v3 = vld [vmem:[%s234_s0] sm:$0xff]   ;;  %v149_v4 = vld [vmem:[%s234_s0 + $0x8] sm:$0xff]  }
   0x3   :  { %155 = vmatprep.subr.bf16.mxu0 %v188_v1  ;;  %v143_v5 = vunpack.c.l.bf16 %v142_v3  ;;  %v144_v6 = vunpack.c.h.bf16 %v142_v3  ;;  %v147_v7 = vunpack.c.l.bf16 %v149_v4  ;;  %v148_v8 = vunpack.c.h.bf16 %v149_v4 }
   0x4   :  { %8 = vsyncpa [#allocation3], 0  ;;  %vm63_vm2 = vcmask 1041409   ;;  %v137_v35 = vld [vmem:[%s236_s2] ss:$0 sm:$0xff]  ;;  %s190_s20 = smov [#allocation2]  }
   0x5   :  { %v25_v9 = vsel %vm24_vm1, %v143_v5, 0.0  ;;  %v26_v10 = vsel %vm24_vm1, %v144_v6, 0.0  ;;  %v34_v11 = vsel %vm24_vm1, %v147_v7, 0.0  ;;  %v35_v12 = vsel %vm24_vm1, %v148_v8, 0.0  ;;  %s129_s21 = sshll.u32 %s190_s20, 4  ;;  %s130_s21 = int_to_ptr.vmem [resolvable:$true] %s129_s21 }
   0x6   :  { %156 = vmatpush3.bf16.msra.mxu0 %v165_v2  ;;  %v27_v13 = vadd.f32 %v26_v10, %v25_v9  ;;  %v36_v14 = vadd.f32 %v35_v12, %v34_v11  ;;  %vm121_vm3 = vcmask 74752   ;;  %s166_s22 = scalar_lea.vmem %s130_s21, 32  ;;  %p171_p1 = scmp.lt.s32.totalorder %s130_s21, %s130_s21 }
   0x7   :  { %p167_p0 = scmp.ne.s32.totalorder %s130_s21, %s166_s22  ;;  %p172_p2 = scmp.lt.s32.totalorder %s166_s22, %s166_s22 }
   0x8   :  { %v28_v15 = vrot.slane %v27_v13, 4  ;;  %v37_v16 = vrot.slane %v36_v14, 4 }
   0x9   :  { %p173_p3 = por %p172_p2, %p171_p1 }
   0xa   :  { %v29_v17 = vadd.f32 %v28_v15, %v27_v13  ;;  %v38_v18 = vadd.f32 %v37_v16, %v36_v14 }
   0xb   :  { %p174_p4 = pnand %p173_p3, %p167_p0 }
   0xc   :  { %v30_v19 = vrot.slane %v29_v17, 2  ;;  %v39_v20 = vrot.slane %v38_v18, 2 }
   0xe   :  { %v31_v21 = vadd.f32 %v30_v19, %v29_v17  ;;  %v40_v22 = vadd.f32 %v39_v20, %v38_v18 }
  0x10   :  { %v32_v23 = vrot.slane %v31_v21, 1  ;;  %v41_v24 = vrot.slane %v40_v22, 1 }
  0x12   :  { %v33_v25 = vadd.f32 %v32_v23, %v31_v21  ;;  %v42_v26 = vadd.f32 %v41_v24, %v40_v22 }
  0x14   :  { %v44_v27 = vmul.f32 0.0625, %v33_v25  ;;  %v45_v28 = vmul.f32 0.0625, %v42_v26 }
  0x16   :  { %v46_v29 = vpack.c.bf16 %v44_v27, %v44_v27  ;;  %v47_v30 = vpack.c.bf16 %v45_v28, %v45_v28 }
  0x18   :  { %v61_v31 = vunpack.c.l.b16 %v46_v29  ;;  %v62_v32 = vunpack.c.l.b16 %v47_v30 }
  0x1a   :  { %v64_v33 = vsel %vm63_vm2, %v62_v32, %v61_v31 }
  0x1b   :  { %v65_v34 = vpack.c.b16 %v64_v33, %v64_v33 }
  0x1d   :  { %158 = vmatmul.mubr.msk.bf16.vlgmr.msra.gmra.mxu0 %vm24_vm1, %v65_v34 }
  0xdd   :  { %v115_v36 = vpop.f32.mrf.mxu0 }
  0xde   :  { %v116_v37 = vadd.f32 %v137_v35, %v115_v36 }
  0xdf   :  { %v159_v38 = vpop.f32.mrf.mxu0 }
  0xe0   :  { %122 = vst.msk [vmem:[#allocation2] sm:$0x3] %vm121_vm3, %v116_v37 }
  0xe1   :  { %v118_v39 = vpop.f32.mrf.mxu0 }
  0xe2   :  { %177 = shalt.err (!%p174_p4)
}
  0xe3   :  { %132 = dma.vmem_to_hbm [thread:$0]  %s130_s21, 32, %s237_s3, [#allocation3]   ;;  %v160_v40 = vpop.f32.mrf.mxu0 }
  0xe4   :  { %186 = dma.done.wait [#allocation3], 32  }
  0xe5   :  { %187 = vsyncadd [#allocation3], 4294967264 }
  0xe6   :  { %136 = vsyncpa [#allocation3], 1 }

// kernel: _lambda_.8
= control target key start
LH: loop header
LB: loop body
LE: loop exit
PB: predicated region body
PF: predicated region fallthrough
CT: control target
= control target key end

     0   :  { %s1909_s21 = smov 0   ;;  %s1911_s22 = smov 0   ;;  %s2063_s0 = inlined_call_operand.vmem [shape: bf16[2,16,8], index: 0, kind: input, shape index: {}]   ;;  %s2064_s1 = inlined_call_operand.vmem [shape: bf16[2,16,8], index: 1, kind: input, shape index: {}]   ;;  %s2065_s2 = inlined_call_operand.vmem [shape: bf16[2,16,8], index: 2, kind: input, shape index: {}]   ;;  %s2066_s3 = inlined_call_operand.vmem [shape: bf16[2,16,8], index: 3, kind: input, shape index: {}]   ;;  %s2067_s4 = inlined_call_operand.vmem [shape: bf16[2,16,16], index: 4, kind: input, shape index: {}]   ;;  %s2068_s5 = inlined_call_operand.vmem [shape: bf16[2,16,16], index: 5, kind: input, shape index: {}]   ;;  %s2069_s6 = inlined_call_operand.vmem [shape: bf16[8,8], index: 6, kind: input, shape index: {}]   ;;  %s2070_s7 = inlined_call_operand.vmem [shape: bf16[8,8], index: 7, kind: input, shape index: {}]   ;;  %s2071_s8 = inlined_call_operand.vmem [shape: f32[1,16], index: 8, kind: input, shape index: {}]   ;;  %s2072_s9 = inlined_call_operand.vmem [shape: bf16[16,16], index: 9, kind: input, shape index: {}]   ;;  %s2073_s10 = inlined_call_operand.vmem [shape: f32[1,16], index: 10, kind: input, shape index: {}]   ;;  %s2074_s11 = inlined_call_operand.vmem [shape: bf16[16,32], index: 11, kind: input, shape index: {}]   ;;  %s2075_s12 = inlined_call_operand.vmem [shape: bf16[16,32], index: 12, kind: input, shape index: {}]   ;;  %s2076_s13 = inlined_call_operand.vmem [shape: bf16[16,32], index: 13, kind: input, shape index: {}]   ;;  %s2077_s14 = inlined_call_operand.vmem [shape: bf16[16,32], index: 14, kind: input, shape index: {}]   ;;  %s2078_s15 = inlined_call_operand.vmem [shape: f32[1,32], index: 15, kind: input, shape index: {}]   ;;  %s2079_s16 = inlined_call_operand.vmem [shape: bf16[2,16,32], index: 16, kind: output, shape index: {}]  }
   0x1   :  { %2080 = sst [smem:[#allocation2_spill]] %s2063_s0  ;;  %s1913_s23 = smov 0  }
   0x2   :  { %2081 = sst [smem:[#allocation3_spill]] %s2069_s6 }
   0x3   :  { %2082 = sst [smem:[#allocation4_spill]] %s2070_s7 }
   0x4   :  { %2083 = sst [smem:[#allocation5_spill]] %s2071_s8 }
   0x5 LB: > { %s38_s24 = sadd.s32 1, %s1814_s22  ;;  %p1617_p0 = scmp.ge.s32.totalorder %s1818_s23, 1  ;;  %s1818_s23 = sphi %s1913_s23, %s26_s23   ;;  %s1814_s22 = sphi %s1911_s22, %s2089_s22   ;;  %s1810_s21 = sphi %s1909_s21, %s2088_s21  }
   0x6   : > { %p40_p1 = scmp.ge.s32.totalorder %s38_s24, 2  ;;  %p568_p2 = scmp.lt.s32.totalorder %s1818_s23, 3 }
   0x8   : > { %s2091_s24 = smov (%p40_p1, %s38_s24), 0  ;;  %p569_p3 = pnand %p1617_p0, %p568_p2 }
   0x9   : > { %s2084_s6 = sld [smem:[#allocation3_spill]] (!%p569_p3)  ;;  %p672_p4 = scmp.lt.s32.totalorder (!%p569_p3), %s1810_s21, 1 }
   0xa   : > { %572 = sbr.rel (%p569_p3) target bundleno = 447 (0x1bf), region = 84  ;;  %s2085_s7 = sld [smem:[#allocation4_spill]] (!%p569_p3) }
   0xb   : > { %s2086_s8 = sld [smem:[#allocation5_spill]] (!%p569_p3)  ;;  %s1822_s17 = smov (!%p569_p3), 120  }
   0xc   : > { %s2087_s20 = sld [smem:[#allocation2_spill]] (!%p569_p3) }
   0xf   : > { %v746_v0 = vld [vmem:[%s2084_s6] sm:$0xf]  ;;  %vm763_vm0 = vcmask 1043456   ;;  %v1820_v2 = vmov 0.0   ;;  %vm1821_vm1 = vmmov 0   ;;  %s2093_s21 = smov (!%p672_p4, %s1810_s21), 1 }
  0x10   : > { %v812_v1 = vld [vmem:[%s2085_s7] sm:$0xf]  ;;  %1693 = vmatprep.subr.bf16.mxu0 %v1820_v2  ;;  %1699 = vmatprep.subr.bf16.mxu1 %v1820_v2  ;;  %v765_v3 = vsel %vm763_vm0, %v746_v0, 0  ;;  %s1948_s0 = sshll.u32 %s2093_s21, 3  ;;  %v1823_v9 = vmov 0   ;;  %vm759_vm2 = vcmask 64512  }
  0x11   : > { %v825_v4 = vsel %vm763_vm0, %v812_v1, 0  ;;  %1694 = vmatpush3.bf16.msra.mxu0 %v765_v3  ;;  %1695 = vmatprep.mubr.msk.bf16.mxu0 %vm1821_vm1, %v1820_v2  ;;  %v1944_v5 = vld [vmem:[%s2086_s8] ss:$0 sm:$0xff]  ;;  %s689_s28 = scalar_lea.vmem %s2064_s1, %s1948_s0  ;;  %s699_s30 = scalar_lea.vmem %s2065_s2, %s1948_s0  ;;  %vm998_vm3 = vcmask 130048   ;;  %v1104_v38 = vld [vmem:[%s2074_s11 + $0x4] sm:$0xf] }
  0x12   : > { %1700 = vmatpush3.bf16.msra.mxu1 %v825_v4  ;;  %1701 = vmatprep.mubr.msk.bf16.mxu1 %vm1821_vm1, %v1820_v2  ;;  %s679_s25 = scalar_lea.vmem %s2087_s20, %s1948_s0  ;;  %v808_v8 = vld [vmem:[%s689_s28] sm:$0xf]  ;;  %s709_s8 = scalar_lea.vmem %s2066_s3, %s1948_s0  ;;  %v809_v12 = vld [vmem:[%s689_s28 + $0x4] sm:$0xf]  ;;  %v1109_v39 = vsel %vm763_vm0, %v1104_v38, 0  ;;  %vm1433_vm4 = vcmask 257024  }
  0x13   : > { %1705 = vmatprep.subr.bf16.mxu0 %v1820_v2  ;;  %1711 = vmatprep.subr.bf16.mxu1 %v1820_v2  ;;  %v742_v6 = vld [vmem:[%s679_s25] sm:$0xf]  ;;  %v743_v7 = vld [vmem:[%s679_s25 + $0x4] sm:$0xf]  ;;  %v810_v13 = vmax.bf16 %v1823_v9, %v808_v8  ;;  %v811_v14 = vmax.bf16 %v1823_v9, %v809_v12  ;;  %s729_s19 = scalar_lea.vmem %s2068_s5, %s1948_s0  ;;  %s739_s29 = scalar_lea.vmem %s2079_s16, %s1948_s0 }
  0x14   : > { %818 = vrot.lane.b32.xlu0 %v1944_v5, %s1822_s17  ;;  %v744_v10 = vmax.bf16 %v1823_v9, %v742_v6  ;;  %v745_v11 = vmax.bf16 %v1823_v9, %v743_v7  ;;  %v868_v15 = vld [vmem:[%s699_s30] sm:$0xf]  ;;  %v869_v16 = vld [vmem:[%s699_s30 + $0x4] sm:$0xf]  ;;  %s719_s17 = scalar_lea.vmem %s2067_s4, %s1948_s0 }
  0x15   : > { %v921_v18 = vld [vmem:[%s709_s8] sm:$0xf]  ;;  %v922_v19 = vld [vmem:[%s709_s8 + $0x4] sm:$0xf]  ;;  %v1635_v20 = vcombine.low %v810_v13, %v811_v14  ;;  %v870_v21 = vmax.bf16 %v1823_v9, %v868_v15  ;;  %v871_v22 = vmax.bf16 %v1823_v9, %v869_v16 }
  0x16   : > { %v1633_v17 = vcombine.low %v744_v10, %v745_v11  ;;  %v923_v23 = vmax.bf16 %v1823_v9, %v921_v18  ;;  %v924_v24 = vmax.bf16 %v1823_v9, %v922_v19  ;;  %v1793_v27 = vld [vmem:[%s2072_s9] sm:$0xff]  }
  0x17   : > { %1702 = vmatmul.mubr.msk.bf16.vlgmr.msra.gmra.mxu1 %vm759_vm2, %v1635_v20  ;;  %v1637_v25 = vcombine.low %v870_v21, %v871_v22  ;;  %v974_v28 = vld [vmem:[%s719_s17] sm:$0xf]  ;;  %v975_v29 = vld [vmem:[%s719_s17 + $0x4] sm:$0xf] }
  0x18   : > { %1696 = vmatmul.mubr.msk.bf16.vlgmr.msra.gmra.mxu0 %vm759_vm2, %v1633_v17  ;;  %1712 = vmatpush3.bf16.msra.mxu1 %v825_v4  ;;  %v1639_v26 = vcombine.low %v923_v23, %v924_v24  ;;  %v1043_v30 = vld [vmem:[%s729_s19] sm:$0xf]  ;;  %v1044_v31 = vld [vmem:[%s729_s19 + $0x4] sm:$0xf]  ;;  %v976_v32 = vmax.bf16 %v1823_v9, %v974_v28  ;;  %v977_v33 = vmax.bf16 %v1823_v9, %v975_v29 }
  0x19   : > { %1706 = vmatpush3.bf16.msra.mxu0 %v765_v3  ;;  %1707 = vmatprep.mubr.msk.bf16.mxu0 %vm1821_vm1, %v1820_v2  ;;  %v1045_v34 = vmax.bf16 %v1823_v9, %v1043_v30  ;;  %v1046_v35 = vmax.bf16 %v1823_v9, %v1044_v31  ;;  %v1100_v40 = vld [vmem:[%s2074_s11] sm:$0xf]  ;;  %v1214_v58 = vld [vmem:[%s2075_s12 + $0x4] sm:$0xf] }
  0x1a   : > { %1713 = vmatprep.mubr.msk.bf16.mxu1 %vm1821_vm1, %v1820_v2  ;;  %1717 = vmatprep.subr.bf16.mxu0 %v1820_v2  ;;  %v1642_v36 = vcombine.low %v976_v32, %v977_v33  ;;  %v1156_v41 = vsel %vm763_vm0, %v1100_v40, 0  ;;  %v1210_v54 = vld [vmem:[%s2075_s12] sm:$0xf]  ;;  %v1219_v4 = vsel %vm763_vm0, %v1214_v58, 0 }
  0x1b   : > { %1723 = vmatprep.subr.bf16.mxu1 %v1820_v2  ;;  %v1645_v37 = vcombine.low %v1045_v34, %v1046_v35  ;;  %v1266_v0 = vsel %vm763_vm0, %v1210_v54, 0  ;;  %v1795_v20 = vld [vmem:[%s2077_s14] sm:$0xff]  }
  0x1c   : > { %v1794_v23 = vld [vmem:[%s2076_s13] sm:$0xff]  }
  0x1f   : > { %1714 = vmatmul.mubr.msk.bf16.vlgmr.msra.gmra.mxu1 %vm759_vm2, %v1639_v26 }
  0x20   : > { %1708 = vmatmul.mubr.msk.bf16.vlgmr.msra.gmra.mxu0 %vm759_vm2, %v1637_v25  ;;  %1724 = vmatpush3.bf16.msra.mxu1 %v1793_v27 }
  0x21   : > { %1718 = vmatpush3.bf16.msra.mxu0 %v1793_v27  ;;  %1719 = vmatprep.mubr.msk.bf16.mxu0 %vm1821_vm1, %v1820_v2 }
  0x22   : > { %1725 = vmatprep.mubr.msk.bf16.mxu1 %vm1821_vm1, %v1820_v2  ;;  %1729 = vmatprep.subr.bf16.mxu0 %v1820_v2 }
  0x23   : > { %1735 = vmatprep.subr.bf16.mxu1 %v1820_v2 }
  0x27   : > { %1726 = vmatmul.mubr.msk.bf16.vlgmr.msra.gmra.mxu1 %vm998_vm3, %v1645_v37 }
  0x28   : > { %1720 = vmatmul.mubr.msk.bf16.vlgmr.msra.gmra.mxu0 %vm998_vm3, %v1642_v36  ;;  %1737 = vmatprep.mubr.msk.bf16.mxu1 %vm1821_vm1, %v1820_v2 }
  0x29   : > { %1731 = vmatprep.mubr.msk.bf16.mxu0 %vm1821_vm1, %v1820_v2  ;;  %1730 = vmatpush3.bf16.msra.mxu0 %v1109_v39 }
  0x2a   : > { %1741 = vmatprep.subr.bf16.mxu0 %v1820_v2  ;;  %1736 = vmatpush3.bf16.msra.mxu1 %v1156_v41 }
  0x2b   : > { %1747 = vmatprep.subr.bf16.mxu1 %v1820_v2 }
  0x86   : > { %v819_v43 = vpop.permute.xlu0 %818 }
  0xd7   : > { %v861_v44 = vpop.f32.mrf.mxu1 }
  0xd8   : > { %v801_v42 = vpop.f32.mrf.mxu0  ;;  %v862_v48 = vadd.f32 %v861_v44, %v819_v43 }
  0xd9   : > { %v802_v46 = vadd.f32 %v1944_v5, %v801_v42  ;;  %v1703_v47 = vpop.f32.mrf.mxu1 }
  0xda   : > { %v1697_v45 = vpop.f32.mrf.mxu0  ;;  %v1101_v59 = vmax.f32 %v862_v48, 0.0 }
  0xdb   : > { %v864_v51 = vpop.f32.mrf.mxu1  ;;  %v1097_v55 = vmax.f32 %v802_v46, 0.0 }
  0xdc   : > { %v804_v49 = vpop.f32.mrf.mxu0  ;;  %v865_v52 = vadd.f32 %v864_v51, %v819_v43 }
  0xdd   : > { %v805_v50 = vadd.f32 %v1944_v5, %v804_v49  ;;  %v1704_v57 = vpop.f32.mrf.mxu1 }
  0xde   : > { %v1698_v53 = vpop.f32.mrf.mxu0  ;;  %v1102_v60 = vmax.f32 %v865_v52, 0.0  ;;  %v1649_v52 = vld [vmem:[%s2078_s15] ss:$0 sm:$0xff] }
  0xdf   : > { %v1098_v56 = vmax.f32 %v805_v50, 0.0  ;;  %v967_v63 = vpop.f32.mrf.mxu1 }
  0xe0   : > { %v914_v61 = vpop.f32.mrf.mxu0  ;;  %v1103_v1 = vpack.c.bf16 %v1102_v60, %v1101_v59  ;;  %v968_v8 = vadd.f32 %v967_v63, %v819_v43 }
  0xe1   : > { %v1099_v62 = vpack.c.bf16 %v1098_v56, %v1097_v55  ;;  %v915_v6 = vadd.f32 %v1944_v5, %v914_v61  ;;  %v1715_v7 = vpop.f32.mrf.mxu1 }
  0xe2   : > { %v1709_v3 = vpop.f32.mrf.mxu0  ;;  %1732 = vmatmul.mubr.msk.bf16.vlgmr.msra.gmra.mxu0 %vm759_vm2, %v1103_v1  ;;  %v1211_v17 = vmax.f32 %v968_v8, 0.0 }
  0xe3   : > { %1738 = vmatmul.mubr.msk.bf16.vlgmr.msra.gmra.mxu1 %vm759_vm2, %v1099_v62  ;;  %1742 = vmatpush3.bf16.msra.mxu0 %v1219_v4  ;;  %v970_v11 = vpop.f32.mrf.mxu1  ;;  %v1207_v14 = vmax.f32 %v915_v6, 0.0 }
  0xe4   : > { %v917_v9 = vpop.f32.mrf.mxu0  ;;  %1748 = vmatpush3.bf16.msra.mxu1 %v1266_v0  ;;  %1743 = vmatprep.mubr.msk.bf16.mxu0 %vm1821_vm1, %v1820_v2  ;;  %v971_v12 = vadd.f32 %v970_v11, %v819_v43 }
  0xe5   : > { %v918_v10 = vadd.f32 %v1944_v5, %v917_v9  ;;  %1749 = vmatprep.mubr.msk.bf16.mxu1 %vm1821_vm1, %v1820_v2  ;;  %1753 = vmatprep.subr.bf16.mxu0 %v1820_v2  ;;  %v1716_v16 = vpop.f32.mrf.mxu1  ;;  %v1641_v5 = vld [vmem:[%s2073_s10] ss:$0 sm:$0xff] }
  0xe6   : > { %v1710_v13 = vpop.f32.mrf.mxu0  ;;  %1759 = vmatprep.subr.bf16.mxu1 %v1820_v2  ;;  %v1212_v18 = vmax.f32 %v971_v12, 0.0 }
  0xe7   : > { %v1208_v15 = vmax.f32 %v918_v10, 0.0  ;;  %v1089_v22 = vpop.f32.mrf.mxu1 }
  0xe8   : > { %v1036_v19 = vpop.f32.mrf.mxu0  ;;  %v1213_v24 = vpack.c.bf16 %v1212_v18, %v1211_v17  ;;  %v1090_v28 = vadd.f32 %v1641_v5, %v1089_v22 }
  0xe9   : > { %v1209_v21 = vpack.c.bf16 %v1208_v15, %v1207_v14  ;;  %v1037_v26 = vadd.f32 %v1641_v5, %v1036_v19  ;;  %v1727_v27 = vpop.f32.mrf.mxu1 }
  0xea   : > { %v1721_v25 = vpop.f32.mrf.mxu0  ;;  %1744 = vmatmul.mubr.msk.bf16.vlgmr.msra.gmra.mxu0 %vm759_vm2, %v1213_v24  ;;  %v1368_v37 = vmax.f32 %v1090_v28, 0.0 }
  0xeb   : > { %1750 = vmatmul.mubr.msk.bf16.vlgmr.msra.gmra.mxu1 %vm759_vm2, %v1209_v21  ;;  %1754 = vmatpush3.bf16.msra.mxu0 %v1794_v23  ;;  %v1092_v31 = vpop.f32.mrf.mxu1  ;;  %v1311_v34 = vmax.f32 %v1037_v26, 0.0 }
  0xec   : > { %v1039_v29 = vpop.f32.mrf.mxu0  ;;  %1760 = vmatpush3.bf16.msra.mxu1 %v1795_v20  ;;  %1755 = vmatprep.mubr.msk.bf16.mxu0 %vm1821_vm1, %v1820_v2  ;;  %v1093_v32 = vadd.f32 %v1641_v5, %v1092_v31 }
  0xed   : > { %v1040_v30 = vadd.f32 %v1641_v5, %v1039_v29  ;;  %1761 = vmatprep.mubr.msk.bf16.mxu1 %vm1821_vm1, %v1820_v2  ;;  %v1728_v36 = vpop.f32.mrf.mxu1 }
  0xee   : > { %v1722_v33 = vpop.f32.mrf.mxu0  ;;  %v1369_v38 = vmax.f32 %v1093_v32, 0.0 }
  0xef   : > { %v1312_v35 = vmax.f32 %v1040_v30, 0.0 }
  0xf0   : > { %v1370_v40 = vpack.c.bf16 %v1369_v38, %v1368_v37 }
  0xf1   : > { %v1313_v39 = vpack.c.bf16 %v1312_v35, %v1311_v34 }
  0xf3   : > { %1756 = vmatmul.mubr.msk.bf16.vlgmr.msra.gmra.mxu0 %vm998_vm3, %v1313_v39  ;;  %1762 = vmatmul.mubr.msk.bf16.vlgmr.msra.gmra.mxu1 %vm998_vm3, %v1370_v40 }
 0x1a2   : > { %v1145_v42 = vpop.f32.mrf.mxu0 }
 0x1a3   : > { %v1192_v41 = vpop.f32.mrf.mxu1 }
 0x1a4   : > { %v1733_v44 = vpop.f32.mrf.mxu0  ;;  %v1193_v50 = vadd.f32 %v1192_v41, %v1145_v42 }
 0x1a5   : > { %v1739_v43 = vpop.f32.mrf.mxu1 }
 0x1a6   : > { %v1148_v46 = vpop.f32.mrf.mxu0  ;;  %v1205_v57 = vadd.f32 %v1649_v52, %v1193_v50 }
 0x1a7   : > { %v1195_v45 = vpop.f32.mrf.mxu1 }
 0x1a8   : > { %v1734_v48 = vpop.f32.mrf.mxu0  ;;  %v1196_v58 = vadd.f32 %v1195_v45, %v1148_v46 }
 0x1a9   : > { %v1740_v47 = vpop.f32.mrf.mxu1 }
 0x1aa   : > { %v1255_v49 = vpop.f32.mrf.mxu0  ;;  %v1206_v1 = vadd.f32 %v1649_v52, %v1196_v58 }
 0x1ab   : > { %v1302_v2 = vpop.f32.mrf.mxu1 }
 0x1ac   : > { %v1745_v53 = vpop.f32.mrf.mxu0  ;;  %v1303_v54 = vadd.f32 %v1302_v2, %v1255_v49 }
 0x1ad   : > { %v1751_v51 = vpop.f32.mrf.mxu1 }
 0x1ae   : > { %v1258_v56 = vpop.f32.mrf.mxu0  ;;  %v1309_v62 = vadd.f32 %v1303_v54, %v1205_v57 }
 0x1af   : > { %v1305_v55 = vpop.f32.mrf.mxu1 }
 0x1b0   : > { %v1746_v60 = vpop.f32.mrf.mxu0  ;;  %v1306_v61 = vadd.f32 %v1305_v55, %v1258_v56 }
 0x1b1   : > { %v1752_v59 = vpop.f32.mrf.mxu1 }
 0x1b2   : > { %v1310_v8 = vadd.f32 %v1306_v61, %v1206_v1 }
 0x1b3   : > { %v1359_v63 = vpop.f32.mrf.mxu0  ;;  %v1416_v0 = vpop.f32.mrf.mxu1 }
 0x1b4   : > { %v1366_v3 = vadd.f32 %v1359_v63, %v1309_v62 }
 0x1b5   : > { %v1757_v4 = vpop.f32.mrf.mxu0  ;;  %v1763_v6 = vpop.f32.mrf.mxu1 }
 0x1b6   : > { %v1423_v7 = vadd.f32 %v1416_v0, %v1366_v3 }
 0x1b7   : > { %v1362_v9 = vpop.f32.mrf.mxu0  ;;  %v1419_v10 = vpop.f32.mrf.mxu1 }
 0x1b8   : > { %v1667_v11 = vpack.c.bf16 %v1423_v7, %v1423_v7  ;;  %v1367_v12 = vadd.f32 %v1362_v9, %v1310_v8 }
 0x1b9   : > { %v1758_v13 = vpop.f32.mrf.mxu0  ;;  %v1764_v14 = vpop.f32.mrf.mxu1 }
 0x1ba   : > { %1434 = vst.msk [vmem:[%s739_s29] sm:$0xf] %vm1433_vm4, %v1667_v11  ;;  %v1424_v15 = vadd.f32 %v1419_v10, %v1367_v12 }
 0x1bc   : > { %v1668_v16 = vpack.c.bf16 %v1424_v15, %v1424_v15 }
 0x1be   : > { %1435 = vst.msk [vmem:[%s739_s29 + $0x4] sm:$0xf] %vm1433_vm4, %v1668_v16 }
 0x1bf PF: > { %s26_s23 = sadd.s32 1, %s1818_s23   ;;  %s2088_s21 = smov %s1814_s22 }
 0x1c0   : > { %p23_p5 = scmp.ge.s32.totalorder %s26_s23, 4   ;;  %s2089_s22 = smov %s2091_s24 }
 0x1c2   :  { %25 = sbr.rel (!%p23_p5) target bundleno = 5 (0x5), region = 129 }

</bundles_post_ra>
